<compile_context>
chip_gen: v7x
topology: tpu7x:2x2x1
jax: 0.10.0
libtpu: 0.0.40
codegen_flags: <defaults>
</compile_context>

<pallas_src>
import functools

import jax
import jax.numpy as jnp
from jax.experimental import pallas as pl
from jax.experimental.pallas import tpu as pltpu

LN_EPS = 1e-5                 # torch.nn.LayerNorm default eps
PACK = 4                      # original rows packed per 128-lane vector row
_PREC = jax.lax.Precision.HIGHEST


def _mxu(a, b):
    return jnp.dot(a, b, precision=_PREC, preferred_element_type=jnp.float32)


def box_encoding_kernel(x_ref, w1_ref, w2_ref, a1_ref, a2_ref, v1_ref, v2_ref, o_ref):
    # Grid-invariant blocks (constant index_map): DMA'd once, stay resident in VMEM.
    w1 = w1_ref[...]      # (PACK*in,     PACK*hidden)  block-diag fc1 weight
    w2 = w2_ref[...]      # (PACK*hidden, PACK*out)     block-diag fc2 weight
    a1 = a1_ref[...]      # (PACK*hidden, PACK*hidden)  block-diag ones/hidden (segment mean)
    a2 = a2_ref[...]      # (PACK*out,    PACK*out)     block-diag ones/out
    v1 = v1_ref[...]      # (3, PACK*hidden) = [fc1.bias; ln1.weight; ln1.bias] tiled x PACK
    v2 = v2_ref[...]      # (3, PACK*out)

    x = x_ref[...].astype(jnp.float32)          # (rb, PACK*in) lane-packed rows

    # --- fc1 + ln1 + relu (segmented LayerNorm stats on the MXU) ---
    h = _mxu(x, w1) + v1[0:1, :]
    mu = _mxu(h, a1)                            # per-segment mean, broadcast within segment
    c = h - mu
    var = _mxu(c * c, a1)                       # biased, centered variance (torch LN form)
    h = c * jax.lax.rsqrt(var + LN_EPS) * v1[1:2, :] + v1[2:3, :]
    h = jnp.maximum(h, 0.0)

    # --- fc2 + ln2 + relu ---
    y = _mxu(h, w2) + v2[0:1, :]
    mu2 = _mxu(y, a2)
    c2 = y - mu2
    var2 = _mxu(c2 * c2, a2)
    y = c2 * jax.lax.rsqrt(var2 + LN_EPS) * v2[1:2, :] + v2[2:3, :]
    y = jnp.maximum(y, 0.0)

    o_ref[...] = y.astype(o_ref.dtype)          # lane-dense (rb, PACK*out) store


def _round_up(n, m):
    return -(-n // m) * m


def _pick_row_block(n_packed, requested):
    """Static (trace-time) row-block choice in packed rows: multiple of 8, large by
    default, never bigger than the 8-rounded input.  No forced multi-step split for
    small inputs (pure overhead on 1-TC v5e/v6e); large inputs naturally produce
    multiple 'parallel' steps for v7x's two TensorCores."""
    rb = max(8, (int(requested) // 8) * 8)
    return min(rb, _round_up(max(int(n_packed), 1), 8))


@functools.partial(jax.jit, static_argnames=("row_block",))
def box_encoding(x, packed_params, row_block=1024):
    """x: (..., input_dim) float32.  Returns (..., output_dim).

    row_block is in packed rows (PACK original rows each); default 1024 packed rows
    = 4096 original rows."""
    w1b, w2b, a1, a2, v1, v2 = packed_params
    in_dim = w1b.shape[0] // PACK
    out_dim = w2b.shape[1] // PACK

    lead_shape = x.shape[:-1]
    x2d = x.reshape(-1, in_dim)
    n_rows = x2d.shape[0]

    # Pack PACK rows per lane-row.  Pad the row count up to a multiple of 8*PACK so the
    # packed row count is a multiple of the 8-sublane tile; only copies when ragged.
    n_rows_p = _round_up(max(n_rows, 1), 8 * PACK)
    if n_rows_p != n_rows:
        x2d = jnp.pad(x2d, ((0, n_rows_p - n_rows), (0, 0)))
    n_packed = n_rows_p // PACK
    x4 = x2d.reshape(n_packed, PACK * in_dim)          # contiguous -> free reshape

    rb = _pick_row_block(n_packed, row_block)
    grid = (pl.cdiv(n_packed, rb),)

    rep_map = lambda i: (0, 0)
    full = lambda arr: pl.BlockSpec(arr.shape, rep_map)
    row_map = lambda i: (i, 0)

    out4 = pl.pallas_call(
        box_encoding_kernel,
        out_shape=jax.ShapeDtypeStruct((n_packed, PACK * out_dim), x.dtype),
        grid_spec=pltpu.PrefetchScalarGridSpec(
            num_scalar_prefetch=0,
            grid=grid,
            in_specs=[
                pl.BlockSpec((rb, PACK * in_dim), row_map),   # packed activation rows
                full(w1b), full(w2b), full(a1), full(a2), full(v1), full(v2),
            ],
            out_specs=pl.BlockSpec((rb, PACK * out_dim), row_map),
        ),
        compiler_params=pltpu.CompilerParams(
            dimension_semantics=("parallel",)),
    )(x4, w1b, w2b, a1, a2, v1, v2)

    out2d = out4.reshape(n_rows_p, out_dim)            # contiguous -> free reshape
    if n_rows_p != n_rows:
        out2d = out2d[:n_rows]
    return out2d.reshape(*lead_shape, out_dim)


def init_params(key, input_dim, hidden_dim, output_dim):
    """Deterministic synthetic parameters matching the PyTorch module's shapes.
    Weights stored as [in, out] (transpose of torch's [out, in]) so we compute x @ W."""
    k1, k2, k3, k4 = jax.random.split(key, 4)
    s1 = 1.0 / jnp.sqrt(input_dim)
    s2 = 1.0 / jnp.sqrt(hidden_dim)
    w1 = jax.random.uniform(k1, (input_dim, hidden_dim), jnp.float32, -s1, s1)
    b1 = jax.random.uniform(k2, (hidden_dim,), jnp.float32, -s1, s1)
    w2 = jax.random.uniform(k3, (hidden_dim, output_dim), jnp.float32, -s2, s2)
    b2 = jax.random.uniform(k4, (output_dim,), jnp.float32, -s2, s2)
    g1 = jnp.ones((hidden_dim,), jnp.float32)    # ln1.weight
    be1 = jnp.zeros((hidden_dim,), jnp.float32)  # ln1.bias
    g2 = jnp.ones((output_dim,), jnp.float32)    # ln2.weight
    be2 = jnp.zeros((output_dim,), jnp.float32)  # ln2.bias
    return (w1, b1, g1, be1, w2, b2, g2, be2)


def _block_diag(w, n):
    k, m = w.shape
    out = jnp.zeros((n * k, n * m), w.dtype)
    for g in range(n):
        out = out.at[g * k:(g + 1) * k, g * m:(g + 1) * m].set(w)
    return out


def pack_params(raw_params):
    """Build the lane-packed (block-diagonal) parameter set used by the kernel."""
    w1, b1, g1, be1, w2, b2, g2, be2 = raw_params
    hidden = w1.shape[1]
    out = w2.shape[1]
    w1b = _block_diag(w1, PACK)                                       # (PACK*in, PACK*hidden)
    w2b = _block_diag(w2, PACK)                                       # (PACK*hidden, PACK*out)
    a1 = _block_diag(jnp.full((hidden, hidden), 1.0 / hidden, jnp.float32), PACK)
    a2 = _block_diag(jnp.full((out, out), 1.0 / out, jnp.float32), PACK)
    v1 = jnp.stack([jnp.tile(b1, PACK), jnp.tile(g1, PACK), jnp.tile(be1, PACK)])  # (3, PACK*hidden)
    v2 = jnp.stack([jnp.tile(b2, PACK), jnp.tile(g2, PACK), jnp.tile(be2, PACK)])  # (3, PACK*out)
    return (w1b, w2b, a1, a2, v1, v2)


def _layernorm_ref(h, gamma, beta):
    mu = jnp.mean(h, axis=-1, keepdims=True)
    var = jnp.mean((h - mu) * (h - mu), axis=-1, keepdims=True)
    return (h - mu) * jax.lax.rsqrt(var + LN_EPS) * gamma + beta


def _reference(x, raw_params):
    """Pure-JAX reference mirroring the PyTorch forward (f32 throughout)."""
    w1, b1, g1, be1, w2, b2, g2, be2 = raw_params
    h = jnp.dot(x, w1, precision=_PREC) + b1
    h = jnp.maximum(_layernorm_ref(h, g1, be1), 0.0)
    y = jnp.dot(h, w2, precision=_PREC) + b2
    return jnp.maximum(_layernorm_ref(y, g2, be2), 0.0)


if __name__ == "__main__":
    # args = {'boundingbox': 7, 'hiddendim': 32, 'featuredim': 64}
    input_dim, hidden_dim, output_dim = 7, 32, 64

    key = jax.random.PRNGKey(0)
    kx, kp, kx2 = jax.random.split(key, 3)
    raw = init_params(kp, input_dim, hidden_dim, output_dim)
    packed = pack_params(raw)

    # Case 1: evenly divisible row count (batch=2, num_boxes=8 -> 16 rows).
    x = jax.random.normal(kx, (2, 8, input_dim), jnp.float32)
    out = jax.block_until_ready(box_encoding(x, packed))
    ref = _reference(x.reshape(-1, input_dim), raw).reshape(2, 8, output_dim)
    assert out.shape == (2, 8, output_dim)
    assert jnp.allclose(out, ref, atol=1e-5, rtol=1e-5), "mismatch vs reference (even)"

    # Case 2: ragged row count (batch=3, num_boxes=5 -> 15 rows) -> exercises the
    # row padding + 4-row lane packing path.
    x2 = jax.random.normal(kx2, (3, 5, input_dim), jnp.float32)
    out2 = jax.block_until_ready(box_encoding(x2, packed))
    ref2 = _reference(x2.reshape(-1, input_dim), raw).reshape(3, 5, output_dim)
    assert out2.shape == (3, 5, output_dim)
    assert jnp.allclose(out2, ref2, atol=1e-5, rtol=1e-5), "mismatch vs reference (ragged)"

    print("KERNEL_OK")
</pallas_src>

<mosaic_0001>
module attributes {stable_mosaic.version = 11 : i64} {
  func.func @box_encoding_kernel(%arg0: i32, %arg1: memref<8x28xf32, #tpu.memory_space<vmem>>, %arg2: memref<28x128xf32, #tpu.memory_space<vmem>>, %arg3: memref<128x256xf32, #tpu.memory_space<vmem>>, %arg4: memref<128x128xf32, #tpu.memory_space<vmem>>, %arg5: memref<256x256xf32, #tpu.memory_space<vmem>>, %arg6: memref<3x128xf32, #tpu.memory_space<vmem>>, %arg7: memref<3x256xf32, #tpu.memory_space<vmem>>, %arg8: memref<8x256xf32, #tpu.memory_space<vmem>>) attributes {dimension_semantics = [#tpu.dimension_semantics<parallel>], iteration_bounds = array<i64: 1>, scalar_prefetch = 0 : i64, scratch_operands = 0 : i64, tpu.core_type = #tpu.core_type<tc>, window_params = [{transform_indices = @transform_0, window_bounds = array<i64: 8, 28>}, {pipeline_mode = #tpu.pipeline_mode<synchronous>, transform_indices = @transform_1, window_bounds = array<i64: 28, 128>}, {pipeline_mode = #tpu.pipeline_mode<synchronous>, transform_indices = @transform_2, window_bounds = array<i64: 128, 256>}, {pipeline_mode = #tpu.pipeline_mode<synchronous>, transform_indices = @transform_3, window_bounds = array<i64: 128, 128>}, {pipeline_mode = #tpu.pipeline_mode<synchronous>, transform_indices = @transform_4, window_bounds = array<i64: 256, 256>}, {pipeline_mode = #tpu.pipeline_mode<synchronous>, transform_indices = @transform_5, window_bounds = array<i64: 3, 128>}, {pipeline_mode = #tpu.pipeline_mode<synchronous>, transform_indices = @transform_6, window_bounds = array<i64: 3, 256>}, {transform_indices = @transform_7, window_bounds = array<i64: 8, 256>}]} {
    %c0 = arith.constant 0 : index
    %c0_0 = arith.constant 0 : index
    %0 = vector.load %arg2[%c0, %c0_0] : memref<28x128xf32, #tpu.memory_space<vmem>>, vector<28x128xf32>
    %c0_1 = arith.constant 0 : index
    %c0_2 = arith.constant 0 : index
    %1 = vector.load %arg3[%c0_1, %c0_2] : memref<128x256xf32, #tpu.memory_space<vmem>>, vector<128x256xf32>
    %c0_3 = arith.constant 0 : index
    %c0_4 = arith.constant 0 : index
    %2 = vector.load %arg4[%c0_3, %c0_4] : memref<128x128xf32, #tpu.memory_space<vmem>>, vector<128x128xf32>
    %c0_5 = arith.constant 0 : index
    %c0_6 = arith.constant 0 : index
    %3 = vector.load %arg5[%c0_5, %c0_6] : memref<256x256xf32, #tpu.memory_space<vmem>>, vector<256x256xf32>
    %c0_7 = arith.constant 0 : index
    %c0_8 = arith.constant 0 : index
    %4 = vector.load %arg6[%c0_7, %c0_8] : memref<3x128xf32, #tpu.memory_space<vmem>>, vector<3x128xf32>
    %c0_9 = arith.constant 0 : index
    %c0_10 = arith.constant 0 : index
    %5 = vector.load %arg7[%c0_9, %c0_10] : memref<3x256xf32, #tpu.memory_space<vmem>>, vector<3x256xf32>
    %c0_11 = arith.constant 0 : index
    %c0_12 = arith.constant 0 : index
    %6 = vector.load %arg1[%c0_11, %c0_12] : memref<8x28xf32, #tpu.memory_space<vmem>>, vector<8x28xf32>
    %cst = arith.constant dense<0.000000e+00> : vector<8x128xf32>
    %7 = tpu.matmul %6, %0, %cst {dimension_numbers = #tpu.dot_dimension_numbers<[1], [0], [0], [1], [0, 0, 1, 1], [], []>, precision = #tpu.contract_precision<fp32>} : vector<8x28xf32>, vector<28x128xf32>, vector<8x128xf32> -> vector<8x128xf32>
    %8 = vector.extract_strided_slice %4 {offsets = [0, 0], sizes = [1, 128], strides = [1, 1]} : vector<3x128xf32> to vector<1x128xf32>
    %9 = vector.broadcast %8 : vector<1x128xf32> to vector<8x128xf32>
    %10 = arith.addf %7, %9 : vector<8x128xf32>
    %cst_13 = arith.constant dense<0.000000e+00> : vector<8x128xf32>
    %11 = tpu.matmul %10, %2, %cst_13 {dimension_numbers = #tpu.dot_dimension_numbers<[1], [0], [0], [1], [0, 0, 1, 1], [], []>, precision = #tpu.contract_precision<fp32>} : vector<8x128xf32>, vector<128x128xf32>, vector<8x128xf32> -> vector<8x128xf32>
    %12 = arith.subf %10, %11 : vector<8x128xf32>
    %13 = arith.mulf %12, %12 : vector<8x128xf32>
    %cst_14 = arith.constant dense<0.000000e+00> : vector<8x128xf32>
    %14 = tpu.matmul %13, %2, %cst_14 {dimension_numbers = #tpu.dot_dimension_numbers<[1], [0], [0], [1], [0, 0, 1, 1], [], []>, precision = #tpu.contract_precision<fp32>} : vector<8x128xf32>, vector<128x128xf32>, vector<8x128xf32> -> vector<8x128xf32>
    %cst_15 = arith.constant 9.99999974E-6 : f32
    %15 = vector.broadcast %cst_15 : f32 to vector<8x128xf32>
    %16 = arith.addf %14, %15 : vector<8x128xf32>
    %17 = math.rsqrt %16 : vector<8x128xf32>
    %18 = arith.mulf %12, %17 : vector<8x128xf32>
    %19 = vector.extract_strided_slice %4 {offsets = [1, 0], sizes = [1, 128], strides = [1, 1]} : vector<3x128xf32> to vector<1x128xf32>
    %20 = vector.broadcast %19 : vector<1x128xf32> to vector<8x128xf32>
    %21 = arith.mulf %18, %20 : vector<8x128xf32>
    %22 = vector.extract_strided_slice %4 {offsets = [2, 0], sizes = [1, 128], strides = [1, 1]} : vector<3x128xf32> to vector<1x128xf32>
    %23 = vector.broadcast %22 : vector<1x128xf32> to vector<8x128xf32>
    %24 = arith.addf %21, %23 : vector<8x128xf32>
    %cst_16 = arith.constant 0.000000e+00 : f32
    %25 = vector.broadcast %cst_16 : f32 to vector<8x128xf32>
    %26 = arith.maximumf %24, %25 : vector<8x128xf32>
    %cst_17 = arith.constant dense<0.000000e+00> : vector<8x256xf32>
    %27 = tpu.matmul %26, %1, %cst_17 {dimension_numbers = #tpu.dot_dimension_numbers<[1], [0], [0], [1], [0, 0, 1, 1], [], []>, precision = #tpu.contract_precision<fp32>} : vector<8x128xf32>, vector<128x256xf32>, vector<8x256xf32> -> vector<8x256xf32>
    %28 = vector.extract_strided_slice %5 {offsets = [0, 0], sizes = [1, 256], strides = [1, 1]} : vector<3x256xf32> to vector<1x256xf32>
    %29 = vector.broadcast %28 : vector<1x256xf32> to vector<8x256xf32>
    %30 = arith.addf %27, %29 : vector<8x256xf32>
    %cst_18 = arith.constant dense<0.000000e+00> : vector<8x256xf32>
    %31 = tpu.matmul %30, %3, %cst_18 {dimension_numbers = #tpu.dot_dimension_numbers<[1], [0], [0], [1], [0, 0, 1, 1], [], []>, precision = #tpu.contract_precision<fp32>} : vector<8x256xf32>, vector<256x256xf32>, vector<8x256xf32> -> vector<8x256xf32>
    %32 = arith.subf %30, %31 : vector<8x256xf32>
    %33 = arith.mulf %32, %32 : vector<8x256xf32>
    %cst_19 = arith.constant dense<0.000000e+00> : vector<8x256xf32>
    %34 = tpu.matmul %33, %3, %cst_19 {dimension_numbers = #tpu.dot_dimension_numbers<[1], [0], [0], [1], [0, 0, 1, 1], [], []>, precision = #tpu.contract_precision<fp32>} : vector<8x256xf32>, vector<256x256xf32>, vector<8x256xf32> -> vector<8x256xf32>
    %cst_20 = arith.constant 9.99999974E-6 : f32
    %35 = vector.broadcast %cst_20 : f32 to vector<8x256xf32>
    %36 = arith.addf %34, %35 : vector<8x256xf32>
    %37 = math.rsqrt %36 : vector<8x256xf32>
    %38 = arith.mulf %32, %37 : vector<8x256xf32>
    %39 = vector.extract_strided_slice %5 {offsets = [1, 0], sizes = [1, 256], strides = [1, 1]} : vector<3x256xf32> to vector<1x256xf32>
    %40 = vector.broadcast %39 : vector<1x256xf32> to vector<8x256xf32>
    %41 = arith.mulf %38, %40 : vector<8x256xf32>
    %42 = vector.extract_strided_slice %5 {offsets = [2, 0], sizes = [1, 256], strides = [1, 1]} : vector<3x256xf32> to vector<1x256xf32>
    %43 = vector.broadcast %42 : vector<1x256xf32> to vector<8x256xf32>
    %44 = arith.addf %41, %43 : vector<8x256xf32>
    %cst_21 = arith.constant 0.000000e+00 : f32
    %45 = vector.broadcast %cst_21 : f32 to vector<8x256xf32>
    %46 = arith.maximumf %44, %45 : vector<8x256xf32>
    %c0_22 = arith.constant 0 : index
    %c0_23 = arith.constant 0 : index
    %47 = vector.load %arg8[%c0_22, %c0_23] : memref<8x256xf32, #tpu.memory_space<vmem>>, vector<8x256xf32>
    tpu.vector_store %arg8[%c0_22, %c0_23], %46 {strides = array<i32>} : memref<8x256xf32, #tpu.memory_space<vmem>>, vector<8x256xf32>,
    return
  }
  func.func @transform_0(%arg0: i32) -> (i32, i32) {
    %c0_i32 = arith.constant 0 : i32
    %c0_i32_0 = arith.constant 0 : i32
    return %arg0, %c0_i32 : i32, i32
  }
  func.func @transform_1(%arg0: i32) -> (i32, i32) {
    %c0_i32 = arith.constant 0 : i32
    %c0_i32_0 = arith.constant 0 : i32
    %c0_i32_1 = arith.constant 0 : i32
    return %c0_i32, %c0_i32_0 : i32, i32
  }
  func.func @transform_2(%arg0: i32) -> (i32, i32) {
    %c0_i32 = arith.constant 0 : i32
    %c0_i32_0 = arith.constant 0 : i32
    %c0_i32_1 = arith.constant 0 : i32
    return %c0_i32, %c0_i32_0 : i32, i32
  }
  func.func @transform_3(%arg0: i32) -> (i32, i32) {
    %c0_i32 = arith.constant 0 : i32
    %c0_i32_0 = arith.constant 0 : i32
    %c0_i32_1 = arith.constant 0 : i32
    return %c0_i32, %c0_i32_0 : i32, i32
  }
  func.func @transform_4(%arg0: i32) -> (i32, i32) {
    %c0_i32 = arith.constant 0 : i32
    %c0_i32_0 = arith.constant 0 : i32
    %c0_i32_1 = arith.constant 0 : i32
    return %c0_i32, %c0_i32_0 : i32, i32
  }
  func.func @transform_5(%arg0: i32) -> (i32, i32) {
    %c0_i32 = arith.constant 0 : i32
    %c0_i32_0 = arith.constant 0 : i32
    %c0_i32_1 = arith.constant 0 : i32
    return %c0_i32, %c0_i32_0 : i32, i32
  }
  func.func @transform_6(%arg0: i32) -> (i32, i32) {
    %c0_i32 = arith.constant 0 : i32
    %c0_i32_0 = arith.constant 0 : i32
    %c0_i32_1 = arith.constant 0 : i32
    return %c0_i32, %c0_i32_0 : i32, i32
  }
  func.func @transform_7(%arg0: i32) -> (i32, i32) {
    %c0_i32 = arith.constant 0 : i32
    %c0_i32_0 = arith.constant 0 : i32
    return %arg0, %c0_i32 : i32, i32
  }
}

</mosaic_0001>

<bundles_post_ra>
// kernel: box_encoding.1
= control target key start
LH: loop header
LB: loop body
LE: loop exit
PB: predicated region body
PF: predicated region fallthrough
CT: control target
= control target key end

     0   :  { %12 = vsyncpa [#allocation3], 0  ;;  %s10710_s0 = inlined_call_operand.vmem [shape: f32[8,28], index: 0, kind: input, shape index: {}]   ;;  %s10711_s1 = inlined_call_operand.hbm [shape: f32[28,128], index: 1, kind: input, shape index: {}]   ;;  %s10712_s2 = inlined_call_operand.hbm [shape: f32[128,256], index: 2, kind: input, shape index: {}]   ;;  %s10713_s3 = inlined_call_operand.vmem [shape: f32[128,128], index: 3, kind: input, shape index: {}]   ;;  %s10714_s4 = inlined_call_operand.hbm [shape: f32[256,256], index: 4, kind: input, shape index: {}]   ;;  %s10715_s5 = inlined_call_operand.vmem [shape: f32[3,128], index: 5, kind: input, shape index: {}]   ;;  %s10716_s6 = inlined_call_operand.vmem [shape: f32[3,256], index: 6, kind: input, shape index: {}]   ;;  %s10717_s7 = inlined_call_operand.vmem [shape: f32[8,256], index: 7, kind: output, shape index: {}]  }
   0x1   :  { %13 = vsyncpa [#allocation5], 0  ;;  %s7637_s24 = smov [#allocation4]   ;;  %s7567_s28 = scalar_lea.hbm %s10712_s2, 4096 }
   0x2   :  { %s33_s25 = sshll.u32 %s7637_s24, 4  ;;  %p7568_p0 = scmp.ne.s32.totalorder %s10712_s2, %s7567_s28  ;;  %s34_s25 = int_to_ptr.vmem [resolvable:$true] %s33_s25 }
   0x3   :  { %p7571_p1 = scmp.lt.u32.totalorder %s7567_s28, %s10712_s2 }
   0x5   :  { %p7573_p2 = pnand %p7571_p1, %p7568_p0 }
   0x7   :  { %7576 = shalt.err (!%p7573_p2)
}
   0x8   :  { %s7577_s10 = scalar_lea.vmem %s34_s25, 4096  ;;  %p7582_p4 = scmp.lt.s32.totalorder %s34_s25, %s34_s25 }
   0x9   :  { %p7578_p3 = scmp.ne.s32.totalorder %s34_s25, %s7577_s10  ;;  %p7583_p5 = scmp.lt.s32.totalorder %s7577_s10, %s7577_s10 }
   0xb   :  { %p7584_p6 = por %p7583_p5, %p7582_p4 }
   0xd   :  { %p7585_p7 = pnand %p7584_p6, %p7578_p3 }
   0xf   :  { %7588 = shalt.err (!%p7585_p7)
}
  0x10   :  { %s7638_s11 = smov 256   ;;  %s7639_s12 = smov 16  }
  0x11   :  { %39 = dma.hbm_to_vmem [thread:$0]  %s10712_s2, 4096, %s34_s25, [#allocation5], %s7638_s11, %s7638_s11, %s7639_s12  }
  0x12   :  { %s7640_s15 = smov [#allocation2]   ;;  %s7589_s19 = scalar_lea.hbm %s10711_s1, 512 }
  0x13   :  { %s21_s16 = sshll.u32 %s7640_s15, 4  ;;  %p7590_p8 = scmp.ne.s32.totalorder %s10711_s1, %s7589_s19  ;;  %s22_s16 = int_to_ptr.vmem [resolvable:$true] %s21_s16 }
  0x14   :  { %p7593_p9 = scmp.lt.u32.totalorder %s7589_s19, %s10711_s1 }
  0x16   :  { %p7595_p10 = pnand %p7593_p9, %p7590_p8 }
  0x18   :  { %7598 = shalt.err (!%p7595_p10)
}
  0x19   :  { %s7599_s24 = scalar_lea.vmem %s22_s16, 512  ;;  %p7604_p12 = scmp.lt.s32.totalorder %s22_s16, %s22_s16 }
  0x1a   :  { %p7600_p11 = scmp.ne.s32.totalorder %s22_s16, %s7599_s24  ;;  %p7605_p13 = scmp.lt.s32.totalorder %s7599_s24, %s7599_s24 }
  0x1c   :  { %p7606_p0 = por %p7605_p13, %p7604_p12 }
  0x1e   :  { %p7607_p1 = pnand %p7606_p0, %p7600_p11 }
  0x20   :  { %7610 = shalt.err (!%p7607_p1)
}
  0x21   :  { %s7641_s2 = smov 128   ;;  %s7642_s25 = smov 8  }
  0x22   :  { %27 = dma.hbm_to_vmem [thread:$0]  %s10711_s1, 512, %s22_s16, [#allocation3], %s7641_s2, %s7641_s2, %s7642_s25  }
  0x23   :  { %s7643_s28 = smov [#allocation6]   ;;  %s7611_s9 = scalar_lea.hbm %s10714_s4, 8192 }
  0x24   :  { %s47_s29 = sshll.u32 %s7643_s28, 4  ;;  %p7612_p2 = scmp.ne.s32.totalorder %s10714_s4, %s7611_s9  ;;  %s48_s29 = int_to_ptr.vmem [resolvable:$true] %s47_s29 }
  0x25   :  { %p7615_p3 = scmp.lt.u32.totalorder %s7611_s9, %s10714_s4 }
  0x27   :  { %p7617_p4 = pnand %p7615_p3, %p7612_p2 }
  0x29   :  { %7620 = shalt.err (!%p7617_p4)
}
  0x2a   :  { %s7621_s17 = scalar_lea.vmem %s48_s29, 8192  ;;  %p7626_p6 = scmp.lt.s32.totalorder %s48_s29, %s48_s29 }
  0x2b   :  { %p7622_p5 = scmp.ne.s32.totalorder %s48_s29, %s7621_s17  ;;  %p7627_p7 = scmp.lt.s32.totalorder %s7621_s17, %s7621_s17 }
  0x2d   :  { %p7628_p8 = por %p7627_p7, %p7626_p6 }
  0x2f   :  { %p7629_p9 = pnand %p7628_p8, %p7622_p5 }
  0x31   :  { %7632 = shalt.err (!%p7629_p9)
}
  0x32   :  { %53 = dma.hbm_to_vmem [thread:$0]  %s10714_s4, 8192, %s48_s29, [#allocation5], %s7638_s11, %s7638_s11, %s7639_s12  }
  0x33   :  { %7633 = dma.done.wait [#allocation3], 512  }
  0x34   :  { %7634 = vsyncadd [#allocation3], 4294966784 }
  0x35   :  { %7635 = dma.done.wait [#allocation5], 12288  }
  0x36   :  { %7636 = vsyncadd [#allocation5], 4294955008  ;;  %v7644_v0 = vmov 0.0|0.0   ;;  %vm7645_vm0 = vmmov 0   ;;  %v10721_v1 = vmov 0.0   ;;  %vm194_vm1 = vcmask 1043456  }
  0x37   :  { %6200 = vmatprep.subr.bf16.mxu0 %v7644_v0  ;;  %5722 = vmatprep.mubr.msk.f32.mxu0 %vm7645_vm0, %v10721_v1  ;;  %vm190_vm2 = vcmask 228352   ;;  %v67_v2 = vld [vmem:[#allocation2] sm:$0xff]  ;;  %v68_v3 = vld [vmem:[#allocation2 + $0x8] sm:$0xff]  ;;  %v69_v4 = vld [vmem:[#allocation2 + $0x10] sm:$0xff] }
  0x38   :  { %6236 = vmatprep.subr.bf16.mxu1 %v7644_v0  ;;  %5812 = vmatprep.mubr.msk.f32.mxu1 %vm7645_vm0, %v10721_v1  ;;  %v199_v5 = vand.u32 4294901760, %v67_v2  ;;  %v202_v6 = vand.u32 4294901760, %v68_v3  ;;  %v70_v7 = vld [vmem:[#allocation2 + $0x18] sm:$0xf]  ;;  %v205_v8 = vand.u32 4294901760, %v69_v4  ;;  %v185_v9 = vld [vmem:[%s10710_s0] sm:$0xff] }
  0x39   :  { %v196_v10 = vsel %vm194_vm1, %v70_v7, 0  ;;  %v192_v11 = vsel %vm190_vm2, %v185_v9, 0  ;;  %v7741_v12 = vld [vmem:[%s10713_s3] sm:$0xff]  ;;  %v7746_v13 = vld [vmem:[%s10713_s3 + $0x8] sm:$0xff]  ;;  %v7770_v26 = vld [vmem:[%s10713_s3 + $0x10] sm:$0xff] }
  0x3a   :  { %v7748_v14 = vpack.c.bf16 %v202_v6, %v199_v5  ;;  %v7750_v15 = vsub.f32 %v67_v2, %v199_v5  ;;  %v7752_v16 = vsub.f32 %v68_v3, %v202_v6  ;;  %v208_v17 = vand.u32 4294901760, %v196_v10  ;;  %v7793_v33 = vld [vmem:[%s10713_s3 + $0x18] sm:$0xff]  ;;  %v7798_v34 = vld [vmem:[%s10713_s3 + $0x20] sm:$0xff]  ;;  %v7809_v38 = vld [vmem:[%s10713_s3 + $0x28] sm:$0xff] }
  0x3b   :  { %v7754_v18 = vsub.f32 %v69_v4, %v205_v8  ;;  %v7756_v19 = vand.u32 4294901760, %v192_v11  ;;  %v684_v20 = vand.u32 4294901760, %v7741_v12  ;;  %v687_v21 = vand.u32 4294901760, %v7746_v13  ;;  %v7824_v49 = vld [vmem:[%s10713_s3 + $0x30] sm:$0xff]  ;;  %v7829_v50 = vld [vmem:[%s10713_s3 + $0x38] sm:$0xff]  ;;  %v7851_v57 = vld [vmem:[%s10713_s3 + $0x40] sm:$0xff] }
  0x3c   :  { %6202 = vmatpush3.bf16.msra.mxu0 %v7748_v14  ;;  %v7761_v22 = vpack.c.bf16 %v208_v17, %v205_v8  ;;  %v7763_v23 = vsub.f32 %v196_v10, %v208_v17  ;;  %v280_v24 = vand.u32 4294901760, %v7750_v15  ;;  %v287_v25 = vand.u32 4294901760, %v7752_v16  ;;  %v7856_v58 = vld [vmem:[%s10713_s3 + $0x48] sm:$0xff]  ;;  %v113_v5 = vld [vmem:[%s10713_s3 + $0x50] sm:$0xff]  ;;  %v114_v6 = vld [vmem:[%s10713_s3 + $0x58] sm:$0xff] }
  0x3d   :  { %6203 = vmatprep.subr.bf16.mxu0 %v7644_v0  ;;  %v7774_v27 = vsub.f32 %v192_v11, %v7756_v19  ;;  %v294_v28 = vand.u32 4294901760, %v7754_v18  ;;  %v7781_v29 = vpack.c.bf16 %v687_v21, %v684_v20  ;;  %v690_v37 = vand.u32 4294901760, %v7770_v26  ;;  %v115_v10 = vld [vmem:[%s10713_s3 + $0x60] sm:$0xff]  ;;  %v116_v11 = vld [vmem:[%s10713_s3 + $0x68] sm:$0xff]  ;;  %v117_v17 = vld [vmem:[%s10713_s3 + $0x70] sm:$0xff] }
  0x3e   :  { %v281_v30 = vsub.f32 %v7750_v15, %v280_v24  ;;  %v288_v31 = vsub.f32 %v7752_v16, %v287_v25  ;;  %v301_v32 = vand.u32 4294901760, %v7763_v23  ;;  %v693_v43 = vand.u32 4294901760, %v7793_v33 }
  0x3f   :  { %v269_v35 = vand.u32 4294901760, %v7774_v27  ;;  %v295_v36 = vsub.f32 %v7754_v18, %v294_v28  ;;  %6238 = vmatpush3.bf16.msra.mxu1 %v7781_v29  ;;  %v696_v44 = vand.u32 4294901760, %v7798_v34  ;;  %v699_v48 = vand.u32 4294901760, %v7809_v38 }
  0x40   :  { %6205 = vmatpush3.bf16.msra.mxu0 %v7761_v22  ;;  %v282_v39 = vand.u32 4294901760, %v281_v30  ;;  %v289_v40 = vand.u32 4294901760, %v288_v31  ;;  %v302_v41 = vsub.f32 %v7763_v23, %v301_v32  ;;  %6239 = vmatprep.subr.bf16.mxu1 %v7644_v0  ;;  %v7835_v52 = vpack.c.bf16 %v693_v43, %v690_v37 }
  0x41   :  { %v270_v42 = vsub.f32 %v7774_v27, %v269_v35  ;;  %6206 = vmatprep.subr.bf16.mxu0 %v7644_v0  ;;  %v296_v46 = vand.u32 4294901760, %v295_v36  ;;  %v7842_v53 = vpack.c.bf16 %v699_v48, %v696_v44  ;;  %v702_v54 = vand.u32 4294901760, %v7824_v49 }
  0x42   :  { %v6207_v45 = vpack.c.bf16 %v289_v40, %v282_v39  ;;  %v303_v47 = vand.u32 4294901760, %v302_v41  ;;  %v705_v55 = vand.u32 4294901760, %v7829_v50  ;;  %v708_v60 = vand.u32 4294901760, %v7851_v57 }
  0x43   :  { %v271_v51 = vand.u32 4294901760, %v270_v42  ;;  %6241 = vmatpush3.bf16.msra.mxu1 %v7835_v52  ;;  %v711_v61 = vand.u32 4294901760, %v7856_v58  ;;  %v6213_v62 = vpack.c.bf16 %v7752_v16, %v7750_v15  ;;  %v6216_v2 = vpack.c.bf16 %v7763_v23, %v7754_v18  ;;  %v118_v18 = vld [vmem:[%s10713_s3 + $0x78] sm:$0xff] }
  0x44   :  { %v6210_v56 = vpack.c.bf16 %v303_v47, %v296_v46  ;;  %6242 = vmatprep.subr.bf16.mxu1 %v7644_v0  ;;  %v7865_v59 = vpack.c.bf16 %v705_v55, %v702_v54  ;;  %v6225_v3 = vpack.c.bf16 %v287_v25, %v280_v24  ;;  %v6228_v4 = vpack.c.bf16 %v301_v32, %v294_v28 }
  0x45   :  { %5723 = vmatmul.mubr.f32.vlgmr.msra.gmra.mrb[0].mxu0 %v271_v51  ;;  %v7879_v63 = vpack.c.bf16 %v711_v61, %v708_v60  ;;  %v714_v7 = vand.u32 4294901760, %v113_v5  ;;  %v717_v8 = vand.u32 4294901760, %v114_v6  ;;  %v723_v15 = vand.u32 4294901760, %v116_v11 }
  0x46   :  { %6208 = vmatpush3.bf16.msra.mxu0 %v6207_v45  ;;  %5733 = vmatprep.mubr.msk.f32.mxu0 %vm7645_vm0, %v10721_v1 }
  0x47   :  { %6209 = vmatprep.subr.bf16.mxu0 %v7644_v0  ;;  %6244 = vmatpush3.bf16.msra.mxu1 %v7842_v53  ;;  %v7935_v9 = vpack.c.bf16 %v717_v8, %v714_v7  ;;  %v7965_v24 = vsub.f32 %v113_v5, %v714_v7  ;;  %v7967_v25 = vsub.f32 %v114_v6, %v717_v8 }
  0x48   :  { %6245 = vmatprep.subr.bf16.mxu1 %v7644_v0  ;;  %v7976_v32 = vsub.f32 %v116_v11, %v723_v15 }
  0x49   :  { %v854_v28 = vand.u32 4294901760, %v7967_v25  ;;  %v8009_v11 = vpack.c.bf16 %v7967_v25, %v7965_v24 }
  0x4a   :  { %6211 = vmatpush3.bf16.msra.mxu0 %v6210_v56  ;;  %v10720_v40 = vand.u32 4294901760, %v7976_v32 }
  0x4b   :  { %6212 = vmatprep.subr.bf16.mxu0 %v7644_v0  ;;  %6247 = vmatpush3.bf16.msra.mxu1 %v7865_v59 }
  0x4c   :  { %6248 = vmatprep.subr.bf16.mxu1 %v7644_v0  ;;  %v869_v45 = vsub.f32 %v7976_v32, %v10720_v40 }
  0x4d   :  { %5734 = vmatmul.mubr.f32.vlgmr.msra.gmra.mrb[0].mxu0 %v7756_v19 }
  0x4e   :  { %6214 = vmatpush3.bf16.msra.mxu0 %v6213_v62  ;;  %5744 = vmatprep.mubr.msk.f32.mxu0 %vm7645_vm0, %v10721_v1  ;;  %v870_v62 = vand.u32 4294901760, %v869_v45 }
  0x4f   :  { %6215 = vmatprep.subr.bf16.mxu0 %v7644_v0  ;;  %6250 = vmatpush3.bf16.msra.mxu1 %v7879_v63 }
  0x50   :  { %6251 = vmatprep.subr.bf16.mxu1 %v7644_v0 }
  0x52   :  { %6217 = vmatpush3.bf16.msra.mxu0 %v6216_v2 }
  0x53   :  { %6218 = vmatprep.subr.bf16.mxu0 %v7644_v0  ;;  %6253 = vmatpush3.bf16.msra.mxu1 %v7935_v9 }
  0x54   :  { %6254 = vmatprep.subr.bf16.mxu1 %v7644_v0 }
  0x55   :  { %5745 = vmatmul.mubr.f32.vlgmr.msra.gmra.mrb[0].mxu0 %v7774_v27  ;;  %v847_v27 = vand.u32 4294901760, %v7965_v24 }
  0x56   :  { %6220 = vmatpush3.bf16.msra.mxu0 %v7748_v14  ;;  %5755 = vmatprep.mubr.msk.f32.mxu0 %vm7645_vm0, %v10721_v1 }
  0x57   :  { %6221 = vmatprep.subr.bf16.mxu0 %v7644_v0  ;;  %v848_v30 = vsub.f32 %v7965_v24, %v847_v27 }
  0x59   :  { %v849_v36 = vand.u32 4294901760, %v848_v30 }
  0x5a   :  { %6223 = vmatpush3.bf16.msra.mxu0 %v7761_v22 }
  0x5b   :  { %6224 = vmatprep.subr.bf16.mxu0 %v7644_v0 }
  0x5d   :  { %5756 = vmatmul.mubr.f32.vlgmr.msra.gmra.mrb[0].mxu0 %v269_v35  ;;  %v855_v35 = vsub.f32 %v7967_v25, %v854_v28 }
  0x5e   :  { %6226 = vmatpush3.bf16.msra.mxu0 %v6225_v3  ;;  %5766 = vmatprep.mubr.msk.f32.mxu0 %vm7645_vm0, %v10721_v1 }
  0x5f   :  { %6227 = vmatprep.subr.bf16.mxu0 %v7644_v0  ;;  %v856_v41 = vand.u32 4294901760, %v855_v35  ;;  %v183_v35 = vld [vmem:[%s10715_s5] sm:$0x7] }
  0x61   :  { %v7993_v51 = vpack.c.bf16 %v856_v41, %v849_v36 }
  0x62   :  { %6229 = vmatpush3.bf16.msra.mxu0 %v6228_v4 }
  0x63   :  { %6230 = vmatprep.subr.bf16.mxu0 %v7644_v0 }
  0x65   :  { %5767 = vmatmul.mubr.f32.vlgmr.msra.gmra.mrb[0].mxu0 %v7756_v19 }
  0x66   :  { %6232 = vmatpush3.bf16.msra.mxu0 %v7748_v14  ;;  %5777 = vmatprep.mubr.msk.f32.mxu0 %vm7645_vm0, %v10721_v1  ;;  %v720_v14 = vand.u32 4294901760, %v115_v10 }
  0x67   :  { %6233 = vmatprep.subr.bf16.mxu0 %v7644_v0 }
  0x68   :  { %v7947_v16 = vpack.c.bf16 %v723_v15, %v720_v14  ;;  %v7974_v31 = vsub.f32 %v115_v10, %v720_v14 }
  0x6a   :  { %6235 = vmatpush3.bf16.msra.mxu0 %v7761_v22  ;;  %6256 = vmatpush3.bf16.msra.mxu1 %v7947_v16  ;;  %v729_v22 = vand.u32 4294901760, %v118_v18  ;;  %v861_v39 = vand.u32 4294901760, %v7974_v31  ;;  %v8013_v14 = vpack.c.bf16 %v7976_v32, %v7974_v31 }
  0x6b   :  { %6380 = vmatprep.subr.bf16.mxu0 %v7644_v0  ;;  %6257 = vmatprep.subr.bf16.mxu1 %v7644_v0 }
  0x6c   :  { %v862_v42 = vsub.f32 %v7974_v31, %v861_v39  ;;  %v7991_v47 = vsub.f32 %v118_v18, %v729_v22 }
  0x6d   :  { %5778 = vmatmul.mubr.f32.vlgmr.msra.gmra.mrb[0].mxu0 %v7756_v19  ;;  %v726_v19 = vand.u32 4294901760, %v117_v17 }
  0x6e   :  { %6382 = vmatpush3.bf16.msra.mxu0 %v7781_v29  ;;  %6022 = vmatprep.mubr.msk.f32.mxu0 %vm7645_vm0, %v10721_v1  ;;  %v863_v56 = vand.u32 4294901760, %v862_v42  ;;  %v10718_v3 = vand.u32 4294901760, %v7991_v47  ;;  %v11210_v25 = vand.u32 4294901760, %v7991_v47 }
  0x6f   :  { %6383 = vmatprep.subr.bf16.mxu0 %v7644_v0  ;;  %v7959_v23 = vpack.c.bf16 %v729_v22, %v726_v19  ;;  %v7989_v46 = vsub.f32 %v117_v17, %v726_v19  ;;  %v186_v17 = vlaneseq  ;;  %v8024_v19 = vsub.f32 %v7741_v12, %v684_v20 }
  0x70   :  { %v7997_v4 = vpack.c.bf16 %v870_v62, %v863_v56  ;;  %v883_v6 = vsub.f32 %v7991_v47, %v10718_v3  ;;  %v8029_v22 = vsub.f32 %v7746_v13, %v687_v21  ;;  %v8042_v12 = vsub.f32 %v7770_v26, %v690_v37 }
  0x71   :  { %6259 = vmatpush3.bf16.msra.mxu1 %v7959_v23  ;;  %v10719_v2 = vand.u32 4294901760, %v7989_v46  ;;  %v8017_v15 = vpack.c.bf16 %v7991_v47, %v7989_v46  ;;  %v8019_v18 = vshrl.u32 %v186_v17, 7  ;;  %v777_v36 = vand.u32 4294901760, %v8024_v19 }
  0x72   :  { %6385 = vmatpush3.bf16.msra.mxu0 %v7835_v52  ;;  %6260 = vmatprep.subr.bf16.mxu1 %v7644_v0  ;;  %v884_v8 = vand.u32 4294901760, %v883_v6  ;;  %v784_v41 = vand.u32 4294901760, %v8029_v22  ;;  %v8048_v13 = vsub.f32 %v7793_v33, %v693_v43  ;;  %v791_v56 = vand.u32 4294901760, %v8042_v12 }
  0x73   :  { %6386 = vmatprep.subr.bf16.mxu0 %v7644_v0  ;;  %v876_v5 = vsub.f32 %v7989_v46, %v10719_v2  ;;  %11206 = vst [vmem:[#allocation9_spill] sm:$0xff] %v8019_v18  ;;  %v8032_v30 = vsub.s32 0, %v8019_v18  ;;  %v778_v42 = vsub.f32 %v8024_v19, %v777_v36  ;;  %v8063_v33 = vsub.f32 %v7798_v34, %v696_v44 }
  0x74   :  { %v785_v45 = vsub.f32 %v8029_v22, %v784_v41  ;;  %v798_v62 = vand.u32 4294901760, %v8048_v13  ;;  %v8068_v43 = vsub.f32 %v7809_v38, %v699_v48  ;;  %v8088_v48 = vsub.f32 %v7824_v49, %v702_v54 }
  0x75   :  { %v877_v7 = vand.u32 4294901760, %v876_v5  ;;  %11207 = vst [vmem:[#allocation10_spill] sm:$0xff] %v8032_v30  ;;  %v189_v20 = vrot.slane %v183_v35, %v8032_v30  ;;  %v779_v6 = vand.u32 4294901760, %v778_v42  ;;  %v805_v38 = vand.u32 4294901760, %v8063_v33 }
  0x76   :  { %6388 = vmatpush3.bf16.msra.mxu0 %v7842_v53  ;;  %v799_v34 = vsub.f32 %v8048_v13, %v798_v62  ;;  %v812_v44 = vand.u32 4294901760, %v8068_v43  ;;  %v8093_v35 = vsub.f32 %v7829_v50, %v705_v55  ;;  %v819_v50 = vand.u32 4294901760, %v8088_v48 }
  0x77   :  { %6389 = vmatprep.subr.bf16.mxu0 %v7644_v0  ;;  %v8005_v10 = vpack.c.bf16 %v884_v8, %v877_v7  ;;  %v786_v7 = vand.u32 4294901760, %v785_v45  ;;  %v792_v8 = vsub.f32 %v8042_v12, %v791_v56  ;;  %v806_v49 = vsub.f32 %v8063_v33, %v805_v38 }
  0x78   :  { %v813_v54 = vsub.f32 %v8068_v43, %v812_v44  ;;  %v826_v55 = vand.u32 4294901760, %v8093_v35  ;;  %v820_v40 = vsub.f32 %v8088_v48, %v819_v50  ;;  %v11209_v24 = vand.u32 4294901760, %v7989_v46 }
  0x79   :  { %v793_v42 = vand.u32 4294901760, %v792_v8  ;;  %v807_v3 = vand.u32 4294901760, %v806_v49 }
  0x7a   :  { %6391 = vmatpush3.bf16.msra.mxu0 %v7865_v59  ;;  %v814_v2 = vand.u32 4294901760, %v813_v54 }
  0x7b   :  { %6392 = vmatprep.subr.bf16.mxu0 %v7644_v0 }
  0x7e   :  { %6394 = vmatpush3.bf16.msra.mxu0 %v7879_v63 }
  0x7f   :  { %6395 = vmatprep.subr.bf16.mxu0 %v7644_v0 }
  0x82   :  { %6397 = vmatpush3.bf16.msra.mxu0 %v7935_v9 }
  0x83   :  { %6398 = vmatprep.subr.bf16.mxu0 %v7644_v0 }
  0x86   :  { %6400 = vmatpush3.bf16.msra.mxu0 %v7947_v16 }
  0x87   :  { %6401 = vmatprep.subr.bf16.mxu0 %v7644_v0 }
  0x8a   :  { %6403 = vmatpush3.bf16.msra.mxu0 %v7959_v23 }
  0x8b   :  { %6404 = vmatprep.subr.bf16.mxu0 %v7644_v0 }
 0x140   :  { %v679_v21 = vpop.f32.mrb[0].mxu0 }
 0x141   :  { %v8057_v26 = vadd.f32 %v679_v21, %v189_v20  ;;  %v5779_v37 = vpop.f32.mrb[1].mxu0  ;;  %v8096_v21 = vpack.c.bf16 %v786_v7, %v779_v6  ;;  %v8112_v6 = vsub.f32 %v7851_v57, %v708_v60  ;;  %v8117_v7 = vsub.f32 %v7856_v58, %v711_v61 }
 0x142   :  { %v800_v37 = vand.u32 4294901760, %v799_v34  ;;  %v827_v57 = vsub.f32 %v8093_v35, %v826_v55  ;;  %v8133_v61 = vpack.c.bf16 %v814_v2, %v807_v3 }
 0x143   :  { %v8071_v5 = vand.u32 4294901760, %v8057_v26  ;;  %v833_v60 = vand.u32 4294901760, %v8112_v6  ;;  %v840_v58 = vand.u32 4294901760, %v8117_v7 }
 0x144   :  { %v8119_v34 = vpack.c.bf16 %v800_v37, %v793_v42  ;;  %v821_v42 = vand.u32 4294901760, %v820_v40 }
 0x145   :  { %v8078_v17 = vsub.f32 %v8057_v26, %v8071_v5  ;;  %v834_v37 = vsub.f32 %v8112_v6, %v833_v60  ;;  %v841_v49 = vsub.f32 %v8117_v7, %v840_v58 }
 0x147   :  { %v766_v20 = vand.u32 4294901760, %v8078_v17  ;;  %v835_v2 = vand.u32 4294901760, %v834_v37  ;;  %v842_v3 = vand.u32 4294901760, %v841_v49  ;;  %v8187_v37 = vpack.c.bf16 %v8117_v7, %v8112_v6  ;;  %v81_v6 = vld [vmem:[#allocation4 + $0x50] sm:$0xff] }
 0x148   :  { %v8220_v49 = vpack.c.bf16 %v784_v41, %v777_v36  ;;  %v8256_v36 = vpack.c.bf16 %v840_v58, %v833_v60  ;;  %v8264_v41 = vpack.c.bf16 %v854_v28, %v847_v27  ;;  %v8280_v27 = vpack.c.bf16 %v11210_v25, %v11209_v24 }
 0x149   :  { %v767_v45 = vsub.f32 %v8078_v17, %v766_v20  ;;  %v8148_v40 = vpack.c.bf16 %v842_v3, %v835_v2  ;;  %v8230_v2 = vpack.c.bf16 %v798_v62, %v791_v56 }
 0x14b   :  { %v768_v8 = vand.u32 4294901760, %v767_v45  ;;  %v828_v45 = vand.u32 4294901760, %v827_v57  ;;  %v8167_v57 = vpack.c.bf16 %v8048_v13, %v8042_v12  ;;  %v11208_v12 = vand.u32 4294901760, %v7976_v32 }
 0x14d   :  { %5813 = vmatmul.mubr.f32.vlgmr.msra.gmra.mrb[0].mxu1 %v768_v8  ;;  %v8144_v54 = vpack.c.bf16 %v828_v45, %v821_v42  ;;  %v8160_v8 = vpack.c.bf16 %v8029_v22, %v8024_v19  ;;  %v8175_v42 = vpack.c.bf16 %v8068_v43, %v8063_v33  ;;  %v8181_v45 = vpack.c.bf16 %v8093_v35, %v8088_v48  ;;  %v74_v43 = vld [vmem:[#allocation4 + $0x18] sm:$0xff]  ;;  %v80_v35 = vld [vmem:[#allocation4 + $0x48] sm:$0xff] }
 0x14e   :  { %6262 = vmatpush3.bf16.msra.mxu1 %v8096_v21  ;;  %5847 = vmatprep.mubr.msk.f32.mxu1 %vm7645_vm0, %v10721_v1  ;;  %v8240_v19 = vpack.c.bf16 %v812_v44, %v805_v38  ;;  %v8248_v22 = vpack.c.bf16 %v826_v55, %v819_v50  ;;  %v8272_v13 = vpack.c.bf16 %v11208_v12, %v861_v39  ;;  %v75_v38 = vld [vmem:[#allocation4 + $0x20] sm:$0xff]  ;;  %v77_v44 = vld [vmem:[#allocation4 + $0x30] sm:$0xff] }
 0x14f   :  { %6263 = vmatprep.subr.bf16.mxu1 %v7644_v0  ;;  %v79_v55 = vld [vmem:[#allocation4 + $0x40] sm:$0xff]  ;;  %v89_v12 = vld [vmem:[#allocation4 + $0x90] sm:$0xff] }
 0x150   :  { %v2017_v7 = vand.u32 4294901760, %v79_v55  ;;  %v2037_v24 = vand.u32 4294901760, %v89_v12 }
 0x152   :  { %6265 = vmatpush3.bf16.msra.mxu1 %v8119_v34  ;;  %v8464_v30 = vsub.f32 %v79_v55, %v2017_v7 }
 0x153   :  { %6266 = vmatprep.subr.bf16.mxu1 %v7644_v0 }
 0x156   :  { %6268 = vmatpush3.bf16.msra.mxu1 %v8133_v61 }
 0x157   :  { %6269 = vmatprep.subr.bf16.mxu1 %v7644_v0 }
 0x15a   :  { %6271 = vmatpush3.bf16.msra.mxu1 %v8144_v54 }
 0x15b   :  { %6272 = vmatprep.subr.bf16.mxu1 %v7644_v0 }
 0x15e   :  { %6274 = vmatpush3.bf16.msra.mxu1 %v8148_v40 }
 0x15f   :  { %6275 = vmatprep.subr.bf16.mxu1 %v7644_v0 }
 0x162   :  { %6277 = vmatpush3.bf16.msra.mxu1 %v7993_v51 }
 0x163   :  { %6278 = vmatprep.subr.bf16.mxu1 %v7644_v0 }
 0x166   :  { %6280 = vmatpush3.bf16.msra.mxu1 %v7997_v4 }
 0x167   :  { %6281 = vmatprep.subr.bf16.mxu1 %v7644_v0 }
 0x16a   :  { %6283 = vmatpush3.bf16.msra.mxu1 %v8005_v10 }
 0x16b   :  { %6284 = vmatprep.subr.bf16.mxu1 %v7644_v0 }
 0x16d   :  { %5848 = vmatmul.mubr.f32.vlgmr.msra.gmra.mrb[0].mxu1 %v8071_v5 }
 0x16e   :  { %6286 = vmatpush3.bf16.msra.mxu1 %v8160_v8  ;;  %5882 = vmatprep.mubr.msk.f32.mxu1 %vm7645_vm0, %v10721_v1 }
 0x16f   :  { %6287 = vmatprep.subr.bf16.mxu1 %v7644_v0 }
 0x172   :  { %6289 = vmatpush3.bf16.msra.mxu1 %v8167_v57 }
 0x173   :  { %6290 = vmatprep.subr.bf16.mxu1 %v7644_v0 }
 0x176   :  { %6292 = vmatpush3.bf16.msra.mxu1 %v8175_v42 }
 0x177   :  { %6293 = vmatprep.subr.bf16.mxu1 %v7644_v0 }
 0x17a   :  { %6295 = vmatpush3.bf16.msra.mxu1 %v8181_v45 }
 0x17b   :  { %6296 = vmatprep.subr.bf16.mxu1 %v7644_v0 }
 0x17e   :  { %6298 = vmatpush3.bf16.msra.mxu1 %v8187_v37 }
 0x17f   :  { %6299 = vmatprep.subr.bf16.mxu1 %v7644_v0 }
 0x182   :  { %6301 = vmatpush3.bf16.msra.mxu1 %v8009_v11 }
 0x183   :  { %6302 = vmatprep.subr.bf16.mxu1 %v7644_v0 }
 0x186   :  { %6304 = vmatpush3.bf16.msra.mxu1 %v8013_v14 }
 0x187   :  { %6305 = vmatprep.subr.bf16.mxu1 %v7644_v0 }
 0x18a   :  { %6307 = vmatpush3.bf16.msra.mxu1 %v8017_v15 }
 0x18b   :  { %6308 = vmatprep.subr.bf16.mxu1 %v7644_v0 }
 0x18d   :  { %5883 = vmatmul.mubr.f32.vlgmr.msra.gmra.mrb[0].mxu1 %v8078_v17 }
 0x18e   :  { %6310 = vmatpush3.bf16.msra.mxu1 %v7781_v29  ;;  %5917 = vmatprep.mubr.msk.f32.mxu1 %vm7645_vm0, %v10721_v1 }
 0x18f   :  { %6311 = vmatprep.subr.bf16.mxu1 %v7644_v0 }
 0x192   :  { %6313 = vmatpush3.bf16.msra.mxu1 %v7835_v52 }
 0x193   :  { %6314 = vmatprep.subr.bf16.mxu1 %v7644_v0 }
 0x196   :  { %6316 = vmatpush3.bf16.msra.mxu1 %v7842_v53 }
 0x197   :  { %6317 = vmatprep.subr.bf16.mxu1 %v7644_v0 }
 0x19a   :  { %6319 = vmatpush3.bf16.msra.mxu1 %v7865_v59 }
 0x19b   :  { %6320 = vmatprep.subr.bf16.mxu1 %v7644_v0 }
 0x19e   :  { %6322 = vmatpush3.bf16.msra.mxu1 %v7879_v63 }
 0x19f   :  { %6323 = vmatprep.subr.bf16.mxu1 %v7644_v0 }
 0x1a2   :  { %6325 = vmatpush3.bf16.msra.mxu1 %v7935_v9 }
 0x1a3   :  { %6326 = vmatprep.subr.bf16.mxu1 %v7644_v0 }
 0x1a6   :  { %6328 = vmatpush3.bf16.msra.mxu1 %v7947_v16 }
 0x1a7   :  { %6329 = vmatprep.subr.bf16.mxu1 %v7644_v0 }
 0x1aa   :  { %6331 = vmatpush3.bf16.msra.mxu1 %v7959_v23 }
 0x1ab   :  { %6332 = vmatprep.subr.bf16.mxu1 %v7644_v0 }
 0x1ad   :  { %5918 = vmatmul.mubr.f32.vlgmr.msra.gmra.mrb[0].mxu1 %v766_v20  ;;  %v82_v20 = vld [vmem:[#allocation4 + $0x58] sm:$0xff] }
 0x1ae   :  { %6334 = vmatpush3.bf16.msra.mxu1 %v8220_v49  ;;  %5952 = vmatprep.mubr.msk.f32.mxu1 %vm7645_vm0, %v10721_v1  ;;  %v2019_v50 = vand.u32 4294901760, %v82_v20 }
 0x1af   :  { %6335 = vmatprep.subr.bf16.mxu1 %v7644_v0 }
 0x1b2   :  { %6337 = vmatpush3.bf16.msra.mxu1 %v8230_v2 }
 0x1b3   :  { %6338 = vmatprep.subr.bf16.mxu1 %v7644_v0 }
 0x1b6   :  { %6340 = vmatpush3.bf16.msra.mxu1 %v8240_v19 }
 0x1b7   :  { %6341 = vmatprep.subr.bf16.mxu1 %v7644_v0 }
 0x1ba   :  { %6343 = vmatpush3.bf16.msra.mxu1 %v8248_v22 }
 0x1bb   :  { %6344 = vmatprep.subr.bf16.mxu1 %v7644_v0 }
 0x1be   :  { %6346 = vmatpush3.bf16.msra.mxu1 %v8256_v36 }
 0x1bf   :  { %6347 = vmatprep.subr.bf16.mxu1 %v7644_v0 }
 0x1c2   :  { %6349 = vmatpush3.bf16.msra.mxu1 %v8264_v41 }
 0x1c3   :  { %6350 = vmatprep.subr.bf16.mxu1 %v7644_v0 }
 0x1c6   :  { %6352 = vmatpush3.bf16.msra.mxu1 %v8272_v13 }
 0x1c7   :  { %6353 = vmatprep.subr.bf16.mxu1 %v7644_v0 }
 0x1ca   :  { %6355 = vmatpush3.bf16.msra.mxu1 %v8280_v27 }
 0x1cb   :  { %6356 = vmatprep.subr.bf16.mxu1 %v7644_v0 }
 0x1cd   :  { %5953 = vmatmul.mubr.f32.vlgmr.msra.gmra.mrb[0].mxu1 %v8071_v5 }
 0x1ce   :  { %6358 = vmatpush3.bf16.msra.mxu1 %v7781_v29  ;;  %5987 = vmatprep.mubr.msk.f32.mxu1 %vm7645_vm0, %v10721_v1 }
 0x1cf   :  { %6359 = vmatprep.subr.bf16.mxu1 %v7644_v0 }
 0x1d2   :  { %6361 = vmatpush3.bf16.msra.mxu1 %v7835_v52 }
 0x1d3   :  { %6362 = vmatprep.subr.bf16.mxu1 %v7644_v0 }
 0x1d6   :  { %6364 = vmatpush3.bf16.msra.mxu1 %v7842_v53 }
 0x1d7   :  { %6365 = vmatprep.subr.bf16.mxu1 %v7644_v0 }
 0x1da   :  { %6367 = vmatpush3.bf16.msra.mxu1 %v7865_v59 }
 0x1db   :  { %6368 = vmatprep.subr.bf16.mxu1 %v7644_v0 }
 0x1de   :  { %6370 = vmatpush3.bf16.msra.mxu1 %v7879_v63 }
 0x1df   :  { %6371 = vmatprep.subr.bf16.mxu1 %v7644_v0 }
 0x1e2   :  { %6373 = vmatpush3.bf16.msra.mxu1 %v7935_v9 }
 0x1e3   :  { %6374 = vmatprep.subr.bf16.mxu1 %v7644_v0 }
 0x1e6   :  { %6376 = vmatpush3.bf16.msra.mxu1 %v7947_v16 }
 0x1e7   :  { %6377 = vmatprep.subr.bf16.mxu1 %v7644_v0 }
 0x1ea   :  { %6379 = vmatpush3.bf16.msra.mxu1 %v7959_v23 }
 0x1ed   :  { %5988 = vmatmul.mubr.f32.vlgmr.msra.gmra.mrb[0].mxu1 %v8071_v5  ;;  %v2003_v5 = vand.u32 4294901760, %v74_v43 }
 0x1ee   :  { %2095 = vmatprep.mubr.f32.mxu1 %v10721_v1 }
 0x2c0   :  { %v1320_v28 = vpop.f32.mrb[0].mxu1 }
 0x2c1   :  { %v8306_v31 = vsub.f32 %v8057_v26, %v1320_v28  ;;  %v5989_v32 = vpop.f32.mrb[1].mxu1  ;;  %v72_v26 = vld [vmem:[#allocation4 + $0x8] sm:$0xff] }
 0x2c2   :  { %v92_v28 = vld [vmem:[#allocation4 + $0xa8] sm:$0xff]  ;;  %v94_v32 = vld [vmem:[#allocation4 + $0xb8] sm:$0xff] }
 0x2c3   :  { %v1325_v39 = vmul.f32 %v8306_v31, %v8306_v31 }
 0x2c5   :  { %v8310_v46 = vand.u32 4294901760, %v1325_v39 }
 0x2c7   :  { %v8313_v47 = vsub.f32 %v1325_v39, %v8310_v46  ;;  %v2039_v39 = vand.u32 4294901760, %v92_v28 }
 0x2c9   :  { %v1409_v56 = vand.u32 4294901760, %v8313_v47  ;;  %v8486_v55 = vsub.f32 %v92_v28, %v2039_v39 }
 0x2cb   :  { %v1410_v62 = vsub.f32 %v8313_v47, %v1409_v56 }
 0x2cd   :  { %v1411_v33 = vand.u32 4294901760, %v1410_v62 }
 0x2cf   :  { %6023 = vmatmul.mubr.f32.vlgmr.msra.gmra.mrb[2].mxu0 %v1411_v33 }
 0x2d0   :  { %6406 = vmatpush3.bf16.msra.mxu0 %v8096_v21  ;;  %6057 = vmatprep.mubr.msk.f32.mxu0 %vm7645_vm0, %v10721_v1  ;;  %v2015_v21 = vand.u32 4294901760, %v80_v35 }
 0x2d1   :  { %6407 = vmatprep.subr.bf16.mxu0 %v7644_v0 }
 0x2d2   :  { %v8430_v60 = vpack.c.bf16 %v2019_v50, %v2015_v21 }
 0x2d4   :  { %6409 = vmatpush3.bf16.msra.mxu0 %v8119_v34  ;;  %v2021_v34 = vand.u32 4294901760, %v81_v6  ;;  %11214 = vst [vmem:[#allocation14_spill] sm:$0xff] %v8430_v60 }
 0x2d5   :  { %6410 = vmatprep.subr.bf16.mxu0 %v7644_v0 }
 0x2d6   :  { %v8432_v58 = vpack.c.bf16 %v2021_v34, %v2017_v7 }
 0x2d8   :  { %6412 = vmatpush3.bf16.msra.mxu0 %v8133_v61  ;;  %11215 = vst [vmem:[#allocation15_spill] sm:$0xff] %v8432_v58  ;;  %v84_v61 = vld [vmem:[#allocation4 + $0x68] sm:$0xff] }
 0x2d9   :  { %6413 = vmatprep.subr.bf16.mxu0 %v7644_v0  ;;  %v2023_v3 = vand.u32 4294901760, %v84_v61 }
 0x2dc   :  { %6415 = vmatpush3.bf16.msra.mxu0 %v8144_v54  ;;  %v86_v54 = vld [vmem:[#allocation4 + $0x78] sm:$0xff] }
 0x2dd   :  { %6416 = vmatprep.subr.bf16.mxu0 %v7644_v0 }
 0x2e0   :  { %6418 = vmatpush3.bf16.msra.mxu0 %v8148_v40  ;;  %v2027_v40 = vand.u32 4294901760, %v86_v54 }
 0x2e1   :  { %6419 = vmatprep.subr.bf16.mxu0 %v7644_v0 }
 0x2e4   :  { %6421 = vmatpush3.bf16.msra.mxu0 %v7993_v51  ;;  %v1999_v51 = vand.u32 4294901760, %v72_v26 }
 0x2e5   :  { %6422 = vmatprep.subr.bf16.mxu0 %v7644_v0 }
 0x2e6   :  { %v8344_v17 = vsub.f32 %v72_v26, %v1999_v51 }
 0x2e8   :  { %6424 = vmatpush3.bf16.msra.mxu0 %v7997_v4  ;;  %v8342_v4 = vpack.c.bf16 %v2003_v5, %v1999_v51  ;;  %v8460_v51 = vsub.f32 %v80_v35, %v2015_v21  ;;  %v100_v35 = vld [vmem:[#allocation4 + $0xe8] sm:$0xff]  ;;  %v8482_v21 = vsub.f32 %v89_v12, %v2037_v24 }
 0x2e9   :  { %6425 = vmatprep.subr.bf16.mxu0 %v7644_v0 }
 0x2ea   :  { %6525 = vmatprep.subr.bf16.mxu1 %v8342_v4 }
 0x2ec   :  { %6427 = vmatpush3.bf16.msra.mxu0 %v8005_v10  ;;  %v8346_v10 = vsub.f32 %v74_v43, %v2003_v5  ;;  %v8462_v5 = vsub.f32 %v82_v20, %v2019_v50 }
 0x2ed   :  { %6428 = vmatprep.subr.bf16.mxu0 %v7644_v0 }
 0x2ef   :  { %6058 = vmatmul.mubr.f32.vlgmr.msra.gmra.mrb[2].mxu0 %v8310_v46 }
 0x2f0   :  { %6430 = vmatpush3.bf16.msra.mxu0 %v8160_v8  ;;  %6092 = vmatprep.mubr.msk.f32.mxu0 %vm7645_vm0, %v10721_v1  ;;  %v83_v8 = vld [vmem:[#allocation4 + $0x60] sm:$0xff] }
 0x2f1   :  { %6431 = vmatprep.subr.bf16.mxu0 %v7644_v0 }
 0x2f4   :  { %6433 = vmatpush3.bf16.msra.mxu0 %v8167_v57  ;;  %v85_v57 = vld [vmem:[#allocation4 + $0x70] sm:$0xff] }
 0x2f5   :  { %6434 = vmatprep.subr.bf16.mxu0 %v7644_v0 }
 0x2f8   :  { %6436 = vmatpush3.bf16.msra.mxu0 %v8175_v42  ;;  %v2025_v42 = vand.u32 4294901760, %v83_v8 }
 0x2f9   :  { %6437 = vmatprep.subr.bf16.mxu0 %v7644_v0 }
 0x2fc   :  { %6439 = vmatpush3.bf16.msra.mxu0 %v8181_v45  ;;  %v2029_v45 = vand.u32 4294901760, %v85_v57 }
 0x2fd   :  { %6440 = vmatprep.subr.bf16.mxu0 %v7644_v0 }
 0x300   :  { %6442 = vmatpush3.bf16.msra.mxu0 %v8187_v37  ;;  %v8436_v37 = vpack.c.bf16 %v2027_v40, %v2023_v3 }
 0x301   :  { %6443 = vmatprep.subr.bf16.mxu0 %v7644_v0 }
 0x302   :  { %11216 = vst [vmem:[#allocation16_spill] sm:$0xff] %v8436_v37 }
 0x304   :  { %6445 = vmatpush3.bf16.msra.mxu0 %v8009_v11 }
 0x305   :  { %6446 = vmatprep.subr.bf16.mxu0 %v7644_v0 }
 0x308   :  { %6448 = vmatpush3.bf16.msra.mxu0 %v8013_v14  ;;  %v78_v14 = vld [vmem:[#allocation4 + $0x38] sm:$0xff] }
 0x309   :  { %6449 = vmatprep.subr.bf16.mxu0 %v7644_v0 }
 0x30c   :  { %6451 = vmatpush3.bf16.msra.mxu0 %v8017_v15 }
 0x30d   :  { %6452 = vmatprep.subr.bf16.mxu0 %v7644_v0 }
 0x30f   :  { %6093 = vmatmul.mubr.f32.vlgmr.msra.gmra.mrb[2].mxu0 %v8313_v47 }
 0x310   :  { %6454 = vmatpush3.bf16.msra.mxu0 %v7781_v29  ;;  %6127 = vmatprep.mubr.msk.f32.mxu0 %vm7645_vm0, %v10721_v1 }
 0x311   :  { %6455 = vmatprep.subr.bf16.mxu0 %v7644_v0 }
 0x314   :  { %6457 = vmatpush3.bf16.msra.mxu0 %v7835_v52 }
 0x315   :  { %6458 = vmatprep.subr.bf16.mxu0 %v7644_v0 }
 0x318   :  { %6460 = vmatpush3.bf16.msra.mxu0 %v7842_v53 }
 0x319   :  { %6461 = vmatprep.subr.bf16.mxu0 %v7644_v0 }
 0x31c   :  { %6463 = vmatpush3.bf16.msra.mxu0 %v7865_v59 }
 0x31d   :  { %6464 = vmatprep.subr.bf16.mxu0 %v7644_v0 }
 0x320   :  { %6466 = vmatpush3.bf16.msra.mxu0 %v7879_v63 }
 0x321   :  { %6467 = vmatprep.subr.bf16.mxu0 %v7644_v0 }
 0x324   :  { %6469 = vmatpush3.bf16.msra.mxu0 %v7935_v9 }
 0x325   :  { %6470 = vmatprep.subr.bf16.mxu0 %v7644_v0 }
 0x328   :  { %6472 = vmatpush3.bf16.msra.mxu0 %v7947_v16 }
 0x329   :  { %6473 = vmatprep.subr.bf16.mxu0 %v7644_v0 }
 0x32c   :  { %6475 = vmatpush3.bf16.msra.mxu0 %v7959_v23 }
 0x32d   :  { %6476 = vmatprep.subr.bf16.mxu0 %v7644_v0 }
 0x32f   :  { %6128 = vmatmul.mubr.f32.vlgmr.msra.gmra.mrb[2].mxu0 %v1409_v56 }
 0x330   :  { %6478 = vmatpush3.bf16.msra.mxu0 %v8220_v49  ;;  %6162 = vmatprep.mubr.msk.f32.mxu0 %vm7645_vm0, %v10721_v1  ;;  %v8438_v49 = vpack.c.bf16 %v2029_v45, %v2025_v42 }
 0x331   :  { %6479 = vmatprep.subr.bf16.mxu0 %v7644_v0 }
 0x332   :  { %11217 = vst [vmem:[#allocation17_spill] sm:$0xff] %v8438_v49 }
 0x334   :  { %6481 = vmatpush3.bf16.msra.mxu0 %v8230_v2  ;;  %v88_v2 = vld [vmem:[#allocation4 + $0x88] sm:$0xff] }
 0x335   :  { %6482 = vmatprep.subr.bf16.mxu0 %v7644_v0 }
 0x338   :  { %6484 = vmatpush3.bf16.msra.mxu0 %v8240_v19  ;;  %v90_v19 = vld [vmem:[#allocation4 + $0x98] sm:$0xff] }
 0x339   :  { %6485 = vmatprep.subr.bf16.mxu0 %v7644_v0 }
 0x33c   :  { %6487 = vmatpush3.bf16.msra.mxu0 %v8248_v22  ;;  %v2031_v22 = vand.u32 4294901760, %v88_v2 }
 0x33d   :  { %6488 = vmatprep.subr.bf16.mxu0 %v7644_v0 }
 0x340   :  { %6490 = vmatpush3.bf16.msra.mxu0 %v8256_v36  ;;  %v2035_v36 = vand.u32 4294901760, %v90_v19 }
 0x341   :  { %6491 = vmatprep.subr.bf16.mxu0 %v7644_v0 }
 0x342   :  { %v8442_v25 = vpack.c.bf16 %v2035_v36, %v2031_v22 }
 0x344   :  { %6493 = vmatpush3.bf16.msra.mxu0 %v8264_v41  ;;  %v87_v41 = vld [vmem:[#allocation4 + $0x80] sm:$0xff]  ;;  %11218 = vst [vmem:[#allocation18_spill] sm:$0xff] %v8442_v25 }
 0x345   :  { %6494 = vmatprep.subr.bf16.mxu0 %v7644_v0 }
 0x348   :  { %6496 = vmatpush3.bf16.msra.mxu0 %v8272_v13  ;;  %v2033_v13 = vand.u32 4294901760, %v87_v41 }
 0x349   :  { %6497 = vmatprep.subr.bf16.mxu0 %v7644_v0 }
 0x34a   :  { %v8480_v20 = vsub.f32 %v87_v41, %v2033_v13 }
 0x34c   :  { %6499 = vmatpush3.bf16.msra.mxu0 %v8280_v27  ;;  %v8444_v27 = vpack.c.bf16 %v2037_v24, %v2033_v13 }
 0x34d   :  { %6500 = vmatprep.subr.bf16.mxu0 %v7644_v0 }
 0x34e   :  { %11219 = vst [vmem:[#allocation19_spill] sm:$0xff] %v8444_v27 }
 0x34f   :  { %6163 = vmatmul.mubr.f32.vlgmr.msra.gmra.mrb[2].mxu0 %v8310_v46 }
 0x350   :  { %6502 = vmatpush3.bf16.msra.mxu0 %v7781_v29  ;;  %6197 = vmatprep.mubr.msk.f32.mxu0 %vm7645_vm0, %v10721_v1  ;;  %v71_v29 = vld [vmem:[#allocation4] sm:$0xff] }
 0x351   :  { %6503 = vmatprep.subr.bf16.mxu0 %v7644_v0  ;;  %v91_v1 = vld [vmem:[#allocation4 + $0xa0] sm:$0xff] }
 0x352   :  { %v2041_v7 = vand.u32 4294901760, %v91_v1 }
 0x354   :  { %6505 = vmatpush3.bf16.msra.mxu0 %v7835_v52  ;;  %v73_v52 = vld [vmem:[#allocation4 + $0x10] sm:$0xff] }
 0x355   :  { %6506 = vmatprep.subr.bf16.mxu0 %v7644_v0 }
 0x358   :  { %6508 = vmatpush3.bf16.msra.mxu0 %v7842_v53  ;;  %v2001_v53 = vand.u32 4294901760, %v71_v29 }
 0x359   :  { %6509 = vmatprep.subr.bf16.mxu0 %v7644_v0 }
 0x35a   :  { %v8447_v47 = vsub.f32 %v71_v29, %v2001_v53  ;;  %v8466_v29 = vsub.f32 %v81_v6, %v2021_v34 }
 0x35c   :  { %6511 = vmatpush3.bf16.msra.mxu0 %v7865_v59  ;;  %v2005_v59 = vand.u32 4294901760, %v73_v52 }
 0x35d   :  { %6512 = vmatprep.subr.bf16.mxu0 %v7644_v0 }
 0x35e   :  { %v8421_v11 = vpack.c.bf16 %v2005_v59, %v2001_v53  ;;  %v8449_v56 = vsub.f32 %v73_v52, %v2005_v59  ;;  %v8468_v52 = vsub.f32 %v84_v61, %v2023_v3  ;;  %v8470_v53 = vsub.f32 %v86_v54, %v2027_v40  ;;  %v93_v59 = vld [vmem:[#allocation4 + $0xb0] sm:$0xff] }
 0x35f   :  { %v2045_v34 = vand.u32 4294901760, %v93_v59 }
 0x360   :  { %6514 = vmatpush3.bf16.msra.mxu0 %v7879_v63  ;;  %11211 = vst [vmem:[#allocation11_spill] sm:$0xff] %v8421_v11  ;;  %v76_v63 = vld [vmem:[#allocation4 + $0x28] sm:$0xff]  ;;  %6527 = vmatpush1.bf16.msra.mxu1 %v8421_v11 }
 0x361   :  { %6515 = vmatprep.subr.bf16.mxu0 %v7644_v0  ;;  %v2007_v15 = vand.u32 4294901760, %v76_v63 }
 0x363   :  { %v8451_v62 = vsub.f32 %v76_v63, %v2007_v15  ;;  %v96_v63 = vld [vmem:[#allocation4 + $0xc8] sm:$0xff] }
 0x364   :  { %6517 = vmatpush3.bf16.msra.mxu0 %v7935_v9  ;;  %v2011_v9 = vand.u32 4294901760, %v78_v14  ;;  %v2047_v61 = vand.u32 4294901760, %v96_v63 }
 0x365   :  { %6518 = vmatprep.subr.bf16.mxu0 %v7644_v0  ;;  %11220 = vst [vmem:[#allocation20_spill] sm:$0xff] %v8451_v62 }
 0x366   :  { %v8424_v48 = vpack.c.bf16 %v2011_v9, %v2007_v15  ;;  %v8453_v33 = vsub.f32 %v78_v14, %v2011_v9  ;;  %v98_v14 = vld [vmem:[#allocation4 + $0xd8] sm:$0xff]  ;;  %v8472_v15 = vsub.f32 %v83_v8, %v2025_v42  ;;  %v8474_v9 = vsub.f32 %v85_v57, %v2029_v45  ;;  %v99_v42 = vld [vmem:[#allocation4 + $0xe0] sm:$0xff] }
 0x367   :  { %v2051_v54 = vand.u32 4294901760, %v98_v14  ;;  %v102_v8 = vld [vmem:[#allocation4 + $0xf8] sm:$0xff]  ;;  %v2055_v57 = vand.u32 4294901760, %v100_v35  ;;  %v8491_v45 = vpack.c.bf16 %v2045_v34, %v2041_v7 }
 0x368   :  { %6520 = vmatpush3.bf16.msra.mxu0 %v7947_v16  ;;  %v2009_v16 = vand.u32 4294901760, %v75_v38  ;;  %11212 = vst [vmem:[#allocation12_spill] sm:$0xff] %v8424_v48  ;;  %6529 = vmatprep.subr.bf16.mxu1 %v8424_v48  ;;  %11221 = vst [vmem:[#allocation21_spill] sm:$0xff] %v8453_v33 }
 0x369   :  { %6521 = vmatprep.subr.bf16.mxu0 %v7644_v0  ;;  %v2013_v0 = vand.u32 4294901760, %v77_v44  ;;  %11223 = vst [vmem:[#allocation23_spill] sm:$0xff] %v8491_v45  ;;  %v8499_v41 = vpack.c.bf16 %v2051_v54, %v2047_v61  ;;  %v8501_v12 = vsub.f32 %v98_v14, %v2051_v54  ;;  %v10727_v14 = vand.u32 4294901760, %v8447_v47 }
 0x36a   :  { %v8456_v26 = vsub.f32 %v75_v38, %v2009_v16  ;;  %v8476_v38 = vsub.f32 %v88_v2, %v2031_v22  ;;  %v8493_v2 = vsub.f32 %v91_v1, %v2041_v7  ;;  %v8497_v22 = vsub.f32 %v96_v63, %v2047_v61 }
 0x36b   :  { %v8458_v43 = vsub.f32 %v77_v44, %v2013_v0  ;;  %v8478_v44 = vsub.f32 %v90_v19, %v2035_v36  ;;  %v8495_v19 = vsub.f32 %v93_v59, %v2045_v34  ;;  %v101_v36 = vld [vmem:[#allocation4 + $0xf0] sm:$0xff]  ;;  %11224 = vst [vmem:[#allocation24_spill] sm:$0xff] %v8499_v41  ;;  %v8510_v1 = vsub.f32 %v100_v35, %v2055_v57 }
 0x36c   :  { %6523 = vmatpush3.bf16.msra.mxu0 %v7959_v23  ;;  %v8426_v23 = vpack.c.bf16 %v2013_v0, %v2009_v16  ;;  %v95_v16 = vld [vmem:[#allocation4 + $0xc0] sm:$0xff]  ;;  %v97_v0 = vld [vmem:[#allocation4 + $0xd0] sm:$0xff]  ;;  %v10726_v59 = vand.u32 4294901760, %v8344_v17  ;;  %v10725_v63 = vand.u32 4294901760, %v8346_v10 }
 0x36d   :  { %v2049_v3 = vand.u32 4294901760, %v95_v16  ;;  %v2053_v40 = vand.u32 4294901760, %v97_v0 }
 0x36e   :  { %11213 = vst [vmem:[#allocation13_spill] sm:$0xff] %v8426_v23  ;;  %6531 = vmatpush1.bf16.msra.mxu1 %v8426_v23  ;;  %v2110_v54 = vsub.f32 %v8344_v17, %v10726_v59 }
 0x36f   :  { %6198 = vmatmul.mubr.f32.vlgmr.msra.gmra.mrb[2].mxu0 %v8310_v46  ;;  %6533 = vmatprep.subr.bf16.mxu1 %v8430_v60  ;;  %v2043_v46 = vand.u32 4294901760, %v94_v32  ;;  %v8503_v13 = vpack.c.bf16 %v2053_v40, %v2049_v3  ;;  %v8505_v24 = vsub.f32 %v95_v16, %v2049_v3  ;;  %v8508_v28 = vsub.f32 %v97_v0, %v2053_v40 }
 0x370   :  { %v10728_v0 = vand.u32 4294901760, %v8449_v56  ;;  %v2122_v3 = vsub.f32 %v8346_v10, %v10725_v63  ;;  %v2116_v40 = vsub.f32 %v8447_v47, %v10727_v14  ;;  %v10783_v60 = vand.u32 4294901760, %v8510_v1 }
 0x371   :  { %v8484_v50 = vpack.c.bf16 %v2043_v46, %v2039_v39  ;;  %v8488_v6 = vsub.f32 %v94_v32, %v2043_v46  ;;  %11225 = vst [vmem:[#allocation25_spill] sm:$0xff] %v8503_v13  ;;  %v2059_v32 = vand.u32 4294901760, %v102_v8  ;;  %v2057_v39 = vand.u32 4294901760, %v99_v42 }
 0x372   :  { %6535 = vmatpush1.bf16.msra.mxu1 %v8432_v58  ;;  %v2061_v46 = vand.u32 4294901760, %v101_v36  ;;  %v2117_v63 = vand.u32 4294901760, %v2116_v40  ;;  %v10740_v40 = vand.u32 4294901760, %v8460_v51 }
 0x373   :  { %6537 = vmatprep.subr.bf16.mxu1 %v8436_v37  ;;  %11222 = vst [vmem:[#allocation22_spill] sm:$0xff] %v8484_v50  ;;  %v8516_v7 = vpack.c.bf16 %v2059_v32, %v2055_v57  ;;  %v8518_v16 = vsub.f32 %v102_v8, %v2059_v32  ;;  %v8520_v34 = vsub.f32 %v99_v42, %v2057_v39  ;;  %v10731_v57 = vand.u32 4294901760, %v8451_v62 }
 0x374   :  { %v8523_v35 = vpack.c.bf16 %v2061_v46, %v2057_v39  ;;  %v8525_v61 = vsub.f32 %v101_v36, %v2061_v46  ;;  %v2128_v8 = vsub.f32 %v8449_v56, %v10728_v0  ;;  %v10737_v42 = vand.u32 4294901760, %v8453_v33 }
 0x375   :  { %11226 = vst [vmem:[#allocation26_spill] sm:$0xff] %v8516_v7  ;;  %v2111_v36 = vand.u32 4294901760, %v2110_v54  ;;  %v2123_v32 = vand.u32 4294901760, %v2122_v3  ;;  %v10736_v39 = vand.u32 4294901760, %v8456_v26  ;;  %v10738_v46 = vand.u32 4294901760, %v8458_v43 }
 0x376   :  { %6539 = vmatpush1.bf16.msra.mxu1 %v8438_v49  ;;  %11227 = vst [vmem:[#allocation27_spill] sm:$0xff] %v8523_v35  ;;  %v2129_v59 = vand.u32 4294901760, %v2128_v8  ;;  %v2134_v14 = vsub.f32 %v8451_v62, %v10731_v57  ;;  %v2146_v0 = vsub.f32 %v8453_v33, %v10737_v42  ;;  %v10741_v42 = vand.u32 4294901760, %v8464_v30 }
 0x377   :  { %6541 = vmatprep.subr.bf16.mxu1 %v8442_v25  ;;  %v2140_v54 = vsub.f32 %v8456_v26, %v10736_v39  ;;  %v2152_v3 = vsub.f32 %v8458_v43, %v10738_v46  ;;  %v2158_v39 = vsub.f32 %v8460_v51, %v10740_v40  ;;  %v10762_v25 = vand.u32 4294901760, %v8486_v55 }
 0x378   :  { %v8559_v8 = vpack.c.bf16 %v2129_v59, %v2117_v63  ;;  %v2135_v57 = vand.u32 4294901760, %v2134_v14  ;;  %v10742_v63 = vand.u32 4294901760, %v8466_v29  ;;  %v10780_v37 = vand.u32 4294901760, %v8505_v24 }
 0x379   :  { %v10786_v48 = vand.u32 4294901760, %v8525_v61 }
 0x37a   :  { %6543 = vmatpush1.bf16.msra.mxu1 %v8444_v27 }
 0x37b   :  { %6545 = vmatprep.subr.bf16.mxu1 %v8484_v50  ;;  %v10761_v50 = vand.u32 4294901760, %v8480_v20 }
 0x37e   :  { %6547 = vmatpush1.bf16.msra.mxu1 %v8491_v45  ;;  %v10758_v45 = vand.u32 4294901760, %v8478_v44 }
 0x37f   :  { %6549 = vmatprep.subr.bf16.mxu1 %v8499_v41  ;;  %v10739_v41 = vand.u32 4294901760, %v8462_v5 }
 0x381   :  { %v2170_v59 = vsub.f32 %v8462_v5, %v10739_v41  ;;  %v10751_v41 = vand.u32 4294901760, %v8472_v15 }
 0x382   :  { %6551 = vmatpush1.bf16.msra.mxu1 %v8503_v13  ;;  %v6556_v13 = vpack.c.bf16 %v2123_v32, %v2111_v36  ;;  %v2141_v36 = vand.u32 4294901760, %v2140_v54  ;;  %v2153_v32 = vand.u32 4294901760, %v2152_v3  ;;  %v10745_v54 = vand.u32 4294901760, %v8468_v52 }
 0x383   :  { %6553 = vmatprep.subr.bf16.mxu1 %v8516_v7  ;;  %v2147_v7 = vand.u32 4294901760, %v2146_v0  ;;  %v2159_v0 = vand.u32 4294901760, %v2158_v39  ;;  %v2171_v3 = vand.u32 4294901760, %v2170_v59 }
 0x384   :  { %v8572_v14 = vpack.c.bf16 %v2153_v32, %v2141_v36  ;;  %v2182_v39 = vsub.f32 %v8468_v52, %v10745_v54  ;;  %v10752_v36 = vand.u32 4294901760, %v8474_v9  ;;  %v10755_v54 = vand.u32 4294901760, %v8476_v38 }
 0x385   :  { %v8566_v46 = vpack.c.bf16 %v2147_v7, %v2135_v57  ;;  %v2176_v7 = vsub.f32 %v8466_v29, %v10742_v63  ;;  %v10750_v57 = vand.u32 4294901760, %v8470_v53  ;;  %v8587_v32 = vpack.c.bf16 %v2171_v3, %v2159_v0 }
 0x386   :  { %6555 = vmatpush1.bf16.msra.mxu1 %v8523_v35  ;;  %v2188_v63 = vsub.f32 %v8472_v15, %v10751_v41  ;;  %v2183_v35 = vand.u32 4294901760, %v2182_v39  ;;  %v2206_v41 = vsub.f32 %v8476_v38, %v10755_v54  ;;  %v2218_v39 = vsub.f32 %v8478_v44, %v10758_v45 }
 0x387   :  { %6557 = vmatprep.subr.bf16.mxu1 %v6556_v13  ;;  %v2164_v13 = vsub.f32 %v8464_v30, %v10741_v42  ;;  %v2177_v42 = vand.u32 4294901760, %v2176_v7  ;;  %v2194_v59 = vsub.f32 %v8470_v53, %v10750_v57  ;;  %v10766_v45 = vand.u32 4294901760, %v8488_v6 }
 0x388   :  { %v2189_v7 = vand.u32 4294901760, %v2188_v63  ;;  %v2207_v63 = vand.u32 4294901760, %v2206_v41  ;;  %v2230_v41 = vsub.f32 %v8486_v55, %v10762_v25 }
 0x389   :  { %v2165_v40 = vand.u32 4294901760, %v2164_v13  ;;  %v2200_v13 = vsub.f32 %v8474_v9, %v10752_v36  ;;  %v2195_v3 = vand.u32 4294901760, %v2194_v59  ;;  %v10763_v36 = vand.u32 4294901760, %v8482_v21 }
 0x38a   :  { %v2219_v59 = vand.u32 4294901760, %v2218_v39 }
 0x38b   :  { %v8600_v0 = vpack.c.bf16 %v2177_v42, %v2165_v40  ;;  %v2201_v57 = vand.u32 4294901760, %v2200_v13  ;;  %v8610_v27 = vpack.c.bf16 %v2195_v3, %v2183_v35  ;;  %v2212_v42 = vsub.f32 %v8480_v20, %v10761_v50 }
 0x38c   :  { %v2224_v13 = vsub.f32 %v8482_v21, %v10763_v36  ;;  %v10767_v35 = vand.u32 4294901760, %v8493_v2  ;;  %v8623_v3 = vpack.c.bf16 %v2219_v59, %v2207_v63  ;;  %v10768_v50 = vand.u32 4294901760, %v8495_v19 }
 0x38d   :  { %v8615_v40 = vpack.c.bf16 %v2201_v57, %v2189_v7  ;;  %v2213_v54 = vand.u32 4294901760, %v2212_v42  ;;  %v2242_v57 = vsub.f32 %v8488_v6, %v10766_v45  ;;  %v10769_v63 = vand.u32 4294901760, %v8497_v22 }
 0x38e   :  { %v2225_v49 = vand.u32 4294901760, %v2224_v13  ;;  %v2236_v7 = vsub.f32 %v8493_v2, %v10767_v35  ;;  %v2248_v42 = vsub.f32 %v8495_v19, %v10768_v50  ;;  %v10774_v59 = vand.u32 4294901760, %v8501_v12 }
 0x38f   :  { %v2231_v13 = vand.u32 4294901760, %v2230_v41  ;;  %v2243_v25 = vand.u32 4294901760, %v2242_v57  ;;  %v2254_v35 = vsub.f32 %v8497_v22, %v10769_v63  ;;  %v2260_v41 = vsub.f32 %v8505_v24, %v10780_v37 }
 0x390   :  { %v8635_v39 = vpack.c.bf16 %v2225_v49, %v2213_v54  ;;  %v2237_v36 = vand.u32 4294901760, %v2236_v7  ;;  %v2249_v45 = vand.u32 4294901760, %v2248_v42  ;;  %v2266_v49 = vsub.f32 %v8501_v12, %v10774_v59 }
 0x391   :  { %v10779_v54 = vand.u32 4294901760, %v8508_v28  ;;  %v8650_v50 = vpack.c.bf16 %v2243_v25, %v2231_v13  ;;  %v2255_v7 = vand.u32 4294901760, %v2254_v35  ;;  %v2261_v58 = vand.u32 4294901760, %v2260_v41 }
 0x392   :  { %v8655_v57 = vpack.c.bf16 %v2249_v45, %v2237_v36  ;;  %v2267_v42 = vand.u32 4294901760, %v2266_v49  ;;  %v10784_v59 = vand.u32 4294901760, %v8518_v16  ;;  %v10785_v25 = vand.u32 4294901760, %v8520_v34 }
 0x393   :  { %v2272_v63 = vsub.f32 %v8508_v28, %v10779_v54  ;;  %v2278_v45 = vsub.f32 %v8510_v1, %v10783_v60  ;;  %v2296_v41 = vsub.f32 %v8525_v61, %v10786_v48  ;;  %v6588_v60 = vpack.c.bf16 %v8346_v10, %v8344_v17  ;;  %v7566_v48 = vld [vmem:[%s10715_s5] sm:$0x7] }
 0x394   :  { %v6580_v13 = vpack.c.bf16 %v2267_v42, %v2255_v7  ;;  %v2290_v36 = vsub.f32 %v8518_v16, %v10784_v59  ;;  %v2284_v35 = vsub.f32 %v8520_v34, %v10785_v25  ;;  %v6590_v59 = vpack.c.bf16 %v8449_v56, %v8447_v47 }
 0x395   :  { %v2273_v23 = vand.u32 4294901760, %v2272_v63  ;;  %v2279_v63 = vand.u32 4294901760, %v2278_v45  ;;  %v2297_v54 = vand.u32 4294901760, %v2296_v41  ;;  %v6592_v25 = vpack.c.bf16 %v8453_v33, %v8451_v62 }
 0x396   :  { %v2291_v7 = vand.u32 4294901760, %v2290_v36  ;;  %v2285_v42 = vand.u32 4294901760, %v2284_v35 }
 0x397   :  { %v6582_v49 = vpack.c.bf16 %v2273_v23, %v2261_v58 }
 0x398   :  { %v6584_v37 = vpack.c.bf16 %v2291_v7, %v2279_v63  ;;  %v6586_v11 = vpack.c.bf16 %v2297_v54, %v2285_v42  ;;  %v8709_v63 = vsub.s32 1, %v8019_v18  ;;  %v8712_v7 = vsub.s32 2, %v8019_v18 }
 0x39a   :  { %11228 = vst [vmem:[#allocation28_spill] sm:$0xff] %v8709_v63  ;;  %11229 = vst [vmem:[#allocation29_spill] sm:$0xff] %v8712_v7  ;;  %v1972_v42 = vrot.slane %v7566_v48, %v8709_v63  ;;  %v1977_v58 = vrot.slane %v7566_v48, %v8712_v7  ;;  %v11230_v48 = vmov 0.0   ;;  %v11264_v7 = vpack.c.bf16 %v8474_v9, %v8472_v15 }
 0x442   :  { %v1963_v54 = vpop.f32.mrb[2].mxu0 }
 0x443   :  { %v7485_v41 = vadd.f32 1e-05, %v1963_v54  ;;  %v6199_v45 = vpop.f32.mrb[3].mxu0 }
 0x445   :  { %7560 = vrsqrt.f32 %v7485_v41 }
 0x44f   :  { %v7561_v36 = vpop.eup %7560 }
 0x450   :  { %v1968_v35 = vmul.f32 %v7561_v36, %v8306_v31  ;;  %v8742_v31 = vld [vmem:[#allocation6 + $0x8] sm:$0xff]  ;;  %v8780_v36 = vld [vmem:[#allocation6 + $0x50] sm:$0xff] }
 0x451   :  { %11240 = vst [vmem:[#allocation39_spill] sm:$0xff] %v8780_v36 }
 0x452   :  { %v1973_v54 = vmul.f32 %v1972_v42, %v1968_v35 }
 0x454   :  { %v1978_v45 = vadd.f32 %v1977_v58, %v1973_v54  ;;  %v8778_v58 = vld [vmem:[#allocation6 + $0x40] sm:$0xff]  ;;  %v8795_v54 = vld [vmem:[#allocation6 + $0x68] sm:$0xff] }
 0x455   :  { %11239 = vst [vmem:[#allocation38_spill] sm:$0xff] %v8778_v58  ;;  %11243 = vst [vmem:[#allocation42_spill] sm:$0xff] %v8795_v54 }
 0x456   :  { %v1979_v41 = vmax.f32 %v1978_v45, 0.0  ;;  %v8797_v45 = vld [vmem:[#allocation6 + $0x78] sm:$0xff] }
 0x457   :  { %11244 = vst [vmem:[#allocation43_spill] sm:$0xff] %v8797_v45 }
 0x458   :  { %v8720_v23 = vand.u32 4294901760, %v1979_v41 }
 0x45a   :  { %v8723_v33 = vsub.f32 %v1979_v41, %v8720_v23  ;;  %v11245_v41 = vpack.c.bf16 %v8458_v43, %v8456_v26 }
 0x45c   :  { %v10801_v18 = vand.u32 4294901760, %v8723_v33 }
 0x45e   :  { %v2099_v62 = vsub.f32 %v8723_v33, %v10801_v18  ;;  %v8830_v18 = vld [vmem:[#allocation6 + $0x98] sm:$0xff] }
 0x45f   :  { %11252 = vst [vmem:[#allocation49_spill] sm:$0xff] %v8830_v18 }
 0x460   :  { %v2100_v63 = vand.u32 4294901760, %v2099_v62  ;;  %v8746_v62 = vld [vmem:[#allocation6] sm:$0xff] }
 0x462   :  { %2101 = vmatmul.mubr.f32.vlgmr.msra.gmra.mrb[2].mxu1 %v2100_v63 }
 0x463   :  { %6559 = vmatpush1.bf16.msra.mxu1 %v8559_v8  ;;  %2331 = vmatprep.mubr.f32.mxu1 %v11230_v48  ;;  %v8751_v8 = vld [vmem:[#allocation6 + $0x10] sm:$0xff] }
 0x464   :  { %6561 = vmatprep.subr.bf16.mxu1 %v8566_v46  ;;  %11231 = vst [vmem:[#allocation30_spill] sm:$0xff] %v8751_v8 }
 0x467   :  { %6563 = vmatpush1.bf16.msra.mxu1 %v8572_v14  ;;  %v10793_v14 = vand.u32 4294901760, %v8751_v8  ;;  %v11380_v8 = vand.u32 4294901760, %v8723_v33 }
 0x468   :  { %6565 = vmatprep.subr.bf16.mxu1 %v8587_v32 }
 0x46b   :  { %6567 = vmatpush1.bf16.msra.mxu1 %v8600_v0 }
 0x46c   :  { %6569 = vmatprep.subr.bf16.mxu1 %v8610_v27  ;;  %v8744_v27 = vld [vmem:[#allocation6 + $0x18] sm:$0xff] }
 0x46d   :  { %v10797_v46 = vand.u32 4294901760, %v8744_v27 }
 0x46f   :  { %6571 = vmatpush1.bf16.msra.mxu1 %v8615_v40  ;;  %v8761_v40 = vld [vmem:[#allocation6 + $0x20] sm:$0xff] }
 0x470   :  { %6573 = vmatprep.subr.bf16.mxu1 %v8623_v3  ;;  %11234 = vst [vmem:[#allocation33_spill] sm:$0xff] %v8761_v40  ;;  %v8763_v3 = vld [vmem:[#allocation6 + $0x30] sm:$0xff] }
 0x471   :  { %11235 = vst [vmem:[#allocation34_spill] sm:$0xff] %v8763_v3 }
 0x473   :  { %6575 = vmatpush1.bf16.msra.mxu1 %v8635_v39  ;;  %v8765_v39 = vld [vmem:[#allocation6 + $0x48] sm:$0xff] }
 0x474   :  { %6577 = vmatprep.subr.bf16.mxu1 %v8650_v50  ;;  %v10798_v50 = vand.u32 4294901760, %v8742_v31  ;;  %11236 = vst [vmem:[#allocation35_spill] sm:$0xff] %v8765_v39 }
 0x477   :  { %6579 = vmatpush1.bf16.msra.mxu1 %v8655_v57  ;;  %v10800_v57 = vand.u32 4294901760, %v8761_v40 }
 0x478   :  { %6581 = vmatprep.subr.bf16.mxu1 %v6580_v13  ;;  %v8775_v13 = vld [vmem:[#allocation6 + $0x58] sm:$0xff] }
 0x479   :  { %11238 = vst [vmem:[#allocation37_spill] sm:$0xff] %v8775_v13  ;;  %v10802_v42 = vand.u32 4294901760, %v8775_v13  ;;  %v9044_v13 = vld [vmem:[#allocation6 + $0x140] sm:$0xff] }
 0x47a   :  { %11331 = vst [vmem:[#allocation86_spill] sm:$0xff] %v9044_v13 }
 0x47b   :  { %6583 = vmatpush1.bf16.msra.mxu1 %v6582_v49  ;;  %v10803_v49 = vand.u32 4294901760, %v8765_v39 }
 0x47c   :  { %6585 = vmatprep.subr.bf16.mxu1 %v6584_v37  ;;  %v8756_v37 = vld [vmem:[#allocation6 + $0x38] sm:$0xff] }
 0x47d   :  { %11233 = vst [vmem:[#allocation32_spill] sm:$0xff] %v8756_v37  ;;  %v10794_v0 = vand.u32 4294901760, %v8756_v37  ;;  %v9100_v37 = vld [vmem:[#allocation6 + $0x180] sm:$0xff] }
 0x47e   :  { %11355 = vst [vmem:[#allocation94_spill] sm:$0xff] %v9100_v37 }
 0x47f   :  { %6587 = vmatpush1.bf16.msra.mxu1 %v6586_v11  ;;  %v10796_v11 = vand.u32 4294901760, %v8746_v62 }
 0x480   :  { %6589 = vmatprep.subr.bf16.mxu1 %v6588_v60  ;;  %v8754_v60 = vld [vmem:[#allocation6 + $0x28] sm:$0xff] }
 0x481   :  { %11232 = vst [vmem:[#allocation31_spill] sm:$0xff] %v8754_v60  ;;  %v10795_v32 = vand.u32 4294901760, %v8754_v60  ;;  %v8786_v35 = vpack.c.bf16 %v10793_v14, %v10796_v11  ;;  %v11246_v14 = vpack.c.bf16 %v8462_v5, %v8460_v51  ;;  %v11253_v11 = vpack.c.bf16 %v8466_v29, %v8464_v30 }
 0x482   :  { %2333 = vmatmul.mubr.f32.vlgmr.msra.gmra.mrb[2].mxu1 %v8720_v23 }
 0x483   :  { %6591 = vmatpush1.bf16.msra.mxu1 %v6590_v59  ;;  %2467 = vmatprep.mubr.f32.mxu1 %v11230_v48  ;;  %v8771_v59 = vpack.c.bf16 %v10797_v46, %v10798_v50  ;;  %11241 = vst [vmem:[#allocation40_spill] sm:$0xff] %v8786_v35  ;;  %v8792_v63 = vpack.c.bf16 %v10794_v0, %v10795_v32  ;;  %v10814_v32 = vand.u32 4294901760, %v8778_v58  ;;  %v8824_v50 = vld [vmem:[#allocation6 + $0x60] sm:$0xff] }
 0x484   :  { %6593 = vmatprep.subr.bf16.mxu1 %v6592_v25  ;;  %v10799_v25 = vand.u32 4294901760, %v8763_v3  ;;  %11249 = vst [vmem:[#allocation46_spill] sm:$0xff] %v8824_v50  ;;  %v9072_v3 = vld [vmem:[#allocation6 + $0x160] sm:$0xff] }
 0x485   :  { %11237 = vst [vmem:[#allocation36_spill] sm:$0xff] %v8771_v59  ;;  %11242 = vst [vmem:[#allocation41_spill] sm:$0xff] %v8792_v63  ;;  %6717 = vmatprep.subr.bf16.mxu0 %v8771_v59  ;;  %v8856_v59 = vld [vmem:[#allocation6 + $0x80] sm:$0xff] }
 0x486   :  { %6719 = vmatpush1.bf16.msra.mxu0 %v8786_v35  ;;  %v8811_v0 = vpack.c.bf16 %v10799_v25, %v10800_v57  ;;  %v8826_v25 = vld [vmem:[#allocation6 + $0x70] sm:$0xff]  ;;  %v8828_v57 = vld [vmem:[#allocation6 + $0x88] sm:$0xff]  ;;  %11260 = vst [vmem:[#allocation52_spill] sm:$0xff] %v8856_v59  ;;  %11343 = vst [vmem:[#allocation90_spill] sm:$0xff] %v9072_v3 }
 0x487   :  { %6595 = vmatpush1.bf16.msra.mxu1 %v11245_v41  ;;  %6721 = vmatprep.subr.bf16.mxu0 %v8792_v63  ;;  %v8820_v41 = vpack.c.bf16 %v10802_v42, %v10803_v49  ;;  %11250 = vst [vmem:[#allocation47_spill] sm:$0xff] %v8826_v25  ;;  %11251 = vst [vmem:[#allocation48_spill] sm:$0xff] %v8828_v57  ;;  %v11254_v42 = vpack.c.bf16 %v8470_v53, %v8468_v52  ;;  %v11255_v49 = vand.u32 4294901760, %v8780_v36 }
 0x488   :  { %6597 = vmatprep.subr.bf16.mxu1 %v11246_v14  ;;  %11247 = vst [vmem:[#allocation44_spill] sm:$0xff] %v8811_v0  ;;  %v11258_v63 = vand.u32 4294901760, %v8797_v45  ;;  %v8862_v14 = vld [vmem:[#allocation6 + $0xb8] sm:$0xff]  ;;  %v11276_v45 = vpack.c.bf16 %v8482_v21, %v8480_v20 }
 0x489   :  { %11248 = vst [vmem:[#allocation45_spill] sm:$0xff] %v8820_v41  ;;  %v8843_v46 = vpack.c.bf16 %v11255_v49, %v10814_v32  ;;  %v8858_v49 = vld [vmem:[#allocation6 + $0x90] sm:$0xff]  ;;  %v8860_v32 = vld [vmem:[#allocation6 + $0xa8] sm:$0xff]  ;;  %11263 = vst [vmem:[#allocation55_spill] sm:$0xff] %v8862_v14 }
 0x48a   :  { %6723 = vmatpush1.bf16.msra.mxu0 %v8811_v0  ;;  %11261 = vst [vmem:[#allocation53_spill] sm:$0xff] %v8858_v49  ;;  %11262 = vst [vmem:[#allocation54_spill] sm:$0xff] %v8860_v32  ;;  %v11267_v0 = vand.u32 4294901760, %v8826_v25 }
 0x48b   :  { %6599 = vmatpush1.bf16.msra.mxu1 %v11253_v11  ;;  %11256 = vst [vmem:[#allocation50_spill] sm:$0xff] %v8843_v46  ;;  %6725 = vmatprep.subr.bf16.mxu0 %v8820_v41  ;;  %v11257_v11 = vand.u32 4294901760, %v8795_v54  ;;  %v11270_v54 = vand.u32 4294901760, %v8830_v18  ;;  %v8894_v41 = vld [vmem:[#allocation6 + $0xd8] sm:$0xff]  ;;  %v11288_v18 = vpack.c.bf16 %v8495_v19, %v8493_v2 }
 0x48c   :  { %6601 = vmatprep.subr.bf16.mxu1 %v11254_v42  ;;  %11275 = vst [vmem:[#allocation61_spill] sm:$0xff] %v8894_v41 }
 0x48d   :  { %v8852_v35 = vpack.c.bf16 %v11258_v63, %v11257_v11  ;;  %v11265_v63 = vpack.c.bf16 %v8478_v44, %v8476_v38  ;;  %v11266_v11 = vand.u32 4294901760, %v8824_v50  ;;  %v8888_v50 = vld [vmem:[#allocation6 + $0xa0] sm:$0xff] }
 0x48e   :  { %6727 = vmatpush1.bf16.msra.mxu0 %v8843_v46  ;;  %11272 = vst [vmem:[#allocation58_spill] sm:$0xff] %v8888_v50  ;;  %v11279_v46 = vand.u32 4294901760, %v8858_v49 }
 0x48f   :  { %11259 = vst [vmem:[#allocation51_spill] sm:$0xff] %v8852_v35  ;;  %6603 = vmatpush1.bf16.msra.mxu1 %v11264_v7  ;;  %v8875_v42 = vpack.c.bf16 %v11267_v0, %v11266_v11  ;;  %6729 = vmatprep.subr.bf16.mxu0 %v8852_v35  ;;  %v11269_v7 = vand.u32 4294901760, %v8828_v57  ;;  %v8890_v0 = vld [vmem:[#allocation6 + $0xb0] sm:$0xff]  ;;  %v8892_v11 = vld [vmem:[#allocation6 + $0xc8] sm:$0xff]  ;;  %v11282_v57 = vand.u32 4294901760, %v8862_v14  ;;  %v8926_v35 = vld [vmem:[#allocation6 + $0xf8] sm:$0xff]  ;;  %v11300_v14 = vpack.c.bf16 %v8508_v28, %v8505_v24 }
 0x490   :  { %6605 = vmatprep.subr.bf16.mxu1 %v11265_v63  ;;  %11273 = vst [vmem:[#allocation59_spill] sm:$0xff] %v8890_v0  ;;  %11274 = vst [vmem:[#allocation60_spill] sm:$0xff] %v8892_v11 }
 0x491   :  { %11268 = vst [vmem:[#allocation56_spill] sm:$0xff] %v8875_v42  ;;  %v8884_v36 = vpack.c.bf16 %v11270_v54, %v11269_v7  ;;  %v11277_v54 = vpack.c.bf16 %v8488_v6, %v8486_v55  ;;  %v11278_v7 = vand.u32 4294901760, %v8856_v59  ;;  %v8920_v59 = vld [vmem:[#allocation6 + $0xc0] sm:$0xff]  ;;  %11287 = vst [vmem:[#allocation67_spill] sm:$0xff] %v8926_v35 }
 0x492   :  { %6731 = vmatpush1.bf16.msra.mxu0 %v8875_v42  ;;  %11284 = vst [vmem:[#allocation64_spill] sm:$0xff] %v8920_v59  ;;  %v11291_v42 = vand.u32 4294901760, %v8890_v0 }
 0x493   :  { %11271 = vst [vmem:[#allocation57_spill] sm:$0xff] %v8884_v36  ;;  %6607 = vmatpush1.bf16.msra.mxu1 %v11276_v45  ;;  %v8907_v63 = vpack.c.bf16 %v11279_v46, %v11278_v7  ;;  %6733 = vmatprep.subr.bf16.mxu0 %v8884_v36  ;;  %v11281_v45 = vand.u32 4294901760, %v8860_v32  ;;  %v8922_v46 = vld [vmem:[#allocation6 + $0xd0] sm:$0xff]  ;;  %v8924_v7 = vld [vmem:[#allocation6 + $0xe8] sm:$0xff]  ;;  %v11294_v32 = vand.u32 4294901760, %v8894_v41  ;;  %v8958_v36 = vld [vmem:[#allocation6 + $0x118] sm:$0xff]  ;;  %v11312_v41 = vpack.c.bf16 %v8525_v61, %v8520_v34 }
 0x494   :  { %6609 = vmatprep.subr.bf16.mxu1 %v11277_v54  ;;  %11285 = vst [vmem:[#allocation65_spill] sm:$0xff] %v8922_v46  ;;  %11286 = vst [vmem:[#allocation66_spill] sm:$0xff] %v8924_v7 }
 0x495   :  { %11280 = vst [vmem:[#allocation62_spill] sm:$0xff] %v8907_v63  ;;  %v8916_v25 = vpack.c.bf16 %v11282_v57, %v11281_v45  ;;  %v11289_v57 = vpack.c.bf16 %v8501_v12, %v8497_v22  ;;  %v11290_v45 = vand.u32 4294901760, %v8888_v50  ;;  %v8952_v50 = vld [vmem:[#allocation6 + $0xe0] sm:$0xff]  ;;  %11299 = vst [vmem:[#allocation73_spill] sm:$0xff] %v8958_v36 }
 0x496   :  { %6735 = vmatpush1.bf16.msra.mxu0 %v8907_v63  ;;  %11296 = vst [vmem:[#allocation70_spill] sm:$0xff] %v8952_v50  ;;  %v11303_v63 = vand.u32 4294901760, %v8922_v46  ;;  %v9014_v46 = vld [vmem:[#allocation6 + $0x120] sm:$0xff] }
 0x497   :  { %11283 = vst [vmem:[#allocation63_spill] sm:$0xff] %v8916_v25  ;;  %6611 = vmatpush1.bf16.msra.mxu1 %v11288_v18  ;;  %v8939_v54 = vpack.c.bf16 %v11291_v42, %v11290_v45  ;;  %6737 = vmatprep.subr.bf16.mxu0 %v8916_v25  ;;  %v11293_v18 = vand.u32 4294901760, %v8892_v11  ;;  %v8954_v42 = vld [vmem:[#allocation6 + $0xf0] sm:$0xff]  ;;  %v8956_v45 = vld [vmem:[#allocation6 + $0x108] sm:$0xff]  ;;  %v11306_v11 = vand.u32 4294901760, %v8926_v35  ;;  %v8990_v25 = vld [vmem:[#allocation6 + $0x138] sm:$0xff] }
 0x498   :  { %6613 = vmatprep.subr.bf16.mxu1 %v11289_v57  ;;  %11297 = vst [vmem:[#allocation71_spill] sm:$0xff] %v8954_v42  ;;  %11298 = vst [vmem:[#allocation72_spill] sm:$0xff] %v8956_v45  ;;  %v11316_v35 = vand.u32 4294901760, %v8956_v45 }
 0x499   :  { %11292 = vst [vmem:[#allocation68_spill] sm:$0xff] %v8939_v54  ;;  %v8948_v49 = vpack.c.bf16 %v11294_v32, %v11293_v18  ;;  %v11301_v32 = vpack.c.bf16 %v8518_v16, %v8510_v1  ;;  %v11302_v18 = vand.u32 4294901760, %v8920_v59  ;;  %v8984_v59 = vld [vmem:[#allocation6 + $0x100] sm:$0xff]  ;;  %11311 = vst [vmem:[#allocation79_spill] sm:$0xff] %v8990_v25 }
 0x49a   :  { %6739 = vmatpush1.bf16.msra.mxu0 %v8939_v54  ;;  %11308 = vst [vmem:[#allocation76_spill] sm:$0xff] %v8984_v59  ;;  %11319 = vst [vmem:[#allocation82_spill] sm:$0xff] %v9014_v46 }
 0x49b   :  { %11295 = vst [vmem:[#allocation69_spill] sm:$0xff] %v8948_v49  ;;  %6615 = vmatpush1.bf16.msra.mxu1 %v11300_v14  ;;  %v8971_v57 = vpack.c.bf16 %v11303_v63, %v11302_v18  ;;  %6741 = vmatprep.subr.bf16.mxu0 %v8948_v49  ;;  %v11305_v14 = vand.u32 4294901760, %v8924_v7  ;;  %v8986_v63 = vld [vmem:[#allocation6 + $0x110] sm:$0xff]  ;;  %v8988_v18 = vld [vmem:[#allocation6 + $0x128] sm:$0xff]  ;;  %v9021_v49 = vld [vmem:[#allocation6 + $0x158] sm:$0xff] }
 0x49c   :  { %6617 = vmatprep.subr.bf16.mxu1 %v11301_v32  ;;  %11309 = vst [vmem:[#allocation77_spill] sm:$0xff] %v8986_v63  ;;  %11310 = vst [vmem:[#allocation78_spill] sm:$0xff] %v8988_v18  ;;  %v11323_v32 = vld [vmem:[#allocation11_spill] sm:$0xff]  ;;  %v11328_v45 = vand.u32 4294901760, %v8988_v18 }
 0x49d   :  { %11304 = vst [vmem:[#allocation74_spill] sm:$0xff] %v8971_v57  ;;  %v8980_v0 = vpack.c.bf16 %v11306_v11, %v11305_v14  ;;  %v11313_v11 = vand.u32 4294901760, %v8952_v50  ;;  %v11314_v14 = vand.u32 4294901760, %v8954_v42  ;;  %11322 = vst [vmem:[#allocation85_spill] sm:$0xff] %v9021_v49  ;;  %v11326_v50 = vand.u32 4294901760, %v8986_v63 }
 0x49e   :  { %6743 = vmatpush1.bf16.msra.mxu0 %v8971_v57  ;;  %v11329_v42 = vand.u32 4294901760, %v8990_v25  ;;  %v11341_v63 = vand.u32 4294901760, %v9021_v49  ;;  %v11347_v25 = vld [vmem:[#allocation15_spill] sm:$0xff]  ;;  %v11359_v49 = vand.u32 4294901760, %v9072_v3 }
 0x49f   :  { %11307 = vst [vmem:[#allocation75_spill] sm:$0xff] %v8980_v0  ;;  %6619 = vmatpush1.bf16.msra.mxu1 %v11312_v41  ;;  %v9001_v54 = vpack.c.bf16 %v11314_v14, %v11313_v11  ;;  %6745 = vmatprep.subr.bf16.mxu0 %v8980_v0  ;;  %v11317_v41 = vand.u32 4294901760, %v8958_v36  ;;  %v9016_v11 = vld [vmem:[#allocation6 + $0x130] sm:$0xff]  ;;  %v9019_v14 = vld [vmem:[#allocation6 + $0x148] sm:$0xff]  ;;  %v9050_v0 = vld [vmem:[#allocation6 + $0x178] sm:$0xff] }
 0x4a0   :  { %6621 = vmatprep.subr.bf16.mxu1 %v8342_v4  ;;  %11320 = vst [vmem:[#allocation83_spill] sm:$0xff] %v9016_v11  ;;  %11321 = vst [vmem:[#allocation84_spill] sm:$0xff] %v9019_v14  ;;  %v9040_v58 = vpack.c.bf16 %v11329_v42, %v11328_v45  ;;  %v11335_v36 = vld [vmem:[#allocation13_spill] sm:$0xff]  ;;  %v11337_v42 = vand.u32 4294901760, %v9014_v46  ;;  %v11338_v45 = vand.u32 4294901760, %v9016_v11  ;;  %v11340_v18 = vand.u32 4294901760, %v9019_v14 }
 0x4a1   :  { %11315 = vst [vmem:[#allocation80_spill] sm:$0xff] %v9001_v54  ;;  %v9010_v7 = vpack.c.bf16 %v11317_v41, %v11316_v35  ;;  %v11324_v35 = vld [vmem:[#allocation12_spill] sm:$0xff]  ;;  %v11325_v41 = vand.u32 4294901760, %v8984_v59  ;;  %11334 = vst [vmem:[#allocation89_spill] sm:$0xff] %v9050_v0  ;;  %v11353_v11 = vand.u32 4294901760, %v9050_v0  ;;  %v11358_v46 = vld [vmem:[#allocation18_spill] sm:$0xff] }
 0x4a2   :  { %2470 = vmatmul.mubr.f32.vlgmr.msra.gmra.mrb[2].mxu1 %v8723_v33  ;;  %6747 = vmatpush1.bf16.msra.mxu0 %v9001_v54  ;;  %11330 = vst [vmem:[#allocation12_spill] sm:$0xff] %v9040_v58  ;;  %v9059_v54 = vpack.c.bf16 %v11338_v45, %v11337_v42  ;;  %v9068_v39 = vpack.c.bf16 %v11341_v63, %v11340_v18  ;;  %v9074_v42 = vld [vmem:[#allocation6 + $0x170] sm:$0xff]  ;;  %v9076_v45 = vld [vmem:[#allocation6 + $0x188] sm:$0xff]  ;;  %v9078_v59 = vld [vmem:[#allocation6 + $0x198] sm:$0xff]  ;;  %v11349_v63 = vand.u32 4294901760, %v9044_v13  ;;  %v11386_v33 = vand.u32 4294901760, %v8466_v29 }
 0x4a3   :  { %11318 = vst [vmem:[#allocation81_spill] sm:$0xff] %v9010_v7  ;;  %6623 = vmatpush1.bf16.msra.mxu1 %v11323_v32  ;;  %2572 = vmatprep.mubr.f32.mxu1 %v11230_v48  ;;  %v9031_v57 = vpack.c.bf16 %v11326_v50, %v11325_v41  ;;  %v9046_v50 = vld [vmem:[#allocation6 + $0x150] sm:$0xff]  ;;  %v9048_v41 = vld [vmem:[#allocation6 + $0x168] sm:$0xff]  ;;  %11344 = vst [vmem:[#allocation91_spill] sm:$0xff] %v9074_v42  ;;  %v11362_v0 = vand.u32 4294901760, %v9078_v59  ;;  %v11393_v29 = vand.u32 4294901760, %v8480_v20 }
 0x4a4   :  { %6625 = vmatprep.subr.bf16.mxu1 %v11324_v35  ;;  %6749 = vmatprep.subr.bf16.mxu0 %v9010_v7  ;;  %11332 = vst [vmem:[#allocation87_spill] sm:$0xff] %v9046_v50  ;;  %11333 = vst [vmem:[#allocation88_spill] sm:$0xff] %v9048_v41  ;;  %v11336_v7 = vld [vmem:[#allocation14_spill] sm:$0xff]  ;;  %v11350_v18 = vand.u32 4294901760, %v9046_v50  ;;  %v11352_v14 = vand.u32 4294901760, %v9048_v41  ;;  %v11364_v50 = vld [vmem:[#allocation19_spill] sm:$0xff] }
 0x4a5   :  { %11327 = vst [vmem:[#allocation11_spill] sm:$0xff] %v9031_v57  ;;  %11339 = vst [vmem:[#allocation13_spill] sm:$0xff] %v9059_v54  ;;  %v11400_v20 = vand.u32 4294901760, %v8501_v12  ;;  %v9226_v12 = vld [vmem:[#allocation6 + $0x1b8] sm:$0xff] }
 0x4a6   :  { %6751 = vmatpush1.bf16.msra.mxu0 %v9031_v57  ;;  %11342 = vst [vmem:[#allocation14_spill] sm:$0xff] %v9068_v39  ;;  %11345 = vst [vmem:[#allocation92_spill] sm:$0xff] %v9076_v45  ;;  %v9087_v57 = vpack.c.bf16 %v11350_v18, %v11349_v63  ;;  %v9096_v40 = vpack.c.bf16 %v11353_v11, %v11352_v14  ;;  %v9102_v63 = vld [vmem:[#allocation6 + $0x190] sm:$0xff]  ;;  %v11357_v18 = vld [vmem:[#allocation17_spill] sm:$0xff]  ;;  %v10945_v14 = vand.u32 4294901760, %v9100_v37  ;;  %v11372_v37 = vand.u32 4294901760, %v8346_v10 }
 0x4a7   :  { %6627 = vmatpush1.bf16.msra.mxu1 %v11335_v36  ;;  %6753 = vmatprep.subr.bf16.mxu0 %v9040_v58  ;;  %11346 = vst [vmem:[#allocation93_spill] sm:$0xff] %v9078_v59  ;;  %v11348_v58 = vld [vmem:[#allocation16_spill] sm:$0xff]  ;;  %11356 = vst [vmem:[#allocation95_spill] sm:$0xff] %v9102_v63  ;;  %v10944_v13 = vand.u32 4294901760, %v9102_v63  ;;  %v11373_v63 = vld [vmem:[#allocation27_spill] sm:$0xff]  ;;  %v11382_v10 = vand.u32 4294901760, %v8458_v43 }
 0x4a8   :  { %6629 = vmatprep.subr.bf16.mxu1 %v11336_v7  ;;  %11351 = vst [vmem:[#allocation15_spill] sm:$0xff] %v9087_v57  ;;  %11354 = vst [vmem:[#allocation16_spill] sm:$0xff] %v9096_v40  ;;  %v11388_v43 = vand.u32 4294901760, %v8470_v53  ;;  %v11395_v53 = vand.u32 4294901760, %v8486_v55  ;;  %v11402_v55 = vand.u32 4294901760, %v8508_v28  ;;  %v10989_v28 = vand.u32 4294901760, %v9226_v12 }
 0x4aa   :  { %6755 = vmatpush1.bf16.msra.mxu0 %v9059_v54  ;;  %v10935_v54 = vand.u32 4294901760, %v9076_v45  ;;  %v11376_v45 = vld [vmem:[#allocation20_spill] sm:$0xff] }
 0x4ab   :  { %6631 = vmatpush1.bf16.msra.mxu1 %v11347_v25  ;;  %6757 = vmatprep.subr.bf16.mxu0 %v9068_v39  ;;  %v11360_v39 = vand.u32 4294901760, %v9074_v42  ;;  %v11377_v42 = vand.u32 4294901760, %v11376_v45 }
 0x4ac   :  { %6633 = vmatprep.subr.bf16.mxu1 %v11348_v58  ;;  %v9120_v41 = vpack.c.bf16 %v11362_v0, %v10935_v54  ;;  %v11369_v0 = vld [vmem:[#allocation25_spill] sm:$0xff]  ;;  %v11370_v54 = vld [vmem:[#allocation26_spill] sm:$0xff] }
 0x4ad   :  { %v9111_v11 = vpack.c.bf16 %v11360_v39, %v11359_v49  ;;  %v9129_v39 = vpack.c.bf16 %v10944_v13, %v10945_v14  ;;  %v11367_v49 = vld [vmem:[#allocation23_spill] sm:$0xff]  ;;  %v11374_v13 = vand.u32 4294901760, %v8447_v47  ;;  %v11375_v14 = vand.u32 4294901760, %v8449_v56 }
 0x4ae   :  { %6759 = vmatpush1.bf16.msra.mxu0 %v9087_v57  ;;  %11363 = vst [vmem:[#allocation18_spill] sm:$0xff] %v9120_v41  ;;  %v11365_v57 = vld [vmem:[#allocation22_spill] sm:$0xff]  ;;  %v11383_v47 = vand.u32 4294901760, %v8460_v51  ;;  %v11384_v56 = vand.u32 4294901760, %v8462_v5  ;;  %v11390_v51 = vand.u32 4294901760, %v8474_v9  ;;  %v11391_v5 = vand.u32 4294901760, %v8476_v38 }
 0x4af   :  { %6635 = vmatpush1.bf16.msra.mxu1 %v11357_v18  ;;  %11361 = vst [vmem:[#allocation17_spill] sm:$0xff] %v9111_v11  ;;  %6761 = vmatprep.subr.bf16.mxu0 %v9096_v40  ;;  %11366 = vst [vmem:[#allocation19_spill] sm:$0xff] %v9129_v39  ;;  %v11368_v40 = vld [vmem:[#allocation24_spill] sm:$0xff]  ;;  %v11397_v9 = vand.u32 4294901760, %v8493_v2  ;;  %v11398_v38 = vand.u32 4294901760, %v8495_v19  ;;  %v11404_v2 = vand.u32 4294901760, %v8518_v16 }
 0x4b0   :  { %6637 = vmatprep.subr.bf16.mxu1 %v11358_v46  ;;  %v11405_v19 = vand.u32 4294901760, %v8520_v34  ;;  %v9232_v16 = vld [vmem:[#allocation6 + $0x1b0] sm:$0xff] }
 0x4b2   :  { %6763 = vmatpush1.bf16.msra.mxu0 %v9111_v11  ;;  %v11371_v11 = vand.u32 4294901760, %v8344_v17  ;;  %v11381_v17 = vand.u32 4294901760, %v8456_v26  ;;  %v11387_v26 = vand.u32 4294901760, %v8468_v52  ;;  %v11394_v52 = vand.u32 4294901760, %v8482_v21 }
 0x4b3   :  { %6639 = vmatpush1.bf16.msra.mxu1 %v11364_v50  ;;  %6765 = vmatprep.subr.bf16.mxu0 %v9120_v41  ;;  %v6654_v41 = vpack.c.bf16 %v11375_v14, %v11374_v13  ;;  %v6674_v14 = vpack.c.bf16 %v11398_v38, %v11397_v9  ;;  %v11401_v21 = vand.u32 4294901760, %v8505_v24 }
 0x4b4   :  { %6641 = vmatprep.subr.bf16.mxu1 %v11365_v57  ;;  %v6652_v59 = vpack.c.bf16 %v11372_v37, %v11371_v11  ;;  %v6658_v37 = vpack.c.bf16 %v11382_v10, %v11381_v17  ;;  %v6664_v13 = vpack.c.bf16 %v11388_v43, %v11387_v26  ;;  %v6670_v45 = vpack.c.bf16 %v11394_v52, %v11393_v29  ;;  %v9301_v26 = vld [vmem:[#allocation6 + $0x1e0] sm:$0xff]  ;;  %v9303_v43 = vld [vmem:[#allocation6 + $0x1f0] sm:$0xff] }
 0x4b5   :  { %v6678_v17 = vpack.c.bf16 %v11402_v55, %v11401_v21  ;;  %v11424_v21 = vld [vmem:[#allocation33_spill] sm:$0xff] }
 0x4b6   :  { %6767 = vmatpush1.bf16.msra.mxu0 %v9129_v39  ;;  %v11378_v39 = vld [vmem:[#allocation21_spill] sm:$0xff]  ;;  %v11425_v55 = vand.u32 4294901760, %v11424_v21 }
 0x4b7   :  { %6643 = vmatpush1.bf16.msra.mxu1 %v11367_v49  ;;  %v11379_v3 = vand.u32 4294901760, %v11378_v39 }
 0x4b8   :  { %6645 = vmatprep.subr.bf16.mxu1 %v11368_v40 }
 0x4b9   :  { %v6656_v60 = vpack.c.bf16 %v11379_v3, %v11377_v42  ;;  %v11385_v3 = vand.u32 4294901760, %v8464_v30  ;;  %v11392_v30 = vand.u32 4294901760, %v8478_v44  ;;  %v11399_v44 = vand.u32 4294901760, %v8497_v22 }
 0x4ba   :  { %v11406_v22 = vand.u32 4294901760, %v8525_v61  ;;  %v10985_v61 = vand.u32 4294901760, %v9232_v16 }
 0x4bb   :  { %6647 = vmatpush1.bf16.msra.mxu1 %v11369_v0  ;;  %v6668_v42 = vpack.c.bf16 %v11392_v30, %v11391_v5  ;;  %v6676_v39 = vpack.c.bf16 %v11400_v20, %v11399_v44  ;;  %v11422_v44 = vld [vmem:[#allocation32_spill] sm:$0xff] }
 0x4bc   :  { %6649 = vmatprep.subr.bf16.mxu1 %v11370_v54  ;;  %v11423_v20 = vand.u32 4294901760, %v11422_v44 }
 0x4bf   :  { %6651 = vmatpush1.bf16.msra.mxu1 %v11373_v63 }
 0x4c0   :  { %6653 = vmatprep.subr.bf16.mxu1 %v6652_v59  ;;  %v6660_v59 = vpack.c.bf16 %v11384_v56, %v11383_v47  ;;  %v9286_v47 = vld [vmem:[#allocation6 + $0x1f8] sm:$0xff]  ;;  %v11415_v56 = vand.u32 4294901760, %v8746_v62 }
 0x4c2   :  { %2576 = vmatmul.mubr.f32.vlgmr.msra.gmra.mrb[2].mxu1 %v11380_v8  ;;  %v6662_v8 = vpack.c.bf16 %v11386_v33, %v11385_v3 }
 0x4c3   :  { %6655 = vmatpush1.bf16.msra.mxu1 %v6654_v41  ;;  %2742 = vmatprep.mubr.f32.mxu1 %v11230_v48 }
 0x4c4   :  { %6657 = vmatprep.subr.bf16.mxu1 %v6656_v60  ;;  %v11389_v60 = vand.u32 4294901760, %v8472_v15  ;;  %v11396_v15 = vand.u32 4294901760, %v8488_v6  ;;  %v11403_v6 = vand.u32 4294901760, %v8510_v1  ;;  %v9230_v1 = vld [vmem:[#allocation6 + $0x1a0] sm:$0xff] }
 0x4c5   :  { %v10987_v34 = vand.u32 4294901760, %v9230_v1 }
 0x4c6   :  { %v6666_v41 = vpack.c.bf16 %v11390_v51, %v11389_v60  ;;  %v6672_v11 = vpack.c.bf16 %v11396_v15, %v11395_v53  ;;  %v6680_v10 = vpack.c.bf16 %v11404_v2, %v11403_v6  ;;  %v10974_v60 = vand.u32 4294901760, %v9301_v26  ;;  %v11420_v15 = vld [vmem:[#allocation31_spill] sm:$0xff] }
 0x4c7   :  { %6659 = vmatpush1.bf16.msra.mxu1 %v6658_v37  ;;  %v6682_v37 = vpack.c.bf16 %v11406_v22, %v11405_v19  ;;  %v10973_v51 = vand.u32 4294901760, %v9303_v43  ;;  %v11426_v19 = vld [vmem:[#allocation34_spill] sm:$0xff] }
 0x4c8   :  { %6661 = vmatprep.subr.bf16.mxu1 %v6660_v59  ;;  %v11416_v59 = vld [vmem:[#allocation30_spill] sm:$0xff]  ;;  %v11427_v22 = vand.u32 4294901760, %v11426_v19 }
 0x4c9   :  { %v11417_v3 = vand.u32 4294901760, %v11416_v59  ;;  %v9328_v52 = vpack.c.bf16 %v10973_v51, %v10974_v60 }
 0x4cb   :  { %6663 = vmatpush1.bf16.msra.mxu1 %v6662_v8  ;;  %v10976_v8 = vand.u32 4294901760, %v9286_v47  ;;  %11419 = vst [vmem:[#allocation21_spill] sm:$0xff] %v9328_v52 }
 0x4cc   :  { %6665 = vmatprep.subr.bf16.mxu1 %v6664_v13 }
 0x4cf   :  { %6667 = vmatpush1.bf16.msra.mxu1 %v6666_v41 }
 0x4d0   :  { %6669 = vmatprep.subr.bf16.mxu1 %v6668_v42 }
 0x4d3   :  { %6671 = vmatpush1.bf16.msra.mxu1 %v6670_v45 }
 0x4d4   :  { %6673 = vmatprep.subr.bf16.mxu1 %v6672_v11  ;;  %v11421_v11 = vand.u32 4294901760, %v11420_v15 }
 0x4d6   :  { %v9339_v9 = vsub.f32 %v11420_v15, %v11421_v11 }
 0x4d7   :  { %6675 = vmatpush1.bf16.msra.mxu1 %v6674_v14 }
 0x4d8   :  { %6677 = vmatprep.subr.bf16.mxu1 %v6676_v39  ;;  %v9345_v39 = vsub.f32 %v11422_v44, %v11423_v20  ;;  %v11435_v20 = vld [vmem:[#allocation38_spill] sm:$0xff] }
 0x4db   :  { %6679 = vmatpush1.bf16.msra.mxu1 %v6678_v17  ;;  %v9350_v17 = vsub.f32 %v11424_v21, %v11425_v55  ;;  %v11436_v21 = vand.u32 4294901760, %v11435_v20 }
 0x4dc   :  { %6681 = vmatprep.subr.bf16.mxu1 %v6680_v10  ;;  %v10963_v10 = vand.u32 4294901760, %v9339_v9 }
 0x4dd   :  { %v9386_v55 = vsub.f32 %v11435_v20, %v11436_v21 }
 0x4df   :  { %6683 = vmatpush1.bf16.msra.mxu1 %v6682_v37  ;;  %v9357_v37 = vsub.f32 %v11426_v19, %v11427_v22  ;;  %11437 = vst [vmem:[#allocation33_spill] sm:$0xff] %v9386_v55  ;;  %v11438_v22 = vld [vmem:[#allocation39_spill] sm:$0xff]  ;;  %v10969_v20 = vand.u32 4294901760, %v9386_v55 }
 0x4e0   :  { %6685 = vmatprep.subr.bf16.mxu1 %v8342_v4  ;;  %v9224_v4 = vld [vmem:[#allocation6 + $0x1a8] sm:$0xff] }
 0x4e1   :  { %v10990_v24 = vand.u32 4294901760, %v9224_v4  ;;  %11428 = vst [vmem:[#allocation30_spill] sm:$0xff] %v9357_v37 }
 0x4e2   :  { %2744 = vmatmul.mubr.f32.vlgmr.msra.gmra.mrb[2].mxu1 %v8720_v23 }
 0x4e3   :  { %6687 = vmatpush1.bf16.msra.mxu1 %v11323_v32  ;;  %2846 = vmatprep.mubr.f32.mxu1 %v11230_v48  ;;  %v9246_v48 = vpack.c.bf16 %v10985_v61, %v10987_v34 }
 0x4e4   :  { %6689 = vmatprep.subr.bf16.mxu1 %v11324_v35  ;;  %v11410_v35 = vand.u32 4294901760, %v8742_v31 }
 0x4e5   :  { %11408 = vst [vmem:[#allocation23_spill] sm:$0xff] %v9246_v48 }
 0x4e7   :  { %6691 = vmatpush1.bf16.msra.mxu1 %v11335_v36 }
 0x4e8   :  { %6693 = vmatprep.subr.bf16.mxu1 %v11336_v7 }
 0x4eb   :  { %6695 = vmatpush1.bf16.msra.mxu1 %v11347_v25  ;;  %v9250_v25 = vld [vmem:[#allocation6 + $0x1d8] sm:$0xff] }
 0x4ec   :  { %6697 = vmatprep.subr.bf16.mxu1 %v11348_v58  ;;  %v10983_v36 = vand.u32 4294901760, %v9250_v25 }
 0x4ef   :  { %6699 = vmatpush1.bf16.msra.mxu1 %v11357_v18 }
 0x4f0   :  { %6701 = vmatprep.subr.bf16.mxu1 %v11358_v46  ;;  %v9257_v46 = vld [vmem:[#allocation6 + $0x1d0] sm:$0xff] }
 0x4f3   :  { %6703 = vmatpush1.bf16.msra.mxu1 %v11364_v50  ;;  %v9271_v50 = vsub.f32 %v8742_v31, %v11410_v35  ;;  %v9291_v31 = vsub.f32 %v8746_v62, %v11415_v56  ;;  %v10960_v56 = vand.u32 4294901760, %v9350_v17 }
 0x4f4   :  { %6705 = vmatprep.subr.bf16.mxu1 %v11365_v57  ;;  %v10978_v57 = vand.u32 4294901760, %v9257_v46 }
 0x4f5   :  { %11411 = vst [vmem:[#allocation25_spill] sm:$0xff] %v9271_v50  ;;  %v10970_v13 = vand.u32 4294901760, %v9271_v50  ;;  %v10966_v41 = vand.u32 4294901760, %v9291_v31  ;;  %v3032_v11 = vsub.f32 %v9350_v17, %v10960_v56 }
 0x4f7   :  { %6707 = vmatpush1.bf16.msra.mxu1 %v11367_v49  ;;  %v3002_v42 = vsub.f32 %v9271_v50, %v10970_v13  ;;  %v3008_v45 = vsub.f32 %v9291_v31, %v10966_v41 }
 0x4f8   :  { %6709 = vmatprep.subr.bf16.mxu1 %v11368_v40  ;;  %v9248_v40 = vld [vmem:[#allocation6 + $0x1c8] sm:$0xff] }
 0x4f9   :  { %v10984_v58 = vand.u32 4294901760, %v9248_v40  ;;  %v3003_v38 = vand.u32 4294901760, %v3002_v42  ;;  %v3009_v6 = vand.u32 4294901760, %v3008_v45  ;;  %v10961_v42 = vand.u32 4294901760, %v9357_v37 }
 0x4fb   :  { %6711 = vmatpush1.bf16.msra.mxu1 %v11369_v0  ;;  %v9266_v32 = vpack.c.bf16 %v10983_v36, %v10984_v58  ;;  %v9284_v0 = vld [vmem:[#allocation6 + $0x1e8] sm:$0xff] }
 0x4fc   :  { %6713 = vmatprep.subr.bf16.mxu1 %v11370_v54  ;;  %v9255_v54 = vld [vmem:[#allocation6 + $0x1c0] sm:$0xff]  ;;  %v10977_v33 = vand.u32 4294901760, %v9284_v0 }
 0x4fd   :  { %v10980_v7 = vand.u32 4294901760, %v9255_v54  ;;  %11409 = vst [vmem:[#allocation24_spill] sm:$0xff] %v9266_v32 }
 0x4fe   :  { %v9316_v30 = vpack.c.bf16 %v10976_v8, %v10977_v33  ;;  %v11459_v8 = vld [vmem:[#allocation52_spill] sm:$0xff] }
 0x4ff   :  { %6715 = vmatpush1.bf16.msra.mxu1 %v11373_v63  ;;  %v11412_v63 = vand.u32 4294901760, %v8744_v27  ;;  %v9282_v49 = vpack.c.bf16 %v10978_v57, %v10980_v7  ;;  %v11460_v33 = vand.u32 4294901760, %v11459_v8 }
 0x500   :  { %11418 = vst [vmem:[#allocation20_spill] sm:$0xff] %v9316_v30 }
 0x501   :  { %v9276_v18 = vsub.f32 %v8744_v27, %v11412_v63  ;;  %11414 = vst [vmem:[#allocation27_spill] sm:$0xff] %v9282_v49  ;;  %v9296_v27 = vsub.f32 %v11416_v59, %v11417_v3  ;;  %v10962_v63 = vand.u32 4294901760, %v9345_v39  ;;  %v3026_v3 = vsub.f32 %v9339_v9, %v10963_v10 }
 0x502   :  { %2848 = vmatmul.mubr.f32.vlgmr.msra.gmra.mrb[2].mxu1 %v8720_v23  ;;  %v9240_v23 = vpack.c.bf16 %v10989_v28, %v10990_v24  ;;  %v9471_v57 = vsub.f32 %v11459_v8, %v11460_v33 }
 0x503   :  { %11413 = vst [vmem:[#allocation26_spill] sm:$0xff] %v9276_v18  ;;  %v10968_v62 = vand.u32 4294901760, %v9276_v18  ;;  %v10965_v5 = vand.u32 4294901760, %v9296_v27  ;;  %v3038_v15 = vsub.f32 %v9345_v39, %v10962_v63  ;;  %v11441_v63 = vld [vmem:[#allocation42_spill] sm:$0xff] }
 0x504   :  { %11407 = vst [vmem:[#allocation22_spill] sm:$0xff] %v9240_v23  ;;  %6769 = vmatprep.subr.bf16.mxu0 %v9240_v23  ;;  %v11442_v10 = vand.u32 4294901760, %v11441_v63 }
 0x505   :  { %6771 = vmatpush1.bf16.msra.mxu0 %v9246_v48  ;;  %v3014_v29 = vsub.f32 %v9276_v18, %v10968_v62  ;;  %v3020_v53 = vsub.f32 %v9296_v27, %v10965_v5  ;;  %v11447_v62 = vld [vmem:[#allocation46_spill] sm:$0xff] }
 0x506   :  { %6773 = vmatprep.subr.bf16.mxu0 %v9266_v32  ;;  %11461 = vst [vmem:[#allocation46_spill] sm:$0xff] %v9471_v57 }
 0x507   :  { %v3015_v14 = vand.u32 4294901760, %v3014_v29  ;;  %v3021_v2 = vand.u32 4294901760, %v3020_v53  ;;  %v11429_v29 = vld [vmem:[#allocation35_spill] sm:$0xff] }
 0x508   :  { %v11430_v45 = vand.u32 4294901760, %v11429_v29 }
 0x509   :  { %6775 = vmatpush1.bf16.msra.mxu0 %v9282_v49  ;;  %v6780_v35 = vpack.c.bf16 %v3015_v14, %v3003_v38  ;;  %v9361_v59 = vpack.c.bf16 %v3021_v2, %v3009_v6  ;;  %v11432_v38 = vld [vmem:[#allocation37_spill] sm:$0xff]  ;;  %v3027_v6 = vand.u32 4294901760, %v3026_v3  ;;  %v3044_v2 = vsub.f32 %v9357_v37, %v10961_v42 }
 0x50a   :  { %6777 = vmatprep.subr.bf16.mxu0 %v9316_v30  ;;  %v9370_v53 = vsub.f32 %v11429_v29, %v11430_v45  ;;  %v11433_v14 = vand.u32 4294901760, %v11432_v38  ;;  %v11439_v29 = vand.u32 4294901760, %v11438_v22  ;;  %v11486_v49 = vld [vmem:[#allocation65_spill] sm:$0xff] }
 0x50b   :  { %7165 = vmatprep.subr.bf16.mxu1 %v6780_v35  ;;  %v3045_v3 = vand.u32 4294901760, %v3044_v2  ;;  %v11444_v2 = vld [vmem:[#allocation43_spill] sm:$0xff]  ;;  %v11487_v32 = vand.u32 4294901760, %v11486_v49 }
 0x50c   :  { %11431 = vst [vmem:[#allocation31_spill] sm:$0xff] %v9370_v53  ;;  %v9381_v44 = vsub.f32 %v11432_v38, %v11433_v14  ;;  %v10964_v19 = vand.u32 4294901760, %v9370_v53  ;;  %v9395_v45 = vsub.f32 %v11438_v22, %v11439_v29  ;;  %v3039_v38 = vand.u32 4294901760, %v3038_v15  ;;  %7167 = vmatpush1.bf16.msra.mxu1 %v9361_v59 }
 0x50d   :  { %6779 = vmatpush1.bf16.msra.mxu0 %v9328_v52  ;;  %v3033_v14 = vand.u32 4294901760, %v3032_v11  ;;  %v9407_v22 = vsub.f32 %v11441_v63, %v11442_v10  ;;  %v3056_v11 = vsub.f32 %v9386_v55, %v10969_v20  ;;  %v11445_v29 = vand.u32 4294901760, %v11444_v2  ;;  %v11477_v52 = vld [vmem:[#allocation60_spill] sm:$0xff] }
 0x50e   :  { %6781 = vmatprep.subr.bf16.mxu0 %v6780_v35  ;;  %11434 = vst [vmem:[#allocation32_spill] sm:$0xff] %v9381_v44  ;;  %11440 = vst [vmem:[#allocation34_spill] sm:$0xff] %v9395_v45  ;;  %v10967_v56 = vand.u32 4294901760, %v9381_v44  ;;  %v3050_v21 = vsub.f32 %v9370_v53, %v10964_v19  ;;  %v10971_v42 = vand.u32 4294901760, %v9395_v45  ;;  %v9409_v35 = vpack.c.bf16 %v3039_v38, %v3027_v6 }
 0x50f   :  { %11443 = vst [vmem:[#allocation35_spill] sm:$0xff] %v9407_v22  ;;  %v9420_v19 = vsub.f32 %v11444_v2, %v11445_v29  ;;  %v9422_v5 = vpack.c.bf16 %v3045_v3, %v3033_v14  ;;  %v10972_v63 = vand.u32 4294901760, %v9407_v22  ;;  %v3057_v38 = vand.u32 4294901760, %v3056_v11 }
 0x510   :  { %v3062_v15 = vsub.f32 %v9381_v44, %v10967_v56  ;;  %v3051_v41 = vand.u32 4294901760, %v3050_v21  ;;  %v3068_v10 = vsub.f32 %v9395_v45, %v10971_v42  ;;  %v11448_v20 = vand.u32 4294901760, %v11447_v62  ;;  %7169 = vmatprep.subr.bf16.mxu1 %v9409_v35  ;;  %v11450_v21 = vld [vmem:[#allocation47_spill] sm:$0xff] }
 0x511   :  { %11446 = vst [vmem:[#allocation37_spill] sm:$0xff] %v9420_v19  ;;  %v10975_v56 = vand.u32 4294901760, %v9420_v19  ;;  %v3074_v3 = vsub.f32 %v9407_v22, %v10972_v63  ;;  %v11451_v2 = vand.u32 4294901760, %v11450_v21  ;;  %7171 = vmatpush1.bf16.msra.mxu1 %v9422_v5  ;;  %v11456_v63 = vld [vmem:[#allocation49_spill] sm:$0xff]  ;;  %v11478_v30 = vand.u32 4294901760, %v11477_v52 }
 0x512   :  { %v3063_v6 = vand.u32 4294901760, %v3062_v15  ;;  %v9432_v13 = vsub.f32 %v11447_v62, %v11448_v20  ;;  %v3069_v14 = vand.u32 4294901760, %v3068_v10  ;;  %v11453_v15 = vld [vmem:[#allocation48_spill] sm:$0xff]  ;;  %v11457_v51 = vand.u32 4294901760, %v11456_v63 }
 0x513   :  { %v9441_v29 = vsub.f32 %v11450_v21, %v11451_v2  ;;  %v11454_v11 = vand.u32 4294901760, %v11453_v15  ;;  %v3086_v20 = vsub.f32 %v9420_v19, %v10975_v56  ;;  %v3075_v60 = vand.u32 4294901760, %v3074_v3  ;;  %v11546_v19 = vld [vmem:[#allocation90_spill] sm:$0xff] }
 0x514   :  { %11449 = vst [vmem:[#allocation38_spill] sm:$0xff] %v9432_v13  ;;  %v9449_v62 = vpack.c.bf16 %v3063_v6, %v3051_v41  ;;  %v10979_v10 = vand.u32 4294901760, %v9432_v13  ;;  %v9458_v21 = vsub.f32 %v11456_v63, %v11457_v51  ;;  %v9460_v2 = vpack.c.bf16 %v3069_v14, %v3057_v38  ;;  %v11462_v38 = vld [vmem:[#allocation53_spill] sm:$0xff] }
 0x515   :  { %11452 = vst [vmem:[#allocation39_spill] sm:$0xff] %v9441_v29  ;;  %v9446_v42 = vsub.f32 %v11453_v15, %v11454_v11  ;;  %v10981_v15 = vand.u32 4294901760, %v9441_v29  ;;  %v3087_v41 = vand.u32 4294901760, %v3086_v20  ;;  %v11463_v14 = vand.u32 4294901760, %v11462_v38  ;;  %v11465_v20 = vld [vmem:[#allocation54_spill] sm:$0xff] }
 0x516   :  { %11458 = vst [vmem:[#allocation43_spill] sm:$0xff] %v9458_v21  ;;  %v3080_v6 = vsub.f32 %v9432_v13, %v10979_v10  ;;  %v10986_v56 = vand.u32 4294901760, %v9458_v21  ;;  %7173 = vmatprep.subr.bf16.mxu1 %v9449_v62  ;;  %v11466_v10 = vand.u32 4294901760, %v11465_v20 }
 0x517   :  { %11455 = vst [vmem:[#allocation42_spill] sm:$0xff] %v9446_v42  ;;  %v10982_v11 = vand.u32 4294901760, %v9446_v42  ;;  %v3092_v51 = vsub.f32 %v9441_v29, %v10981_v15  ;;  %v9483_v3 = vsub.f32 %v11462_v38, %v11463_v14  ;;  %7175 = vmatpush1.bf16.msra.mxu1 %v9460_v2  ;;  %v9491_v8 = vpack.c.bf16 %v3087_v41, %v3075_v60  ;;  %v11468_v60 = vld [vmem:[#allocation55_spill] sm:$0xff] }
 0x518   :  { %v9488_v33 = vsub.f32 %v11465_v20, %v11466_v10  ;;  %v3081_v7 = vand.u32 4294901760, %v3080_v6  ;;  %v3110_v15 = vsub.f32 %v9458_v21, %v10986_v56  ;;  %v11469_v41 = vand.u32 4294901760, %v11468_v60  ;;  %v11471_v20 = vld [vmem:[#allocation58_spill] sm:$0xff] }
 0x519   :  { %v3098_v63 = vsub.f32 %v9446_v42, %v10982_v11  ;;  %11464 = vst [vmem:[#allocation47_spill] sm:$0xff] %v9483_v3  ;;  %v10988_v11 = vand.u32 4294901760, %v9471_v57  ;;  %v3093_v36 = vand.u32 4294901760, %v3092_v51  ;;  %v10991_v38 = vand.u32 4294901760, %v9483_v3  ;;  %7177 = vmatprep.subr.bf16.mxu1 %v9491_v8 }
 0x51a   :  { %11467 = vst [vmem:[#allocation48_spill] sm:$0xff] %v9488_v33  ;;  %v10996_v14 = vand.u32 4294901760, %v9488_v33  ;;  %v3111_v61 = vand.u32 4294901760, %v3110_v15  ;;  %v9505_v6 = vsub.f32 %v11468_v60, %v11469_v41  ;;  %v11472_v56 = vand.u32 4294901760, %v11471_v20 }
 0x51b   :  { %v3099_v58 = vand.u32 4294901760, %v3098_v63  ;;  %v3104_v10 = vsub.f32 %v9471_v57, %v10988_v11  ;;  %v9513_v51 = vpack.c.bf16 %v3093_v36, %v3081_v7  ;;  %v3116_v15 = vsub.f32 %v9483_v3, %v10991_v38  ;;  %v11474_v11 = vld [vmem:[#allocation59_spill] sm:$0xff] }
 0x51c   :  { %11470 = vst [vmem:[#allocation49_spill] sm:$0xff] %v9505_v6  ;;  %v9510_v34 = vsub.f32 %v11471_v20, %v11472_v56  ;;  %v3122_v63 = vsub.f32 %v9488_v33, %v10996_v14  ;;  %v11475_v60 = vand.u32 4294901760, %v11474_v11  ;;  %v10997_v20 = vand.u32 4294901760, %v9505_v6 }
 0x51d   :  { %v9526_v28 = vpack.c.bf16 %v3111_v61, %v3099_v58  ;;  %v3105_v56 = vand.u32 4294901760, %v3104_v10  ;;  %v3117_v7 = vand.u32 4294901760, %v3116_v15  ;;  %v9534_v14 = vsub.f32 %v11477_v52, %v11478_v30  ;;  %7179 = vmatpush1.bf16.msra.mxu1 %v9513_v51 }
 0x51e   :  { %11473 = vst [vmem:[#allocation52_spill] sm:$0xff] %v9510_v34  ;;  %v9524_v41 = vsub.f32 %v11474_v11, %v11475_v60  ;;  %v10998_v36 = vand.u32 4294901760, %v9510_v34  ;;  %v3123_v24 = vand.u32 4294901760, %v3122_v63  ;;  %v3134_v61 = vsub.f32 %v9505_v6, %v10997_v20  ;;  %v11480_v11 = vld [vmem:[#allocation61_spill] sm:$0xff]  ;;  %v11483_v63 = vld [vmem:[#allocation64_spill] sm:$0xff]  ;;  %v11496_v6 = vld [vmem:[#allocation70_spill] sm:$0xff] }
 0x51f   :  { %11479 = vst [vmem:[#allocation54_spill] sm:$0xff] %v9534_v14  ;;  %v11481_v10 = vand.u32 4294901760, %v11480_v11  ;;  %v11484_v60 = vand.u32 4294901760, %v11483_v63  ;;  %7181 = vmatprep.subr.bf16.mxu1 %v9526_v28  ;;  %v9554_v52 = vpack.c.bf16 %v3117_v7, %v3105_v56 }
 0x520   :  { %11476 = vst [vmem:[#allocation53_spill] sm:$0xff] %v9524_v41  ;;  %v11007_v38 = vand.u32 4294901760, %v9524_v41  ;;  %v3128_v58 = vsub.f32 %v9510_v34, %v10998_v36  ;;  %v11012_v36 = vand.u32 4294901760, %v9534_v14 }
 0x521   :  { %v9546_v15 = vsub.f32 %v11480_v11, %v11481_v10  ;;  %v9551_v30 = vsub.f32 %v11483_v63, %v11484_v60  ;;  %v9563_v11 = vsub.f32 %v11486_v49, %v11487_v32  ;;  %v3135_v10 = vand.u32 4294901760, %v3134_v61  ;;  %7183 = vmatpush1.bf16.msra.mxu1 %v9554_v52  ;;  %v11492_v61 = vld [vmem:[#allocation67_spill] sm:$0xff] }
 0x522   :  { %v3140_v20 = vsub.f32 %v9524_v41, %v11007_v38  ;;  %v3129_v48 = vand.u32 4294901760, %v3128_v58  ;;  %v3146_v56 = vsub.f32 %v9534_v14, %v11012_v36  ;;  %v11489_v38 = vld [vmem:[#allocation66_spill] sm:$0xff]  ;;  %v11493_v58 = vand.u32 4294901760, %v11492_v61 }
 0x523   :  { %11482 = vst [vmem:[#allocation55_spill] sm:$0xff] %v9546_v15  ;;  %11485 = vst [vmem:[#allocation58_spill] sm:$0xff] %v9551_v30  ;;  %v11015_v63 = vand.u32 4294901760, %v9546_v15  ;;  %v11020_v60 = vand.u32 4294901760, %v9551_v30  ;;  %v11490_v41 = vand.u32 4294901760, %v11489_v38  ;;  %v9577_v32 = vpack.c.bf16 %v3135_v10, %v3123_v24 }
 0x524   :  { %11488 = vst [vmem:[#allocation59_spill] sm:$0xff] %v9563_v11  ;;  %v3141_v23 = vand.u32 4294901760, %v3140_v20  ;;  %v9588_v36 = vsub.f32 %v11492_v61, %v11493_v58 }
 0x525   :  { %v9574_v34 = vsub.f32 %v11489_v38, %v11490_v41  ;;  %v3158_v49 = vsub.f32 %v9546_v15, %v11015_v63  ;;  %v3152_v20 = vsub.f32 %v9551_v30, %v11020_v60  ;;  %v3147_v38 = vand.u32 4294901760, %v3146_v56  ;;  %7185 = vmatprep.subr.bf16.mxu1 %v9577_v32  ;;  %v11499_v56 = vld [vmem:[#allocation71_spill] sm:$0xff] }
 0x526   :  { %11494 = vst [vmem:[#allocation61_spill] sm:$0xff] %v9588_v36  ;;  %v9590_v7 = vpack.c.bf16 %v3141_v23, %v3129_v48  ;;  %v11495_v41 = vand.u32 4294901760, %v9563_v11  ;;  %v11028_v15 = vand.u32 4294901760, %v9588_v36  ;;  %v11497_v60 = vand.u32 4294901760, %v11496_v6 }
 0x527   :  { %11491 = vst [vmem:[#allocation60_spill] sm:$0xff] %v9574_v34  ;;  %v11023_v10 = vand.u32 4294901760, %v9574_v34  ;;  %v3159_v14 = vand.u32 4294901760, %v3158_v49  ;;  %v3153_v63 = vand.u32 4294901760, %v3152_v20  ;;  %v11500_v61 = vand.u32 4294901760, %v11499_v56  ;;  %v11502_v49 = vld [vmem:[#allocation72_spill] sm:$0xff] }
 0x528   :  { %v3164_v24 = vsub.f32 %v9563_v11, %v11495_v41  ;;  %v9600_v30 = vsub.f32 %v11496_v6, %v11497_v60  ;;  %v11503_v20 = vand.u32 4294901760, %v11502_v49  ;;  %7187 = vmatpush1.bf16.msra.mxu1 %v9590_v7  ;;  %v3182_v60 = vsub.f32 %v9588_v36, %v11028_v15  ;;  %v11508_v36 = vld [vmem:[#allocation76_spill] sm:$0xff] }
 0x529   :  { %v3170_v48 = vsub.f32 %v9574_v34, %v11023_v10  ;;  %v9609_v58 = vsub.f32 %v11499_v56, %v11500_v61  ;;  %v9617_v6 = vpack.c.bf16 %v3159_v14, %v3147_v38  ;;  %v11505_v10 = vld [vmem:[#allocation73_spill] sm:$0xff]  ;;  %v11509_v33 = vand.u32 4294901760, %v11508_v36 }
 0x52a   :  { %11498 = vst [vmem:[#allocation64_spill] sm:$0xff] %v9600_v30  ;;  %v3165_v23 = vand.u32 4294901760, %v3164_v24  ;;  %v9614_v41 = vsub.f32 %v11502_v49, %v11503_v20  ;;  %v11035_v24 = vand.u32 4294901760, %v9600_v30  ;;  %v11506_v34 = vand.u32 4294901760, %v11505_v10 }
 0x52b   :  { %11501 = vst [vmem:[#allocation65_spill] sm:$0xff] %v9609_v58  ;;  %v3171_v11 = vand.u32 4294901760, %v3170_v48  ;;  %v11036_v49 = vand.u32 4294901760, %v9609_v58  ;;  %v3183_v14 = vand.u32 4294901760, %v3182_v60  ;;  %v9639_v3 = vsub.f32 %v11508_v36, %v11509_v33  ;;  %7189 = vmatprep.subr.bf16.mxu1 %v9617_v6  ;;  %v11514_v60 = vld [vmem:[#allocation78_spill] sm:$0xff] }
 0x52c   :  { %11504 = vst [vmem:[#allocation66_spill] sm:$0xff] %v9614_v41  ;;  %v9626_v56 = vsub.f32 %v11505_v10, %v11506_v34  ;;  %v9628_v61 = vpack.c.bf16 %v3165_v23, %v3153_v63  ;;  %v11039_v20 = vand.u32 4294901760, %v9614_v41  ;;  %v3176_v38 = vsub.f32 %v9600_v30, %v11035_v24  ;;  %v11511_v10 = vld [vmem:[#allocation77_spill] sm:$0xff] }
 0x52d   :  { %11510 = vst [vmem:[#allocation70_spill] sm:$0xff] %v9639_v3  ;;  %v3188_v34 = vsub.f32 %v9609_v58, %v11036_v49  ;;  %v11512_v23 = vand.u32 4294901760, %v11511_v10  ;;  %v11515_v24 = vand.u32 4294901760, %v11514_v60  ;;  %v9659_v36 = vpack.c.bf16 %v3183_v14, %v3171_v11  ;;  %v11518_v11 = vld [vmem:[#allocation79_spill] sm:$0xff] }
 0x52e   :  { %11507 = vst [vmem:[#allocation67_spill] sm:$0xff] %v9626_v56  ;;  %v3194_v63 = vsub.f32 %v9614_v41, %v11039_v20  ;;  %7191 = vmatpush1.bf16.msra.mxu1 %v9628_v61  ;;  %v3177_v15 = vand.u32 4294901760, %v3176_v38  ;;  %v11517_v49 = vand.u32 4294901760, %v9626_v56  ;;  %v11048_v20 = vand.u32 4294901760, %v9639_v3 }
 0x52f   :  { %v9651_v48 = vsub.f32 %v11511_v10, %v11512_v23  ;;  %v9656_v33 = vsub.f32 %v11514_v60, %v11515_v24  ;;  %v3189_v41 = vand.u32 4294901760, %v3188_v34  ;;  %v11519_v14 = vand.u32 4294901760, %v11518_v11  ;;  %v11521_v60 = vld [vmem:[#allocation82_spill] sm:$0xff]  ;;  %7193 = vmatprep.subr.bf16.mxu1 %v9659_v36 }
 0x530   :  { %v3206_v58 = vsub.f32 %v9626_v56, %v11517_v49  ;;  %v3195_v30 = vand.u32 4294901760, %v3194_v63  ;;  %v3200_v24 = vsub.f32 %v9639_v3, %v11048_v20  ;;  %v11522_v49 = vand.u32 4294901760, %v11521_v60  ;;  %v11524_v20 = vld [vmem:[#allocation83_spill] sm:$0xff] }
 0x531   :  { %11513 = vst [vmem:[#allocation71_spill] sm:$0xff] %v9651_v48  ;;  %11516 = vst [vmem:[#allocation72_spill] sm:$0xff] %v9656_v33  ;;  %v11053_v10 = vand.u32 4294901760, %v9651_v48  ;;  %v11058_v23 = vand.u32 4294901760, %v9656_v33  ;;  %v9673_v38 = vsub.f32 %v11518_v11, %v11519_v14  ;;  %v9681_v34 = vpack.c.bf16 %v3189_v41, %v3177_v15 }
 0x532   :  { %v3207_v57 = vand.u32 4294901760, %v3206_v58  ;;  %v9678_v56 = vsub.f32 %v11521_v60, %v11522_v49  ;;  %v11525_v11 = vand.u32 4294901760, %v11524_v20  ;;  %v3201_v60 = vand.u32 4294901760, %v3200_v24 }
 0x533   :  { %11520 = vst [vmem:[#allocation73_spill] sm:$0xff] %v9673_v38  ;;  %v3212_v58 = vsub.f32 %v9651_v48, %v11053_v10  ;;  %v3218_v63 = vsub.f32 %v9656_v33, %v11058_v23  ;;  %v11059_v49 = vand.u32 4294901760, %v9673_v38  ;;  %v11527_v48 = vld [vmem:[#allocation84_spill] sm:$0xff]  ;;  %7195 = vmatpush1.bf16.msra.mxu1 %v9681_v34 }
 0x534   :  { %11523 = vst [vmem:[#allocation76_spill] sm:$0xff] %v9678_v56  ;;  %v9692_v14 = vsub.f32 %v11524_v20, %v11525_v11  ;;  %v9694_v3 = vpack.c.bf16 %v3207_v57, %v3195_v30  ;;  %v11060_v15 = vand.u32 4294901760, %v9678_v56  ;;  %v11528_v42 = vand.u32 4294901760, %v11527_v48  ;;  %v11530_v20 = vld [vmem:[#allocation85_spill] sm:$0xff] }
 0x535   :  { %v3213_v41 = vand.u32 4294901760, %v3212_v58  ;;  %v3219_v21 = vand.u32 4294901760, %v3218_v63  ;;  %v3230_v57 = vsub.f32 %v9673_v38, %v11059_v49  ;;  %v11531_v24 = vand.u32 4294901760, %v11530_v20  ;;  %v11533_v63 = vld [vmem:[#allocation86_spill] sm:$0xff] }
 0x536   :  { %11526 = vst [vmem:[#allocation77_spill] sm:$0xff] %v9692_v14  ;;  %v11069_v10 = vand.u32 4294901760, %v9692_v14  ;;  %v9702_v23 = vsub.f32 %v11527_v48, %v11528_v42  ;;  %v3224_v30 = vsub.f32 %v9678_v56, %v11060_v15  ;;  %v11534_v11 = vand.u32 4294901760, %v11533_v63  ;;  %7197 = vmatprep.subr.bf16.mxu1 %v9694_v3  ;;  %v11536_v56 = vld [vmem:[#allocation87_spill] sm:$0xff] }
 0x537   :  { %v9714_v58 = vsub.f32 %v11530_v20, %v11531_v24  ;;  %v9722_v48 = vpack.c.bf16 %v3213_v41, %v3201_v60  ;;  %v11537_v38 = vand.u32 4294901760, %v11536_v56  ;;  %v3231_v24 = vand.u32 4294901760, %v3230_v57  ;;  %v11542_v57 = vld [vmem:[#allocation89_spill] sm:$0xff] }
 0x538   :  { %11529 = vst [vmem:[#allocation78_spill] sm:$0xff] %v9702_v23  ;;  %v9719_v42 = vsub.f32 %v11533_v63, %v11534_v11  ;;  %v3236_v49 = vsub.f32 %v9692_v14, %v11069_v10  ;;  %v11074_v15 = vand.u32 4294901760, %v9702_v23  ;;  %v3225_v33 = vand.u32 4294901760, %v3224_v30  ;;  %v11539_v10 = vld [vmem:[#allocation88_spill] sm:$0xff] }
 0x539   :  { %11532 = vst [vmem:[#allocation79_spill] sm:$0xff] %v9714_v58  ;;  %v9731_v20 = vsub.f32 %v11536_v56, %v11537_v38  ;;  %v11077_v63 = vand.u32 4294901760, %v9714_v58  ;;  %v11540_v14 = vand.u32 4294901760, %v11539_v10  ;;  %7199 = vmatpush1.bf16.msra.mxu1 %v9722_v48  ;;  %v9745_v56 = vpack.c.bf16 %v3231_v24, %v3219_v21 }
 0x53a   :  { %11535 = vst [vmem:[#allocation82_spill] sm:$0xff] %v9719_v42  ;;  %v11082_v11 = vand.u32 4294901760, %v9719_v42  ;;  %v3237_v29 = vand.u32 4294901760, %v3236_v49  ;;  %v3242_v60 = vsub.f32 %v9702_v23, %v11074_v15  ;;  %v11543_v30 = vand.u32 4294901760, %v11542_v57 }
 0x53b   :  { %11538 = vst [vmem:[#allocation83_spill] sm:$0xff] %v9731_v20  ;;  %v9742_v13 = vsub.f32 %v11539_v10, %v11540_v14  ;;  %v3254_v38 = vsub.f32 %v9714_v58, %v11077_v63  ;;  %v11545_v14 = vand.u32 4294901760, %v9731_v20  ;;  %7201 = vmatprep.subr.bf16.mxu1 %v9745_v56 }
 0x53c   :  { %v3248_v49 = vsub.f32 %v9719_v42, %v11082_v11  ;;  %v9756_v15 = vsub.f32 %v11542_v57, %v11543_v30  ;;  %v9758_v41 = vpack.c.bf16 %v3237_v29, %v3225_v33  ;;  %v3243_v10 = vand.u32 4294901760, %v3242_v60  ;;  %v11548_v60 = vld [vmem:[#allocation91_spill] sm:$0xff] }
 0x53d   :  { %11541 = vst [vmem:[#allocation84_spill] sm:$0xff] %v9742_v13  ;;  %v3260_v21 = vsub.f32 %v9731_v20, %v11545_v14  ;;  %v11085_v24 = vand.u32 4294901760, %v9742_v13  ;;  %v3255_v23 = vand.u32 4294901760, %v3254_v38  ;;  %v11547_v11 = vand.u32 4294901760, %v11546_v19  ;;  %v11551_v38 = vld [vmem:[#allocation92_spill] sm:$0xff] }
 0x53e   :  { %11544 = vst [vmem:[#allocation85_spill] sm:$0xff] %v9756_v15  ;;  %v3249_v63 = vand.u32 4294901760, %v3248_v49  ;;  %v11090_v58 = vand.u32 4294901760, %v9756_v15  ;;  %v11549_v57 = vand.u32 4294901760, %v11548_v60  ;;  %v11552_v49 = vand.u32 4294901760, %v11551_v38  ;;  %7203 = vmatpush1.bf16.msra.mxu1 %v9758_v41 }
 0x53f   :  { %v9768_v42 = vsub.f32 %v11546_v19, %v11547_v11  ;;  %v3261_v29 = vand.u32 4294901760, %v3260_v21  ;;  %v3266_v33 = vsub.f32 %v9742_v13, %v11085_v24  ;;  %v9785_v19 = vpack.c.bf16 %v3255_v23, %v3243_v10  ;;  %v11554_v24 = vld [vmem:[#allocation93_spill] sm:$0xff] }
 0x540   :  { %v9777_v30 = vsub.f32 %v11548_v60, %v11549_v57  ;;  %v9782_v14 = vsub.f32 %v11551_v38, %v11552_v49  ;;  %v3278_v11 = vsub.f32 %v9756_v15, %v11090_v58  ;;  %v11555_v13 = vand.u32 4294901760, %v11554_v24  ;;  %v11557_v15 = vld [vmem:[#allocation94_spill] sm:$0xff] }
 0x541   :  { %v11097_v21 = vand.u32 4294901760, %v9768_v42  ;;  %v9796_v57 = vpack.c.bf16 %v3261_v29, %v3249_v63  ;;  %v3267_v20 = vand.u32 4294901760, %v3266_v33  ;;  %v11558_v22 = vand.u32 4294901760, %v11557_v15  ;;  %7205 = vmatprep.subr.bf16.mxu1 %v9785_v19 }
 0x542   :  { %11550 = vst [vmem:[#allocation86_spill] sm:$0xff] %v9777_v30  ;;  %11553 = vst [vmem:[#allocation87_spill] sm:$0xff] %v9782_v14  ;;  %v9794_v60 = vsub.f32 %v11554_v24, %v11555_v13  ;;  %v11098_v38 = vand.u32 4294901760, %v9777_v30  ;;  %v11099_v49 = vand.u32 4294901760, %v9782_v14  ;;  %v3279_v23 = vand.u32 4294901760, %v3278_v11  ;;  %v11560_v24 = vld [vmem:[#allocation95_spill] sm:$0xff] }
 0x543   :  { %v3272_v10 = vsub.f32 %v9768_v42, %v11097_v21  ;;  %v9807_v45 = vsub.f32 %v11557_v15, %v11558_v22  ;;  %v11561_v29 = vand.u32 4294901760, %v11560_v24  ;;  %v11563_v11 = vand.u32 4294901760, %v9224_v4  ;;  %7207 = vmatpush1.bf16.msra.mxu1 %v9796_v57 }
 0x544   :  { %11556 = vst [vmem:[#allocation88_spill] sm:$0xff] %v9794_v60  ;;  %v11107_v58 = vand.u32 4294901760, %v9794_v60  ;;  %v3284_v13 = vsub.f32 %v9777_v30, %v11098_v38  ;;  %v3290_v63 = vsub.f32 %v9782_v14, %v11099_v49  ;;  %v9827_v15 = vpack.c.bf16 %v3279_v23, %v3267_v20 }
 0x545   :  { %11559 = vst [vmem:[#allocation89_spill] sm:$0xff] %v9807_v45  ;;  %v9819_v33 = vsub.f32 %v11560_v24, %v11561_v29  ;;  %v9824_v22 = vsub.f32 %v9224_v4, %v11563_v11  ;;  %v3273_v21 = vand.u32 4294901760, %v3272_v10  ;;  %v11106_v49 = vand.u32 4294901760, %v9807_v45 }
 0x546   :  { %v3302_v38 = vsub.f32 %v9794_v60, %v11107_v58  ;;  %v3285_v14 = vand.u32 4294901760, %v3284_v13  ;;  %v3291_v55 = vand.u32 4294901760, %v3290_v63  ;;  %v11565_v20 = vand.u32 4294901760, %v9226_v12  ;;  %7209 = vmatprep.subr.bf16.mxu1 %v9827_v15 }
 0x547   :  { %11562 = vst [vmem:[#allocation90_spill] sm:$0xff] %v9819_v33  ;;  %11564 = vst [vmem:[#allocation91_spill] sm:$0xff] %v9824_v22  ;;  %v11108_v24 = vand.u32 4294901760, %v9819_v33  ;;  %v11111_v29 = vand.u32 4294901760, %v9824_v22  ;;  %v3296_v4 = vsub.f32 %v9807_v45, %v11106_v49  ;;  %v11567_v10 = vand.u32 4294901760, %v9230_v1 }
 0x548   :  { %v3303_v44 = vand.u32 4294901760, %v3302_v38  ;;  %v9841_v23 = vsub.f32 %v9226_v12, %v11565_v20  ;;  %v9849_v13 = vpack.c.bf16 %v3285_v14, %v3273_v21  ;;  %v11569_v12 = vand.u32 4294901760, %v9232_v16 }
 0x549   :  { %v9846_v11 = vsub.f32 %v9230_v1, %v11567_v10  ;;  %v3308_v38 = vsub.f32 %v9819_v33, %v11108_v24  ;;  %v3314_v63 = vsub.f32 %v9824_v22, %v11111_v29  ;;  %v3297_v1 = vand.u32 4294901760, %v3296_v4 }
 0x54a   :  { %11566 = vst [vmem:[#allocation92_spill] sm:$0xff] %v9841_v23  ;;  %v9860_v20 = vsub.f32 %v9232_v16, %v11569_v12  ;;  %v9862_v49 = vpack.c.bf16 %v3303_v44, %v3291_v55  ;;  %v11113_v10 = vand.u32 4294901760, %v9841_v23  ;;  %v11571_v60 = vand.u32 4294901760, %v9248_v40  ;;  %7211 = vmatpush1.bf16.msra.mxu1 %v9849_v13 }
 0x54b   :  { %11568 = vst [vmem:[#allocation93_spill] sm:$0xff] %v9846_v11  ;;  %v11112_v14 = vand.u32 4294901760, %v9846_v11  ;;  %v3309_v21 = vand.u32 4294901760, %v3308_v38  ;;  %v3315_v58 = vand.u32 4294901760, %v3314_v63  ;;  %v11573_v55 = vand.u32 4294901760, %v9250_v25 }
 0x54c   :  { %11570 = vst [vmem:[#allocation94_spill] sm:$0xff] %v9860_v20  ;;  %v11116_v24 = vand.u32 4294901760, %v9860_v20  ;;  %v9870_v29 = vsub.f32 %v9248_v40, %v11571_v60  ;;  %v3326_v16 = vsub.f32 %v9841_v23, %v11113_v10  ;;  %v11575_v38 = vand.u32 4294901760, %v9255_v54  ;;  %7213 = vmatprep.subr.bf16.mxu1 %v9862_v49 }
 0x54d   :  { %v3320_v44 = vsub.f32 %v9846_v11, %v11112_v14  ;;  %v9882_v4 = vsub.f32 %v9250_v25, %v11573_v55  ;;  %v9890_v60 = vpack.c.bf16 %v3309_v21, %v3297_v1  ;;  %v11577_v14 = vand.u32 4294901760, %v9257_v46 }
 0x54e   :  { %11572 = vst [vmem:[#allocation95_spill] sm:$0xff] %v9870_v29  ;;  %v9887_v40 = vsub.f32 %v9255_v54, %v11575_v38  ;;  %v3332_v63 = vsub.f32 %v9860_v20, %v11116_v24  ;;  %v11119_v12 = vand.u32 4294901760, %v9870_v29  ;;  %v3327_v55 = vand.u32 4294901760, %v3326_v16 }
 0x54f   :  { %11574 = vst [vmem:[#allocation96_spill] sm:$0xff] %v9882_v4  ;;  %v9899_v25 = vsub.f32 %v9257_v46, %v11577_v14  ;;  %v3321_v10 = vand.u32 4294901760, %v3320_v44  ;;  %v11120_v54 = vand.u32 4294901760, %v9882_v4  ;;  %v11579_v24 = vand.u32 4294901760, %v9284_v0  ;;  %7215 = vmatpush1.bf16.msra.mxu1 %v9890_v60 }
 0x550   :  { %11576 = vst [vmem:[#allocation97_spill] sm:$0xff] %v9887_v40  ;;  %v11123_v38 = vand.u32 4294901760, %v9887_v40  ;;  %v3333_v23 = vand.u32 4294901760, %v3332_v63  ;;  %v3338_v1 = vsub.f32 %v9870_v29, %v11119_v12  ;;  %v9913_v46 = vpack.c.bf16 %v3327_v55, %v3315_v58 }
 0x551   :  { %11578 = vst [vmem:[#allocation98_spill] sm:$0xff] %v9899_v25  ;;  %v11130_v21 = vand.u32 4294901760, %v9899_v25  ;;  %v9910_v22 = vsub.f32 %v9284_v0, %v11579_v24  ;;  %v3350_v14 = vsub.f32 %v9882_v4, %v11120_v54  ;;  %v11581_v44 = vand.u32 4294901760, %v9286_v47 }
 0x552   :  { %v3344_v16 = vsub.f32 %v9887_v40, %v11123_v38  ;;  %v9926_v12 = vpack.c.bf16 %v3333_v23, %v3321_v10  ;;  %v3339_v0 = vand.u32 4294901760, %v3338_v1  ;;  %v11583_v38 = vand.u32 4294901760, %v9301_v26  ;;  %7217 = vmatprep.subr.bf16.mxu1 %v9913_v46 }
 0x553   :  { %11580 = vst [vmem:[#allocation99_spill] sm:$0xff] %v9910_v22  ;;  %v9924_v63 = vsub.f32 %v9286_v47, %v11581_v44  ;;  %v3356_v58 = vsub.f32 %v9899_v25, %v11130_v21  ;;  %v11126_v24 = vand.u32 4294901760, %v9910_v22  ;;  %v3351_v55 = vand.u32 4294901760, %v3350_v14 }
 0x554   :  { %v3345_v54 = vand.u32 4294901760, %v3344_v16  ;;  %v9936_v37 = vsub.f32 %v9301_v26, %v11583_v38  ;;  %v11585_v10 = vand.u32 4294901760, %v9303_v43  ;;  %7219 = vmatpush1.bf16.msra.mxu1 %v9926_v12 }
 0x555   :  { %11582 = vst [vmem:[#allocation100_spill] sm:$0xff] %v9924_v63  ;;  %v11129_v53 = vand.u32 4294901760, %v9924_v63  ;;  %v3357_v47 = vand.u32 4294901760, %v3356_v58  ;;  %v3362_v23 = vsub.f32 %v9910_v22, %v11126_v24  ;;  %v9948_v14 = vpack.c.bf16 %v3351_v55, %v3339_v0 }
 0x556   :  { %11584 = vst [vmem:[#allocation101_spill] sm:$0xff] %v9936_v37  ;;  %v9945_v1 = vsub.f32 %v9303_v43, %v11585_v10  ;;  %v11128_v38 = vand.u32 4294901760, %v9936_v37  ;;  %v9972_v10 = vpack.c.bf16 %v9276_v18, %v9271_v50  ;;  %v9999_v50 = vpack.c.bf16 %v9860_v20, %v9846_v11  ;;  %v11662_v20 = vld [vmem:[#allocation88_spill] sm:$0xff] }
 0x557   :  { %v3374_v26 = vsub.f32 %v9924_v63, %v11129_v53  ;;  %v9954_v16 = vpack.c.bf16 %v3357_v47, %v3345_v54  ;;  %v3363_v44 = vand.u32 4294901760, %v3362_v23  ;;  %7221 = vmatprep.subr.bf16.mxu1 %v9948_v14 }
 0x558   :  { %11586 = vst [vmem:[#allocation102_spill] sm:$0xff] %v9945_v1  ;;  %v11127_v58 = vand.u32 4294901760, %v9945_v1  ;;  %v3368_v43 = vsub.f32 %v9936_v37, %v11128_v38  ;;  %v9992_v38 = vpack.c.bf16 %v9819_v33, %v9807_v45  ;;  %11593 = vst [vmem:[#allocation106_spill] sm:$0xff] %v9999_v50  ;;  %v11665_v33 = vld [vmem:[#allocation92_spill] sm:$0xff] }
 0x559   :  { %v3375_v24 = vand.u32 4294901760, %v3374_v26  ;;  %7223 = vmatpush1.bf16.msra.mxu1 %v9954_v16  ;;  %v9979_v26 = vld [vmem:[%s10716_s6] sm:$0x77] }
 0x55a   :  { %v3380_v0 = vsub.f32 %v9945_v1, %v11127_v58  ;;  %v3369_v54 = vand.u32 4294901760, %v3368_v43  ;;  %11587 = vst [vmem:[#allocation103_spill] sm:$0xff] %v9979_v26  ;;  %v11589_v43 = vld [vmem:[#allocation10_spill] sm:$0xff]  ;;  %11591 = vst [vmem:[#allocation104_spill] sm:$0xff] %v9992_v38 }
 0x55b   :  { %v9965_v55 = vpack.c.bf16 %v3375_v24, %v3363_v44  ;;  %v11588_v24 = vld [vmem:[#allocation9_spill] sm:$0xff] }
 0x55c   :  { %v3381_v47 = vand.u32 4294901760, %v3380_v0  ;;  %v1987_v44 = vsub.s32 4, %v11588_v24  ;;  %v1984_v0 = vrot.slane %v9979_v26, %v11589_v43 }
 0x55d   :  { %7225 = vmatprep.subr.bf16.mxu1 %v9965_v55 }
 0x55e   :  { %v9968_v23 = vpack.c.bf16 %v3381_v47, %v3369_v54  ;;  %v9986_v54 = vpack.c.bf16 %v9777_v30, %v9768_v42  ;;  %v1988_v47 = vrot.slane %v9979_v26, %v1987_v44  ;;  %v1994_v58 = vrot.slane %v1984_v0, %v11589_v43 }
 0x55f   :  { %v10011_v26 = vpack.c.bf16 %v9882_v4, %v9870_v29 }
 0x560   :  { %7227 = vmatpush1.bf16.msra.mxu1 %v9968_v23  ;;  %11590 = vst [vmem:[#allocation10_spill] sm:$0xff] %v9986_v54  ;;  %v1998_v53 = vrot.slane %v1988_v47, %v11589_v43  ;;  %v10029_v47 = vpack.c.bf16 %v9924_v63, %v9910_v22  ;;  %v11658_v22 = vld [vmem:[#allocation84_spill] sm:$0xff] }
 0x561   :  { %7229 = vmatprep.subr.bf16.mxu1 %v9972_v10  ;;  %11596 = vst [vmem:[#allocation109_spill] sm:$0xff] %v10011_v26 }
 0x562   :  { %11598 = vst [vmem:[#allocation111_spill] sm:$0xff] %v10029_v47 }
 0x5d5   :  { %v2849_v21 = vpop.f32.mrb[2].mxu1 }
 0x5d6   :  { %v9995_v18 = vadd.f32 %v2849_v21, %v1994_v58  ;;  %v2851_v24 = vpop.f32.mrb[3].mxu1  ;;  %v10019_v58 = vpack.c.bf16 %v9899_v25, %v9887_v40  ;;  %v10036_v25 = vpack.c.bf16 %v9945_v1, %v9936_v37  ;;  %v11655_v37 = vld [vmem:[#allocation82_spill] sm:$0xff] }
 0x5d7   :  { %v10001_v30 = vadd.f32 %v2851_v24, %v1998_v53 }
 0x5d8   :  { %11592 = vst [vmem:[#allocation105_spill] sm:$0xff] %v9995_v18  ;;  %v10004_v44 = vand.u32 4294901760, %v9995_v18  ;;  %11597 = vst [vmem:[#allocation110_spill] sm:$0xff] %v10019_v58 }
 0x5d9   :  { %11594 = vst [vmem:[#allocation107_spill] sm:$0xff] %v10001_v30  ;;  %v10007_v0 = vand.u32 4294901760, %v10001_v30  ;;  %11599 = vst [vmem:[#allocation112_spill] sm:$0xff] %v10036_v25 }
 0x5da   :  { %11595 = vst [vmem:[#allocation108_spill] sm:$0xff] %v10004_v44  ;;  %v10015_v21 = vsub.f32 %v9995_v18, %v10004_v44 }
 0x5db   :  { %v10023_v53 = vsub.f32 %v10001_v30, %v10007_v0 }
 0x5dc   :  { %v11141_v24 = vand.u32 4294901760, %v10015_v21 }
 0x5dd   :  { %v11142_v43 = vand.u32 4294901760, %v10023_v53 }
 0x5de   :  { %v2991_v18 = vsub.f32 %v10015_v21, %v11141_v24 }
 0x5df   :  { %v2985_v30 = vsub.f32 %v10023_v53, %v11142_v43  ;;  %v11637_v43 = vld [vmem:[#allocation64_spill] sm:$0xff] }
 0x5e0   :  { %v2992_v4 = vand.u32 4294901760, %v2991_v18  ;;  %v10080_v18 = vpack.c.bf16 %v9345_v39, %v9339_v9 }
 0x5e1   :  { %v2986_v40 = vand.u32 4294901760, %v2985_v30  ;;  %v11620_v30 = vld [vmem:[#allocation47_spill] sm:$0xff] }
 0x5e2   :  { %11601 = vst [vmem:[#allocation114_spill] sm:$0xff] %v10080_v18 }
 0x5e3   :  { %2987 = vmatprep.mubr.f32.mxu0 %v2986_v40 }
 0x5e4   :  { %2993 = vmatmul.mubr.f32.vlgmr.msra.gmra.mrb[4].mxu0 %v2992_v4  ;;  %v11626_v4 = vld [vmem:[#allocation53_spill] sm:$0xff] }
 0x5e5   :  { %6783 = vmatpush1.bf16.msra.mxu0 %v9361_v59  ;;  %3384 = vmatprep.mubr.f32.mxu0 %v10007_v0 }
 0x5e6   :  { %6785 = vmatprep.subr.bf16.mxu0 %v9409_v35  ;;  %v11604_v35 = vld [vmem:[#allocation31_spill] sm:$0xff] }
 0x5e9   :  { %6787 = vmatpush1.bf16.msra.mxu0 %v9422_v5  ;;  %v11602_v5 = vld [vmem:[#allocation30_spill] sm:$0xff] }
 0x5ea   :  { %6789 = vmatprep.subr.bf16.mxu0 %v9449_v62  ;;  %v10087_v59 = vpack.c.bf16 %v11602_v5, %v9350_v17  ;;  %v11605_v62 = vld [vmem:[#allocation32_spill] sm:$0xff] }
 0x5ec   :  { %11603 = vst [vmem:[#allocation30_spill] sm:$0xff] %v10087_v59 }
 0x5ed   :  { %6791 = vmatpush1.bf16.msra.mxu0 %v9460_v2  ;;  %v10092_v2 = vpack.c.bf16 %v11605_v62, %v11604_v35 }
 0x5ee   :  { %6793 = vmatprep.subr.bf16.mxu0 %v9491_v8  ;;  %v11608_v8 = vld [vmem:[#allocation34_spill] sm:$0xff] }
 0x5ef   :  { %11606 = vst [vmem:[#allocation31_spill] sm:$0xff] %v10092_v2 }
 0x5f1   :  { %6795 = vmatpush1.bf16.msra.mxu0 %v9513_v51 }
 0x5f2   :  { %6797 = vmatprep.subr.bf16.mxu0 %v9526_v28  ;;  %v10075_v28 = vpack.c.bf16 %v9296_v27, %v9291_v31 }
 0x5f4   :  { %11600 = vst [vmem:[#allocation113_spill] sm:$0xff] %v10075_v28 }
 0x5f5   :  { %6799 = vmatpush1.bf16.msra.mxu0 %v9554_v52  ;;  %v11610_v52 = vld [vmem:[#allocation35_spill] sm:$0xff] }
 0x5f6   :  { %6801 = vmatprep.subr.bf16.mxu0 %v9577_v32 }
 0x5f9   :  { %6803 = vmatpush1.bf16.msra.mxu0 %v9590_v7  ;;  %v11611_v7 = vld [vmem:[#allocation37_spill] sm:$0xff] }
 0x5fa   :  { %6805 = vmatprep.subr.bf16.mxu0 %v9617_v6  ;;  %v10102_v32 = vpack.c.bf16 %v11611_v7, %v11610_v52  ;;  %v11613_v6 = vld [vmem:[#allocation38_spill] sm:$0xff] }
 0x5fd   :  { %6807 = vmatpush1.bf16.msra.mxu0 %v9628_v61  ;;  %v11614_v61 = vld [vmem:[#allocation39_spill] sm:$0xff] }
 0x5fe   :  { %6809 = vmatprep.subr.bf16.mxu0 %v9659_v36  ;;  %v10107_v36 = vpack.c.bf16 %v11614_v61, %v11613_v6 }
 0x600   :  { %11615 = vst [vmem:[#allocation34_spill] sm:$0xff] %v10107_v36 }
 0x601   :  { %6811 = vmatpush1.bf16.msra.mxu0 %v9681_v34  ;;  %v11616_v34 = vld [vmem:[#allocation42_spill] sm:$0xff] }
 0x602   :  { %6813 = vmatprep.subr.bf16.mxu0 %v9694_v3  ;;  %v11607_v3 = vld [vmem:[#allocation33_spill] sm:$0xff] }
 0x603   :  { %v10097_v51 = vpack.c.bf16 %v11608_v8, %v11607_v3  ;;  %11612 = vst [vmem:[#allocation33_spill] sm:$0xff] %v10102_v32 }
 0x605   :  { %6815 = vmatpush1.bf16.msra.mxu0 %v9722_v48  ;;  %11609 = vst [vmem:[#allocation32_spill] sm:$0xff] %v10097_v51  ;;  %v11617_v48 = vld [vmem:[#allocation43_spill] sm:$0xff] }
 0x606   :  { %6817 = vmatprep.subr.bf16.mxu0 %v9745_v56  ;;  %v11619_v56 = vld [vmem:[#allocation46_spill] sm:$0xff] }
 0x609   :  { %6819 = vmatpush1.bf16.msra.mxu0 %v9758_v41  ;;  %v10112_v41 = vpack.c.bf16 %v11617_v48, %v11616_v34 }
 0x60a   :  { %6821 = vmatprep.subr.bf16.mxu0 %v9785_v19  ;;  %v10117_v19 = vpack.c.bf16 %v11620_v30, %v11619_v56 }
 0x60b   :  { %11618 = vst [vmem:[#allocation35_spill] sm:$0xff] %v10112_v41 }
 0x60c   :  { %11621 = vst [vmem:[#allocation37_spill] sm:$0xff] %v10117_v19 }
 0x60d   :  { %6823 = vmatpush1.bf16.msra.mxu0 %v9796_v57  ;;  %v11622_v57 = vld [vmem:[#allocation48_spill] sm:$0xff] }
 0x60e   :  { %6825 = vmatprep.subr.bf16.mxu0 %v9827_v15 }
 0x611   :  { %6827 = vmatpush1.bf16.msra.mxu0 %v9849_v13  ;;  %v11625_v13 = vld [vmem:[#allocation52_spill] sm:$0xff] }
 0x612   :  { %6829 = vmatprep.subr.bf16.mxu0 %v9862_v49  ;;  %v11623_v49 = vld [vmem:[#allocation49_spill] sm:$0xff]  ;;  %v10127_v40 = vpack.c.bf16 %v11626_v4, %v11625_v13 }
 0x613   :  { %v10122_v15 = vpack.c.bf16 %v11623_v49, %v11622_v57 }
 0x614   :  { %11627 = vst [vmem:[#allocation39_spill] sm:$0xff] %v10127_v40 }
 0x615   :  { %6831 = vmatpush1.bf16.msra.mxu0 %v9890_v60  ;;  %11624 = vst [vmem:[#allocation38_spill] sm:$0xff] %v10122_v15  ;;  %v11628_v60 = vld [vmem:[#allocation54_spill] sm:$0xff] }
 0x616   :  { %6833 = vmatprep.subr.bf16.mxu0 %v9913_v46 }
 0x619   :  { %6835 = vmatpush1.bf16.msra.mxu0 %v9926_v12  ;;  %v11629_v12 = vld [vmem:[#allocation55_spill] sm:$0xff] }
 0x61a   :  { %6837 = vmatprep.subr.bf16.mxu0 %v9948_v14  ;;  %v10132_v46 = vpack.c.bf16 %v11629_v12, %v11628_v60  ;;  %v11631_v14 = vld [vmem:[#allocation58_spill] sm:$0xff] }
 0x61c   :  { %11630 = vst [vmem:[#allocation42_spill] sm:$0xff] %v10132_v46 }
 0x61d   :  { %6839 = vmatpush1.bf16.msra.mxu0 %v9954_v16  ;;  %v11632_v16 = vld [vmem:[#allocation59_spill] sm:$0xff] }
 0x61e   :  { %6841 = vmatprep.subr.bf16.mxu0 %v9965_v55  ;;  %v10137_v55 = vpack.c.bf16 %v11632_v16, %v11631_v14 }
 0x620   :  { %11633 = vst [vmem:[#allocation43_spill] sm:$0xff] %v10137_v55 }
 0x621   :  { %6843 = vmatpush1.bf16.msra.mxu0 %v9968_v23  ;;  %v11634_v23 = vld [vmem:[#allocation60_spill] sm:$0xff] }
 0x622   :  { %6845 = vmatprep.subr.bf16.mxu0 %v9972_v10  ;;  %v11635_v10 = vld [vmem:[#allocation61_spill] sm:$0xff] }
 0x623   :  { %v10142_v24 = vpack.c.bf16 %v11635_v10, %v11634_v23 }
 0x624   :  { %3386 = vmatmul.mubr.f32.vlgmr.msra.gmra.mrb[4].mxu0 %v10004_v44  ;;  %v11652_v44 = vld [vmem:[#allocation78_spill] sm:$0xff] }
 0x625   :  { %6847 = vmatpush1.bf16.msra.mxu0 %v10075_v28  ;;  %3586 = vmatprep.mubr.f32.mxu0 %v10023_v53  ;;  %11636 = vst [vmem:[#allocation46_spill] sm:$0xff] %v10142_v24 }
 0x626   :  { %6849 = vmatprep.subr.bf16.mxu0 %v10080_v18  ;;  %v11649_v18 = vld [vmem:[#allocation76_spill] sm:$0xff] }
 0x629   :  { %6851 = vmatpush1.bf16.msra.mxu0 %v10087_v59 }
 0x62a   :  { %6853 = vmatprep.subr.bf16.mxu0 %v10092_v2  ;;  %v11646_v2 = vld [vmem:[#allocation72_spill] sm:$0xff] }
 0x62d   :  { %6855 = vmatpush1.bf16.msra.mxu0 %v10097_v51 }
 0x62e   :  { %6857 = vmatprep.subr.bf16.mxu0 %v10102_v32  ;;  %v11643_v32 = vld [vmem:[#allocation70_spill] sm:$0xff] }
 0x631   :  { %6859 = vmatpush1.bf16.msra.mxu0 %v10107_v36 }
 0x632   :  { %6861 = vmatprep.subr.bf16.mxu0 %v10112_v41  ;;  %v11640_v41 = vld [vmem:[#allocation66_spill] sm:$0xff] }
 0x635   :  { %6863 = vmatpush1.bf16.msra.mxu0 %v10117_v19 }
 0x636   :  { %6865 = vmatprep.subr.bf16.mxu0 %v10122_v15  ;;  %v11638_v15 = vld [vmem:[#allocation65_spill] sm:$0xff] }
 0x637   :  { %v10147_v19 = vpack.c.bf16 %v11638_v15, %v11637_v43 }
 0x639   :  { %6867 = vmatpush1.bf16.msra.mxu0 %v10127_v40  ;;  %11639 = vst [vmem:[#allocation47_spill] sm:$0xff] %v10147_v19  ;;  %v11641_v40 = vld [vmem:[#allocation67_spill] sm:$0xff] }
 0x63a   :  { %6869 = vmatprep.subr.bf16.mxu0 %v10132_v46  ;;  %v10152_v36 = vpack.c.bf16 %v11641_v40, %v11640_v41  ;;  %v11644_v46 = vld [vmem:[#allocation71_spill] sm:$0xff] }
 0x63b   :  { %v10157_v51 = vpack.c.bf16 %v11644_v46, %v11643_v32 }
 0x63c   :  { %11642 = vst [vmem:[#allocation48_spill] sm:$0xff] %v10152_v36 }
 0x63d   :  { %6871 = vmatpush1.bf16.msra.mxu0 %v10137_v55  ;;  %11645 = vst [vmem:[#allocation49_spill] sm:$0xff] %v10157_v51  ;;  %v11647_v55 = vld [vmem:[#allocation73_spill] sm:$0xff] }
 0x63e   :  { %6873 = vmatprep.subr.bf16.mxu0 %v10142_v24  ;;  %v10162_v59 = vpack.c.bf16 %v11647_v55, %v11646_v2  ;;  %v11650_v24 = vld [vmem:[#allocation77_spill] sm:$0xff] }
 0x63f   :  { %v10167_v28 = vpack.c.bf16 %v11650_v24, %v11649_v18 }
 0x640   :  { %11648 = vst [vmem:[#allocation52_spill] sm:$0xff] %v10162_v59 }
 0x641   :  { %6875 = vmatpush1.bf16.msra.mxu0 %v10147_v19  ;;  %11651 = vst [vmem:[#allocation53_spill] sm:$0xff] %v10167_v28  ;;  %v11653_v19 = vld [vmem:[#allocation79_spill] sm:$0xff] }
 0x642   :  { %6877 = vmatprep.subr.bf16.mxu0 %v10152_v36  ;;  %v10172_v1 = vpack.c.bf16 %v11653_v19, %v11652_v44  ;;  %v11656_v36 = vld [vmem:[#allocation83_spill] sm:$0xff] }
 0x643   :  { %v10177_v63 = vpack.c.bf16 %v11656_v36, %v11655_v37 }
 0x644   :  { %11654 = vst [vmem:[#allocation54_spill] sm:$0xff] %v10172_v1 }
 0x645   :  { %6879 = vmatpush1.bf16.msra.mxu0 %v10157_v51  ;;  %11657 = vst [vmem:[#allocation55_spill] sm:$0xff] %v10177_v63  ;;  %v11659_v51 = vld [vmem:[#allocation85_spill] sm:$0xff] }
 0x646   :  { %6881 = vmatprep.subr.bf16.mxu0 %v10162_v59  ;;  %v10182_v29 = vpack.c.bf16 %v11659_v51, %v11658_v22  ;;  %v11661_v59 = vld [vmem:[#allocation87_spill] sm:$0xff] }
 0x647   :  { %v10188_v11 = vpack.c.bf16 %v11662_v20, %v11661_v59 }
 0x648   :  { %11660 = vst [vmem:[#allocation58_spill] sm:$0xff] %v10182_v29 }
 0x649   :  { %6883 = vmatpush1.bf16.msra.mxu0 %v10167_v28  ;;  %11663 = vst [vmem:[#allocation59_spill] sm:$0xff] %v10188_v11  ;;  %v11664_v28 = vld [vmem:[#allocation91_spill] sm:$0xff] }
 0x64a   :  { %6885 = vmatprep.subr.bf16.mxu0 %v10172_v1  ;;  %v10194_v45 = vpack.c.bf16 %v11665_v33, %v11664_v28  ;;  %v11678_v1 = vld [vmem:[#allocation63_spill] sm:$0xff] }
 0x64c   :  { %11666 = vst [vmem:[#allocation60_spill] sm:$0xff] %v10194_v45 }
 0x64d   :  { %6887 = vmatpush1.bf16.msra.mxu0 %v10177_v63  ;;  %v11677_v63 = vld [vmem:[#allocation62_spill] sm:$0xff] }
 0x64e   :  { %6889 = vmatprep.subr.bf16.mxu0 %v10182_v29  ;;  %v11676_v29 = vld [vmem:[#allocation57_spill] sm:$0xff] }
 0x651   :  { %6891 = vmatpush1.bf16.msra.mxu0 %v9986_v54  ;;  %v11667_v54 = vld [vmem:[#allocation36_spill] sm:$0xff] }
 0x652   :  { %6893 = vmatprep.subr.bf16.mxu0 %v10188_v11  ;;  %v11668_v11 = vld [vmem:[#allocation40_spill] sm:$0xff] }
 0x655   :  { %6895 = vmatpush1.bf16.msra.mxu0 %v9992_v38  ;;  %v11669_v38 = vand.u32 4294901760, %v10023_v53  ;;  %v11679_v53 = vld [vmem:[#allocation68_spill] sm:$0xff] }
 0x656   :  { %6897 = vmatprep.subr.bf16.mxu0 %v10194_v45  ;;  %v11670_v45 = vld [vmem:[#allocation41_spill] sm:$0xff] }
 0x659   :  { %6899 = vmatpush1.bf16.msra.mxu0 %v9999_v50  ;;  %v11671_v50 = vld [vmem:[#allocation44_spill] sm:$0xff] }
 0x65a   :  { %6901 = vmatprep.subr.bf16.mxu0 %v10011_v26  ;;  %v11672_v26 = vld [vmem:[#allocation45_spill] sm:$0xff] }
 0x65d   :  { %6903 = vmatpush1.bf16.msra.mxu0 %v10019_v58  ;;  %v11673_v58 = vld [vmem:[#allocation50_spill] sm:$0xff] }
 0x65e   :  { %6905 = vmatprep.subr.bf16.mxu0 %v10029_v47  ;;  %v11674_v47 = vld [vmem:[#allocation51_spill] sm:$0xff] }
 0x661   :  { %6907 = vmatpush1.bf16.msra.mxu0 %v10036_v25  ;;  %v11675_v25 = vld [vmem:[#allocation56_spill] sm:$0xff] }
 0x662   :  { %6909 = vmatprep.subr.bf16.mxu0 %v11667_v54 }
 0x664   :  { %3589 = vmatmul.mubr.f32.vlgmr.msra.gmra.mrb[4].mxu0 %v10015_v21 }
 0x665   :  { %6911 = vmatpush1.bf16.msra.mxu0 %v11668_v11  ;;  %3726 = vmatprep.mubr.f32.mxu0 %v11669_v38  ;;  %v11680_v38 = vld [vmem:[#allocation69_spill] sm:$0xff]  ;;  %v11701_v11 = vld [vmem:[#allocation26_spill] sm:$0xff] }
 0x666   :  { %6913 = vmatprep.subr.bf16.mxu0 %v11670_v45  ;;  %v11681_v45 = vld [vmem:[#allocation74_spill] sm:$0xff] }
 0x669   :  { %6915 = vmatpush1.bf16.msra.mxu0 %v11671_v50  ;;  %v11682_v50 = vld [vmem:[#allocation75_spill] sm:$0xff] }
 0x66a   :  { %6917 = vmatprep.subr.bf16.mxu0 %v11672_v26  ;;  %v11683_v26 = vld [vmem:[#allocation80_spill] sm:$0xff] }
 0x66d   :  { %6919 = vmatpush1.bf16.msra.mxu0 %v11673_v58  ;;  %v11684_v58 = vld [vmem:[#allocation81_spill] sm:$0xff] }
 0x66e   :  { %6921 = vmatprep.subr.bf16.mxu0 %v11674_v47  ;;  %v11685_v47 = vld [vmem:[#allocation11_spill] sm:$0xff] }
 0x671   :  { %6923 = vmatpush1.bf16.msra.mxu0 %v11675_v25  ;;  %v11686_v25 = vld [vmem:[#allocation12_spill] sm:$0xff] }
 0x672   :  { %6925 = vmatprep.subr.bf16.mxu0 %v11676_v29  ;;  %v11687_v29 = vld [vmem:[#allocation13_spill] sm:$0xff] }
 0x675   :  { %6927 = vmatpush1.bf16.msra.mxu0 %v11677_v63  ;;  %v11688_v63 = vld [vmem:[#allocation14_spill] sm:$0xff] }
 0x676   :  { %6929 = vmatprep.subr.bf16.mxu0 %v11678_v1  ;;  %v11689_v1 = vld [vmem:[#allocation15_spill] sm:$0xff] }
 0x679   :  { %6931 = vmatpush1.bf16.msra.mxu0 %v11679_v53  ;;  %v11690_v53 = vld [vmem:[#allocation16_spill] sm:$0xff] }
 0x67a   :  { %6933 = vmatprep.subr.bf16.mxu0 %v11680_v38  ;;  %v11691_v38 = vld [vmem:[#allocation17_spill] sm:$0xff] }
 0x67d   :  { %6935 = vmatpush1.bf16.msra.mxu0 %v11681_v45  ;;  %v11692_v45 = vld [vmem:[#allocation18_spill] sm:$0xff] }
 0x67e   :  { %6937 = vmatprep.subr.bf16.mxu0 %v11682_v50  ;;  %v11693_v50 = vld [vmem:[#allocation19_spill] sm:$0xff] }
 0x681   :  { %6939 = vmatpush1.bf16.msra.mxu0 %v11683_v26  ;;  %v11694_v26 = vld [vmem:[#allocation22_spill] sm:$0xff] }
 0x682   :  { %6941 = vmatprep.subr.bf16.mxu0 %v11684_v58  ;;  %v11695_v58 = vld [vmem:[#allocation23_spill] sm:$0xff] }
 0x685   :  { %6943 = vmatpush1.bf16.msra.mxu0 %v11685_v47  ;;  %v11696_v47 = vld [vmem:[#allocation24_spill] sm:$0xff] }
 0x686   :  { %6945 = vmatprep.subr.bf16.mxu0 %v11686_v25  ;;  %v11697_v25 = vld [vmem:[#allocation27_spill] sm:$0xff] }
 0x689   :  { %6947 = vmatpush1.bf16.msra.mxu0 %v11687_v29  ;;  %v11698_v29 = vld [vmem:[#allocation20_spill] sm:$0xff] }
 0x68a   :  { %6949 = vmatprep.subr.bf16.mxu0 %v11688_v63  ;;  %v11699_v63 = vld [vmem:[#allocation25_spill] sm:$0xff] }
 0x68d   :  { %6951 = vmatpush1.bf16.msra.mxu0 %v11689_v1  ;;  %v11700_v1 = vand.u32 4294901760, %v11699_v63  ;;  %v11714_v63 = vand.u32 4294901760, %v11608_v8  ;;  %v11720_v8 = vand.u32 4294901760, %v11617_v48  ;;  %v11726_v48 = vand.u32 4294901760, %v11626_v4 }
 0x68e   :  { %6953 = vmatprep.subr.bf16.mxu0 %v11690_v53  ;;  %v11702_v53 = vand.u32 4294901760, %v11701_v11  ;;  %v11708_v11 = vand.u32 4294901760, %v10015_v21  ;;  %v11732_v4 = vand.u32 4294901760, %v11635_v10  ;;  %v11739_v10 = vand.u32 4294901760, %v11644_v46 }
 0x68f   :  { %v11748_v46 = vand.u32 4294901760, %v11653_v19  ;;  %v11757_v19 = vld [vmem:[#allocation86_spill] sm:$0xff] }
 0x690   :  { %v10241_v54 = vpack.c.bf16 %v11702_v53, %v11700_v1 }
 0x691   :  { %6955 = vmatpush1.bf16.msra.mxu0 %v11691_v38  ;;  %v11703_v38 = vld [vmem:[#allocation21_spill] sm:$0xff] }
 0x692   :  { %6957 = vmatprep.subr.bf16.mxu0 %v11692_v45 }
 0x695   :  { %6959 = vmatpush1.bf16.msra.mxu0 %v11693_v50  ;;  %v11704_v50 = vand.u32 4294901760, %v9291_v31  ;;  %v11709_v31 = vand.u32 4294901760, %v9350_v17  ;;  %v11715_v17 = vand.u32 4294901760, %v11610_v52  ;;  %v11721_v52 = vand.u32 4294901760, %v11619_v56 }
 0x696   :  { %6961 = vmatprep.subr.bf16.mxu0 %v11694_v26  ;;  %v11705_v26 = vand.u32 4294901760, %v9296_v27  ;;  %v11727_v56 = vand.u32 4294901760, %v11628_v60  ;;  %v11733_v60 = vand.u32 4294901760, %v11637_v43  ;;  %v11741_v43 = vand.u32 4294901760, %v11646_v2 }
 0x697   :  { %v11750_v2 = vand.u32 4294901760, %v11655_v37  ;;  %v11760_v37 = vand.u32 4294901760, %v11661_v59 }
 0x698   :  { %v10248_v45 = vpack.c.bf16 %v11705_v26, %v11704_v50  ;;  %v11710_v50 = vand.u32 4294901760, %v11602_v5  ;;  %v11716_v26 = vand.u32 4294901760, %v11611_v7  ;;  %v11717_v5 = vand.u32 4294901760, %v11613_v6 }
 0x699   :  { %6963 = vmatpush1.bf16.msra.mxu0 %v11695_v58  ;;  %v11722_v7 = vand.u32 4294901760, %v11620_v30  ;;  %v11723_v6 = vand.u32 4294901760, %v11622_v57  ;;  %v11728_v30 = vand.u32 4294901760, %v11629_v12  ;;  %v11729_v57 = vand.u32 4294901760, %v11631_v14 }
 0x69a   :  { %6965 = vmatprep.subr.bf16.mxu0 %v11696_v47  ;;  %v10265_v27 = vpack.c.bf16 %v11710_v50, %v11709_v31  ;;  %v10286_v21 = vpack.c.bf16 %v11716_v26, %v11715_v17  ;;  %v11734_v12 = vand.u32 4294901760, %v11638_v15  ;;  %v11735_v14 = vand.u32 4294901760, %v11640_v41 }
 0x69b   :  { %v11742_v15 = vand.u32 4294901760, %v11647_v55  ;;  %v11744_v41 = vand.u32 4294901760, %v11649_v18  ;;  %v11751_v55 = vand.u32 4294901760, %v11656_v36  ;;  %v11754_v18 = vand.u32 4294901760, %v11659_v51 }
 0x69c   :  { %v11761_v36 = vand.u32 4294901760, %v11662_v20  ;;  %v11771_v20 = vld [vmem:[#allocation93_spill] sm:$0xff] }
 0x69d   :  { %6967 = vmatpush1.bf16.msra.mxu0 %v11697_v25  ;;  %v11706_v25 = vand.u32 4294901760, %v9339_v9  ;;  %v11711_v9 = vand.u32 4294901760, %v11604_v35  ;;  %v11718_v35 = vand.u32 4294901760, %v11614_v61  ;;  %v11724_v61 = vand.u32 4294901760, %v11623_v49 }
 0x69e   :  { %6969 = vmatprep.subr.bf16.mxu0 %v11698_v29  ;;  %v11707_v29 = vand.u32 4294901760, %v9345_v39  ;;  %v11712_v39 = vand.u32 4294901760, %v11605_v62  ;;  %v11730_v49 = vand.u32 4294901760, %v11632_v16  ;;  %v11736_v16 = vand.u32 4294901760, %v11641_v40 }
 0x69f   :  { %v10293_v62 = vpack.c.bf16 %v11718_v35, %v11717_v5  ;;  %v10314_v31 = vpack.c.bf16 %v11724_v61, %v11723_v6  ;;  %v10370_v5 = vpack.c.bf16 %v11742_v15, %v11741_v43  ;;  %v11745_v40 = vand.u32 4294901760, %v11650_v24 }
 0x6a0   :  { %v10255_v47 = vpack.c.bf16 %v11707_v29, %v11706_v25  ;;  %v10272_v29 = vpack.c.bf16 %v11712_v39, %v11711_v9  ;;  %v11713_v25 = vand.u32 4294901760, %v11607_v3  ;;  %v11719_v3 = vand.u32 4294901760, %v11616_v34 }
 0x6a1   :  { %6971 = vmatpush1.bf16.msra.mxu0 %v11703_v38  ;;  %v11725_v34 = vand.u32 4294901760, %v11625_v13  ;;  %v10328_v9 = vpack.c.bf16 %v11728_v30, %v11727_v56  ;;  %v10335_v39 = vpack.c.bf16 %v11730_v49, %v11729_v57  ;;  %v11731_v13 = vand.u32 4294901760, %v11634_v23  ;;  %11743 = vst [vmem:[#allocation65_spill] sm:$0xff] %v10370_v5  ;;  %v11773_v49 = vld [vmem:[#allocation94_spill] sm:$0xff] }
 0x6a2   :  { %6973 = vmatprep.subr.bf16.mxu0 %v10241_v54  ;;  %v10279_v1 = vpack.c.bf16 %v11714_v63, %v11713_v25  ;;  %v10300_v53 = vpack.c.bf16 %v11720_v8, %v11719_v3  ;;  %v10349_v63 = vpack.c.bf16 %v11734_v12, %v11733_v60  ;;  %v10356_v17 = vpack.c.bf16 %v11736_v16, %v11735_v14  ;;  %v11776_v60 = vld [vmem:[#allocation95_spill] sm:$0xff]  ;;  %v11778_v14 = vld [vmem:[#allocation96_spill] sm:$0xff] }
 0x6a3   :  { %v10321_v50 = vpack.c.bf16 %v11726_v48, %v11725_v34  ;;  %v10342_v25 = vpack.c.bf16 %v11732_v4, %v11731_v13  ;;  %v11738_v23 = vand.u32 4294901760, %v11643_v32  ;;  %v10377_v35 = vpack.c.bf16 %v11745_v40, %v11744_v41  ;;  %v11765_v34 = vld [vmem:[#allocation90_spill] sm:$0xff]  ;;  %v11786_v41 = vld [vmem:[#allocation99_spill] sm:$0xff] }
 0x6a4   :  { %3730 = vmatmul.mubr.f32.vlgmr.msra.gmra.mrb[4].mxu0 %v11708_v11  ;;  %v10307_v11 = vpack.c.bf16 %v11722_v7, %v11721_v52  ;;  %11737 = vst [vmem:[#allocation61_spill] sm:$0xff] %v10356_v17  ;;  %v11747_v32 = vand.u32 4294901760, %v11652_v44  ;;  %v10391_v8 = vpack.c.bf16 %v11751_v55, %v11750_v2  ;;  %v11753_v24 = vand.u32 4294901760, %v11658_v22  ;;  %v11763_v22 = vld [vmem:[#allocation89_spill] sm:$0xff] }
 0x6a5   :  { %6975 = vmatpush1.bf16.msra.mxu0 %v10248_v45  ;;  %3993 = vmatprep.mubr.f32.mxu0 %v10007_v0  ;;  %v10363_v26 = vpack.c.bf16 %v11739_v10, %v11738_v23  ;;  %11746 = vst [vmem:[#allocation66_spill] sm:$0xff] %v10377_v35  ;;  %v11756_v44 = vand.u32 4294901760, %v9768_v42  ;;  %v11758_v7 = vand.u32 4294901760, %v11757_v19  ;;  %v10412_v61 = vpack.c.bf16 %v11761_v36, %v11760_v37  ;;  %v11783_v10 = vld [vmem:[#allocation98_spill] sm:$0xff]  ;;  %v11791_v55 = vld [vmem:[#allocation101_spill] sm:$0xff]  ;;  %v11797_v37 = vld [vmem:[#allocation108_spill] sm:$0xff] }
 0x6a6   :  { %6977 = vmatprep.subr.bf16.mxu0 %v10255_v47  ;;  %v10384_v3 = vpack.c.bf16 %v11748_v46, %v11747_v32  ;;  %11752 = vst [vmem:[#allocation70_spill] sm:$0xff] %v10391_v8  ;;  %v10398_v52 = vpack.c.bf16 %v11754_v18, %v11753_v24  ;;  %v11764_v51 = vand.u32 4294901760, %v11763_v22  ;;  %v11766_v48 = vand.u32 4294901760, %v11765_v34  ;;  %v11788_v32 = vld [vmem:[#allocation100_spill] sm:$0xff]  ;;  %v11793_v18 = vld [vmem:[#allocation102_spill] sm:$0xff]  ;;  %v11799_v22 = vld [vmem:[#allocation41_spill] sm:$0xff] }
 0x6a7   :  { %11740 = vst [vmem:[#allocation64_spill] sm:$0xff] %v10363_v26  ;;  %v10405_v6 = vpack.c.bf16 %v11758_v7, %v11756_v44  ;;  %11762 = vst [vmem:[#allocation73_spill] sm:$0xff] %v10412_v61  ;;  %v11768_v42 = vand.u32 4294901760, %v11664_v28  ;;  %v11769_v30 = vand.u32 4294901760, %v11665_v33  ;;  %v11772_v59 = vand.u32 4294901760, %v11771_v20  ;;  %v11781_v33 = vld [vmem:[#allocation97_spill] sm:$0xff] }
 0x6a8   :  { %11749 = vst [vmem:[#allocation67_spill] sm:$0xff] %v10384_v3  ;;  %11755 = vst [vmem:[#allocation71_spill] sm:$0xff] %v10398_v52  ;;  %v10419_v56 = vpack.c.bf16 %v11766_v48, %v11764_v51  ;;  %v11774_v13 = vand.u32 4294901760, %v11773_v49  ;;  %v11777_v12 = vand.u32 4294901760, %v11776_v60  ;;  %v11779_v16 = vand.u32 4294901760, %v11778_v14  ;;  %v11796_v7 = vld [vmem:[#allocation36_spill] sm:$0xff] }
 0x6a9   :  { %6979 = vmatpush1.bf16.msra.mxu0 %v10265_v27  ;;  %11759 = vst [vmem:[#allocation72_spill] sm:$0xff] %v10405_v6  ;;  %v10426_v57 = vpack.c.bf16 %v11769_v30, %v11768_v42  ;;  %v11782_v28 = vand.u32 4294901760, %v11781_v33  ;;  %v11784_v43 = vand.u32 4294901760, %v11783_v10  ;;  %v11787_v40 = vand.u32 4294901760, %v11786_v41  ;;  %v11798_v36 = vld [vmem:[#allocation40_spill] sm:$0xff]  ;;  %v11801_v34 = vld [vmem:[#allocation45_spill] sm:$0xff] }
 0x6aa   :  { %6981 = vmatprep.subr.bf16.mxu0 %v10272_v29  ;;  %11767 = vst [vmem:[#allocation76_spill] sm:$0xff] %v10419_v56  ;;  %v10433_v4 = vpack.c.bf16 %v11774_v13, %v11772_v59  ;;  %v10440_v23 = vpack.c.bf16 %v11779_v16, %v11777_v12  ;;  %v11789_v46 = vand.u32 4294901760, %v11788_v32  ;;  %v11792_v24 = vand.u32 4294901760, %v11791_v55  ;;  %v11800_v51 = vld [vmem:[#allocation44_spill] sm:$0xff]  ;;  %v11802_v48 = vld [vmem:[#allocation50_spill] sm:$0xff]  ;;  %v11803_v42 = vld [vmem:[#allocation51_spill] sm:$0xff] }
 0x6ab   :  { %11770 = vst [vmem:[#allocation77_spill] sm:$0xff] %v10426_v57  ;;  %v10447_v15 = vpack.c.bf16 %v11784_v43, %v11782_v28  ;;  %v11794_v44 = vand.u32 4294901760, %v11793_v18  ;;  %v11804_v30 = vld [vmem:[#allocation56_spill] sm:$0xff]  ;;  %v11805_v20 = vld [vmem:[#allocation57_spill] sm:$0xff]  ;;  %v11806_v59 = vld [vmem:[#allocation62_spill] sm:$0xff] }
 0x6ac   :  { %11775 = vst [vmem:[#allocation78_spill] sm:$0xff] %v10433_v4  ;;  %11780 = vst [vmem:[#allocation79_spill] sm:$0xff] %v10440_v23  ;;  %v10454_v2 = vpack.c.bf16 %v11789_v46, %v11787_v40  ;;  %v11807_v49 = vld [vmem:[#allocation63_spill] sm:$0xff]  ;;  %v11808_v13 = vld [vmem:[#allocation68_spill] sm:$0xff] }
 0x6ad   :  { %6983 = vmatpush1.bf16.msra.mxu0 %v10279_v1  ;;  %11785 = vst [vmem:[#allocation82_spill] sm:$0xff] %v10447_v15  ;;  %v10461_v19 = vpack.c.bf16 %v11794_v44, %v11792_v24  ;;  %v11810_v60 = vld [vmem:[#allocation74_spill] sm:$0xff]  ;;  %v11811_v12 = vld [vmem:[#allocation75_spill] sm:$0xff]  ;;  %v11812_v14 = vld [vmem:[#allocation80_spill] sm:$0xff] }
 0x6ae   :  { %6985 = vmatprep.subr.bf16.mxu0 %v10286_v21  ;;  %11790 = vst [vmem:[#allocation83_spill] sm:$0xff] %v10454_v2  ;;  %v11813_v16 = vld [vmem:[#allocation81_spill] sm:$0xff]  ;;  %v11814_v33 = vld [vmem:[#allocation11_spill] sm:$0xff]  ;;  %v11815_v28 = vld [vmem:[#allocation12_spill] sm:$0xff] }
 0x6af   :  { %11795 = vst [vmem:[#allocation84_spill] sm:$0xff] %v10461_v19  ;;  %v11816_v10 = vld [vmem:[#allocation13_spill] sm:$0xff]  ;;  %v11817_v43 = vld [vmem:[#allocation14_spill] sm:$0xff]  ;;  %v11818_v41 = vld [vmem:[#allocation15_spill] sm:$0xff] }
 0x6b0   :  { %v11819_v40 = vld [vmem:[#allocation16_spill] sm:$0xff]  ;;  %v11820_v32 = vld [vmem:[#allocation17_spill] sm:$0xff]  ;;  %v11821_v46 = vld [vmem:[#allocation18_spill] sm:$0xff] }
 0x6b1   :  { %6987 = vmatpush1.bf16.msra.mxu0 %v10293_v62  ;;  %v11822_v55 = vld [vmem:[#allocation19_spill] sm:$0xff]  ;;  %v11823_v24 = vld [vmem:[#allocation22_spill] sm:$0xff]  ;;  %v11824_v18 = vld [vmem:[#allocation24_spill] sm:$0xff] }
 0x6b2   :  { %6989 = vmatprep.subr.bf16.mxu0 %v10300_v53  ;;  %v11825_v44 = vld [vmem:[#allocation27_spill] sm:$0xff] }
 0x6b5   :  { %6991 = vmatpush1.bf16.msra.mxu0 %v10307_v11 }
 0x6b6   :  { %6993 = vmatprep.subr.bf16.mxu0 %v10314_v31 }
 0x6b9   :  { %6995 = vmatpush1.bf16.msra.mxu0 %v10321_v50 }
 0x6ba   :  { %6997 = vmatprep.subr.bf16.mxu0 %v10328_v9 }
 0x6bd   :  { %6999 = vmatpush1.bf16.msra.mxu0 %v10335_v39 }
 0x6be   :  { %7001 = vmatprep.subr.bf16.mxu0 %v10342_v25 }
 0x6c1   :  { %7003 = vmatpush1.bf16.msra.mxu0 %v10349_v63 }
 0x6c2   :  { %7005 = vmatprep.subr.bf16.mxu0 %v10356_v17  ;;  %v11840_v17 = vld [vmem:[#allocation37_spill] sm:$0xff] }
 0x6c5   :  { %7007 = vmatpush1.bf16.msra.mxu0 %v10363_v26  ;;  %v11838_v26 = vld [vmem:[#allocation34_spill] sm:$0xff] }
 0x6c6   :  { %7009 = vmatprep.subr.bf16.mxu0 %v10370_v5  ;;  %v11835_v5 = vld [vmem:[#allocation31_spill] sm:$0xff] }
 0x6c9   :  { %7011 = vmatpush1.bf16.msra.mxu0 %v10377_v35 }
 0x6ca   :  { %7013 = vmatprep.subr.bf16.mxu0 %v10384_v3  ;;  %v11834_v3 = vld [vmem:[#allocation30_spill] sm:$0xff] }
 0x6cd   :  { %7015 = vmatpush1.bf16.msra.mxu0 %v10391_v8 }
 0x6ce   :  { %7017 = vmatprep.subr.bf16.mxu0 %v10398_v52 }
 0x6d1   :  { %7019 = vmatpush1.bf16.msra.mxu0 %v10405_v6 }
 0x6d2   :  { %7021 = vmatprep.subr.bf16.mxu0 %v10412_v61 }
 0x6d5   :  { %7023 = vmatpush1.bf16.msra.mxu0 %v10419_v56 }
 0x6d6   :  { %7025 = vmatprep.subr.bf16.mxu0 %v10426_v57 }
 0x6d9   :  { %7027 = vmatpush1.bf16.msra.mxu0 %v10433_v4  ;;  %v11829_v4 = vld [vmem:[#allocation107_spill] sm:$0xff] }
 0x6da   :  { %7029 = vmatprep.subr.bf16.mxu0 %v10440_v23 }
 0x6dd   :  { %7031 = vmatpush1.bf16.msra.mxu0 %v10447_v15 }
 0x6de   :  { %7033 = vmatprep.subr.bf16.mxu0 %v10454_v2  ;;  %v11827_v2 = vld [vmem:[#allocation105_spill] sm:$0xff] }
 0x6e1   :  { %7035 = vmatpush1.bf16.msra.mxu0 %v10461_v19  ;;  %v11826_v19 = vld [vmem:[#allocation20_spill] sm:$0xff] }
 0x6e2   :  { %7037 = vmatprep.subr.bf16.mxu0 %v11796_v7 }
 0x6e4   :  { %3995 = vmatmul.mubr.f32.vlgmr.msra.gmra.mrb[4].mxu0 %v11797_v37 }
 0x6e5   :  { %7039 = vmatpush1.bf16.msra.mxu0 %v11798_v36  ;;  %4130 = vmatprep.mubr.f32.mxu0 %v10007_v0  ;;  %v11809_v0 = vld [vmem:[#allocation69_spill] sm:$0xff] }
 0x6e6   :  { %7041 = vmatprep.subr.bf16.mxu0 %v11799_v22 }
 0x6e9   :  { %7043 = vmatpush1.bf16.msra.mxu0 %v11800_v51 }
 0x6ea   :  { %7045 = vmatprep.subr.bf16.mxu0 %v11801_v34 }
 0x6ed   :  { %7047 = vmatpush1.bf16.msra.mxu0 %v11802_v48 }
 0x6ee   :  { %7049 = vmatprep.subr.bf16.mxu0 %v11803_v42 }
 0x6f1   :  { %7051 = vmatpush1.bf16.msra.mxu0 %v11804_v30 }
 0x6f2   :  { %7053 = vmatprep.subr.bf16.mxu0 %v11805_v20 }
 0x6f5   :  { %7055 = vmatpush1.bf16.msra.mxu0 %v11806_v59 }
 0x6f6   :  { %7057 = vmatprep.subr.bf16.mxu0 %v11807_v49 }
 0x6f9   :  { %7059 = vmatpush1.bf16.msra.mxu0 %v11808_v13 }
 0x6fa   :  { %7061 = vmatprep.subr.bf16.mxu0 %v11809_v0 }
 0x6fd   :  { %7063 = vmatpush1.bf16.msra.mxu0 %v11810_v60 }
 0x6fe   :  { %7065 = vmatprep.subr.bf16.mxu0 %v11811_v12 }
 0x701   :  { %7067 = vmatpush1.bf16.msra.mxu0 %v11812_v14 }
 0x702   :  { %7069 = vmatprep.subr.bf16.mxu0 %v11813_v16 }
 0x705   :  { %7071 = vmatpush1.bf16.msra.mxu0 %v11814_v33 }
 0x706   :  { %7073 = vmatprep.subr.bf16.mxu0 %v11815_v28 }
 0x709   :  { %7075 = vmatpush1.bf16.msra.mxu0 %v11816_v10 }
 0x70a   :  { %7077 = vmatprep.subr.bf16.mxu0 %v11817_v43 }
 0x70d   :  { %7079 = vmatpush1.bf16.msra.mxu0 %v11818_v41 }
 0x70e   :  { %7081 = vmatprep.subr.bf16.mxu0 %v11819_v40 }
 0x711   :  { %7083 = vmatpush1.bf16.msra.mxu0 %v11820_v32 }
 0x712   :  { %7085 = vmatprep.subr.bf16.mxu0 %v11821_v46 }
 0x715   :  { %7087 = vmatpush1.bf16.msra.mxu0 %v11822_v55 }
 0x716   :  { %7089 = vmatprep.subr.bf16.mxu0 %v11823_v24 }
 0x719   :  { %7091 = vmatpush1.bf16.msra.mxu0 %v11695_v58 }
 0x71a   :  { %7093 = vmatprep.subr.bf16.mxu0 %v11824_v18 }
 0x71d   :  { %7095 = vmatpush1.bf16.msra.mxu0 %v11825_v44 }
 0x71e   :  { %7097 = vmatprep.subr.bf16.mxu0 %v11826_v19 }
 0x721   :  { %7099 = vmatpush1.bf16.msra.mxu0 %v11703_v38 }
 0x722   :  { %7101 = vmatprep.subr.bf16.mxu0 %v11796_v7 }
 0x724   :  { %4132 = vmatmul.mubr.f32.vlgmr.msra.gmra.mrb[4].mxu0 %v11797_v37 }
 0x725   :  { %7103 = vmatpush1.bf16.msra.mxu0 %v11798_v36 }
 0x726   :  { %7105 = vmatprep.subr.bf16.mxu0 %v11799_v22 }
 0x729   :  { %7107 = vmatpush1.bf16.msra.mxu0 %v11800_v51 }
 0x72a   :  { %7109 = vmatprep.subr.bf16.mxu0 %v11801_v34 }
 0x72d   :  { %7111 = vmatpush1.bf16.msra.mxu0 %v11802_v48 }
 0x72e   :  { %7113 = vmatprep.subr.bf16.mxu0 %v11803_v42 }
 0x731   :  { %7115 = vmatpush1.bf16.msra.mxu0 %v11804_v30 }
 0x732   :  { %7117 = vmatprep.subr.bf16.mxu0 %v11805_v20 }
 0x735   :  { %7119 = vmatpush1.bf16.msra.mxu0 %v11806_v59 }
 0x736   :  { %7121 = vmatprep.subr.bf16.mxu0 %v11807_v49 }
 0x739   :  { %7123 = vmatpush1.bf16.msra.mxu0 %v11808_v13 }
 0x73a   :  { %7125 = vmatprep.subr.bf16.mxu0 %v11809_v0 }
 0x73d   :  { %7127 = vmatpush1.bf16.msra.mxu0 %v11810_v60 }
 0x73e   :  { %7129 = vmatprep.subr.bf16.mxu0 %v11811_v12 }
 0x741   :  { %7131 = vmatpush1.bf16.msra.mxu0 %v11812_v14 }
 0x742   :  { %7133 = vmatprep.subr.bf16.mxu0 %v11813_v16 }
 0x745   :  { %7135 = vmatpush1.bf16.msra.mxu0 %v11814_v33 }
 0x746   :  { %7137 = vmatprep.subr.bf16.mxu0 %v11815_v28 }
 0x749   :  { %7139 = vmatpush1.bf16.msra.mxu0 %v11816_v10 }
 0x74a   :  { %7141 = vmatprep.subr.bf16.mxu0 %v11817_v43 }
 0x74d   :  { %7143 = vmatpush1.bf16.msra.mxu0 %v11818_v41 }
 0x74e   :  { %7145 = vmatprep.subr.bf16.mxu0 %v11819_v40 }
 0x751   :  { %7147 = vmatpush1.bf16.msra.mxu0 %v11820_v32 }
 0x752   :  { %7149 = vmatprep.subr.bf16.mxu0 %v11821_v46 }
 0x755   :  { %7151 = vmatpush1.bf16.msra.mxu0 %v11822_v55 }
 0x756   :  { %7153 = vmatprep.subr.bf16.mxu0 %v11823_v24 }
 0x759   :  { %7155 = vmatpush1.bf16.msra.mxu0 %v11695_v58 }
 0x75a   :  { %7157 = vmatprep.subr.bf16.mxu0 %v11824_v18 }
 0x75d   :  { %7159 = vmatpush1.bf16.msra.mxu0 %v11825_v44 }
 0x75e   :  { %7161 = vmatprep.subr.bf16.mxu0 %v11826_v19 }
 0x761   :  { %7163 = vmatpush1.bf16.msra.mxu0 %v11703_v38 }
 0x7f7   :  { %v4133_v37 = vpop.f32.mrb[4].mxu0 }
 0x7f8   :  { %v10533_v15 = vsub.f32 %v11827_v2, %v4133_v37  ;;  %v4135_v23 = vpop.f32.mrb[5].mxu0 }
 0x7f9   :  { %v10536_v57 = vsub.f32 %v11829_v4, %v4135_v23  ;;  %v11832_v23 = vld [vmem:[#allocation113_spill] sm:$0xff] }
 0x7fa   :  { %11828 = vst [vmem:[#allocation85_spill] sm:$0xff] %v10533_v15  ;;  %v4140_v56 = vmul.f32 %v10533_v15, %v10533_v15 }
 0x7fb   :  { %11830 = vst [vmem:[#allocation87_spill] sm:$0xff] %v10536_v57  ;;  %v4141_v61 = vmul.f32 %v10536_v57, %v10536_v57  ;;  %v11833_v57 = vld [vmem:[#allocation114_spill] sm:$0xff] }
 0x7fc   :  { %v10542_v6 = vand.u32 4294901760, %v4140_v56 }
 0x7fd   :  { %v10544_v52 = vand.u32 4294901760, %v4141_v61 }
 0x7fe   :  { %11831 = vst [vmem:[#allocation88_spill] sm:$0xff] %v10542_v6  ;;  %v10547_v8 = vsub.f32 %v4140_v56, %v10542_v6 }
 0x7ff   :  { %4672 = vmatprep.mubr.f32.mxu1 %v10544_v52  ;;  %v4271_v2 = vsub.f32 %v4141_v61, %v10544_v52 }
 0x800   :  { %v11205_v4 = vand.u32 4294901760, %v10547_v8  ;;  %4674 = vmatmul.mubr.f32.vlgmr.msra.gmra.mrb[4].mxu1 %v10542_v6  ;;  %v11836_v6 = vld [vmem:[#allocation32_spill] sm:$0xff] }
 0x801   :  { %7231 = vmatpush1.bf16.msra.mxu1 %v11832_v23  ;;  %4874 = vmatprep.mubr.f32.mxu1 %v4271_v2  ;;  %v4272_v37 = vand.u32 4294901760, %v4271_v2  ;;  %v11837_v23 = vld [vmem:[#allocation33_spill] sm:$0xff] }
 0x802   :  { %7233 = vmatprep.subr.bf16.mxu1 %v11833_v57  ;;  %v4279_v15 = vsub.f32 %v10547_v8, %v11205_v4  ;;  %v11839_v57 = vld [vmem:[#allocation35_spill] sm:$0xff]  ;;  %v11841_v4 = vld [vmem:[#allocation38_spill] sm:$0xff] }
 0x803   :  { %v4273_v56 = vsub.f32 %v4271_v2, %v4272_v37  ;;  %v11842_v2 = vld [vmem:[#allocation39_spill] sm:$0xff] }
 0x804   :  { %v4280_v61 = vand.u32 4294901760, %v4279_v15  ;;  %v11846_v15 = vld [vmem:[#allocation47_spill] sm:$0xff] }
 0x805   :  { %7235 = vmatpush1.bf16.msra.mxu1 %v11834_v3  ;;  %v4274_v35 = vand.u32 4294901760, %v4273_v56  ;;  %v11843_v3 = vld [vmem:[#allocation42_spill] sm:$0xff]  ;;  %v11848_v56 = vld [vmem:[#allocation49_spill] sm:$0xff] }
 0x806   :  { %7237 = vmatprep.subr.bf16.mxu1 %v11835_v5  ;;  %v11844_v5 = vld [vmem:[#allocation43_spill] sm:$0xff] }
 0x807   :  { %4275 = vmatprep.mubr.f32.mxu0 %v4274_v35  ;;  %v11845_v35 = vld [vmem:[#allocation46_spill] sm:$0xff] }
 0x808   :  { %4281 = vmatmul.mubr.f32.vlgmr.msra.gmra.mrb[6].mxu0 %v4280_v61  ;;  %v11850_v61 = vld [vmem:[#allocation53_spill] sm:$0xff] }
 0x809   :  { %7239 = vmatpush1.bf16.msra.mxu1 %v11836_v6  ;;  %v11847_v6 = vld [vmem:[#allocation48_spill] sm:$0xff] }
 0x80a   :  { %7241 = vmatprep.subr.bf16.mxu1 %v11837_v23  ;;  %v11853_v23 = vld [vmem:[#allocation58_spill] sm:$0xff] }
 0x80d   :  { %7243 = vmatpush1.bf16.msra.mxu1 %v11838_v26  ;;  %v11849_v26 = vld [vmem:[#allocation52_spill] sm:$0xff] }
 0x80e   :  { %7245 = vmatprep.subr.bf16.mxu1 %v11839_v57  ;;  %v11854_v57 = vld [vmem:[#allocation10_spill] sm:$0xff] }
 0x811   :  { %7247 = vmatpush1.bf16.msra.mxu1 %v11840_v17  ;;  %v11851_v17 = vld [vmem:[#allocation54_spill] sm:$0xff] }
 0x812   :  { %7249 = vmatprep.subr.bf16.mxu1 %v11841_v4  ;;  %v11852_v4 = vld [vmem:[#allocation55_spill] sm:$0xff] }
 0x815   :  { %7251 = vmatpush1.bf16.msra.mxu1 %v11842_v2  ;;  %v11855_v2 = vld [vmem:[#allocation59_spill] sm:$0xff] }
 0x816   :  { %7253 = vmatprep.subr.bf16.mxu1 %v11843_v3  ;;  %v11856_v3 = vld [vmem:[#allocation104_spill] sm:$0xff] }
 0x819   :  { %7255 = vmatpush1.bf16.msra.mxu1 %v11844_v5  ;;  %v11857_v5 = vld [vmem:[#allocation60_spill] sm:$0xff] }
 0x81a   :  { %7257 = vmatprep.subr.bf16.mxu1 %v11845_v35  ;;  %v11858_v35 = vld [vmem:[#allocation106_spill] sm:$0xff] }
 0x81d   :  { %7259 = vmatpush1.bf16.msra.mxu1 %v11846_v15  ;;  %v11859_v15 = vld [vmem:[#allocation109_spill] sm:$0xff] }
 0x81e   :  { %7261 = vmatprep.subr.bf16.mxu1 %v11847_v6  ;;  %v11860_v6 = vld [vmem:[#allocation110_spill] sm:$0xff] }
 0x821   :  { %7263 = vmatpush1.bf16.msra.mxu1 %v11848_v56  ;;  %v11861_v56 = vld [vmem:[#allocation111_spill] sm:$0xff] }
 0x822   :  { %7265 = vmatprep.subr.bf16.mxu1 %v11849_v26  ;;  %v11862_v26 = vld [vmem:[#allocation112_spill] sm:$0xff] }
 0x825   :  { %7267 = vmatpush1.bf16.msra.mxu1 %v11850_v61 }
 0x826   :  { %7269 = vmatprep.subr.bf16.mxu1 %v11851_v17 }
 0x829   :  { %7271 = vmatpush1.bf16.msra.mxu1 %v11852_v4 }
 0x82a   :  { %7273 = vmatprep.subr.bf16.mxu1 %v11853_v23 }
 0x82d   :  { %7275 = vmatpush1.bf16.msra.mxu1 %v11854_v57 }
 0x82e   :  { %7277 = vmatprep.subr.bf16.mxu1 %v11855_v2 }
 0x831   :  { %7279 = vmatpush1.bf16.msra.mxu1 %v11856_v3 }
 0x832   :  { %7281 = vmatprep.subr.bf16.mxu1 %v11857_v5 }
 0x835   :  { %7283 = vmatpush1.bf16.msra.mxu1 %v11858_v35 }
 0x836   :  { %7285 = vmatprep.subr.bf16.mxu1 %v11859_v15 }
 0x839   :  { %7287 = vmatpush1.bf16.msra.mxu1 %v11860_v6 }
 0x83a   :  { %7289 = vmatprep.subr.bf16.mxu1 %v11861_v56 }
 0x83d   :  { %7291 = vmatpush1.bf16.msra.mxu1 %v11862_v26 }
 0x83e   :  { %7293 = vmatprep.subr.bf16.mxu1 %v11796_v7 }
 0x840   :  { %4877 = vmatmul.mubr.f32.vlgmr.msra.gmra.mrb[4].mxu1 %v10547_v8 }
 0x841   :  { %7295 = vmatpush1.bf16.msra.mxu1 %v11798_v36  ;;  %5014 = vmatprep.mubr.f32.mxu1 %v4272_v37  ;;  %v11863_v37 = vand.u32 4294901760, %v10547_v8  ;;  %v11880_v8 = vld [vmem:[#allocation88_spill] sm:$0xff] }
 0x842   :  { %7297 = vmatprep.subr.bf16.mxu1 %v11799_v22 }
 0x845   :  { %7299 = vmatpush1.bf16.msra.mxu1 %v11800_v51 }
 0x846   :  { %7301 = vmatprep.subr.bf16.mxu1 %v11801_v34 }
 0x849   :  { %7303 = vmatpush1.bf16.msra.mxu1 %v11802_v48 }
 0x84a   :  { %7305 = vmatprep.subr.bf16.mxu1 %v11803_v42 }
 0x84d   :  { %7307 = vmatpush1.bf16.msra.mxu1 %v11804_v30 }
 0x84e   :  { %7309 = vmatprep.subr.bf16.mxu1 %v11805_v20 }
 0x851   :  { %7311 = vmatpush1.bf16.msra.mxu1 %v11806_v59 }
 0x852   :  { %7313 = vmatprep.subr.bf16.mxu1 %v11807_v49 }
 0x855   :  { %7315 = vmatpush1.bf16.msra.mxu1 %v11808_v13 }
 0x856   :  { %7317 = vmatprep.subr.bf16.mxu1 %v11809_v0 }
 0x859   :  { %7319 = vmatpush1.bf16.msra.mxu1 %v11810_v60 }
 0x85a   :  { %7321 = vmatprep.subr.bf16.mxu1 %v11811_v12 }
 0x85d   :  { %7323 = vmatpush1.bf16.msra.mxu1 %v11812_v14 }
 0x85e   :  { %7325 = vmatprep.subr.bf16.mxu1 %v11813_v16 }
 0x861   :  { %7327 = vmatpush1.bf16.msra.mxu1 %v11814_v33 }
 0x862   :  { %7329 = vmatprep.subr.bf16.mxu1 %v11815_v28 }
 0x865   :  { %7331 = vmatpush1.bf16.msra.mxu1 %v11816_v10 }
 0x866   :  { %7333 = vmatprep.subr.bf16.mxu1 %v11817_v43 }
 0x869   :  { %7335 = vmatpush1.bf16.msra.mxu1 %v11818_v41 }
 0x86a   :  { %7337 = vmatprep.subr.bf16.mxu1 %v11819_v40 }
 0x86d   :  { %7339 = vmatpush1.bf16.msra.mxu1 %v11820_v32 }
 0x86e   :  { %7341 = vmatprep.subr.bf16.mxu1 %v11821_v46 }
 0x871   :  { %7343 = vmatpush1.bf16.msra.mxu1 %v11822_v55 }
 0x872   :  { %7345 = vmatprep.subr.bf16.mxu1 %v11823_v24 }
 0x875   :  { %7347 = vmatpush1.bf16.msra.mxu1 %v11695_v58 }
 0x876   :  { %7349 = vmatprep.subr.bf16.mxu1 %v11824_v18 }
 0x879   :  { %7351 = vmatpush1.bf16.msra.mxu1 %v11825_v44 }
 0x87a   :  { %7353 = vmatprep.subr.bf16.mxu1 %v11826_v19 }
 0x87d   :  { %7355 = vmatpush1.bf16.msra.mxu1 %v11703_v38 }
 0x87e   :  { %7357 = vmatprep.subr.bf16.mxu1 %v10241_v54  ;;  %v11865_v54 = vld [vmem:[#allocation64_spill] sm:$0xff] }
 0x880   :  { %5018 = vmatmul.mubr.f32.vlgmr.msra.gmra.mrb[4].mxu1 %v11863_v37 }
 0x881   :  { %7359 = vmatpush1.bf16.msra.mxu1 %v10248_v45  ;;  %5281 = vmatprep.mubr.f32.mxu1 %v10544_v52  ;;  %v11864_v45 = vld [vmem:[#allocation61_spill] sm:$0xff] }
 0x882   :  { %7361 = vmatprep.subr.bf16.mxu1 %v10255_v47  ;;  %v11866_v47 = vld [vmem:[#allocation65_spill] sm:$0xff] }
 0x885   :  { %7363 = vmatpush1.bf16.msra.mxu1 %v10265_v27  ;;  %v11867_v27 = vld [vmem:[#allocation66_spill] sm:$0xff] }
 0x886   :  { %7365 = vmatprep.subr.bf16.mxu1 %v10272_v29  ;;  %v11868_v29 = vld [vmem:[#allocation67_spill] sm:$0xff] }
 0x889   :  { %7367 = vmatpush1.bf16.msra.mxu1 %v10279_v1  ;;  %v11869_v1 = vld [vmem:[#allocation70_spill] sm:$0xff] }
 0x88a   :  { %7369 = vmatprep.subr.bf16.mxu1 %v10286_v21  ;;  %v11870_v21 = vld [vmem:[#allocation71_spill] sm:$0xff] }
 0x88d   :  { %7371 = vmatpush1.bf16.msra.mxu1 %v10293_v62  ;;  %v11871_v62 = vld [vmem:[#allocation72_spill] sm:$0xff] }
 0x88e   :  { %7373 = vmatprep.subr.bf16.mxu1 %v10300_v53  ;;  %v11872_v53 = vld [vmem:[#allocation73_spill] sm:$0xff] }
 0x891   :  { %7375 = vmatpush1.bf16.msra.mxu1 %v10307_v11  ;;  %v11873_v11 = vld [vmem:[#allocation76_spill] sm:$0xff] }
 0x892   :  { %7377 = vmatprep.subr.bf16.mxu1 %v10314_v31  ;;  %v11874_v31 = vld [vmem:[#allocation77_spill] sm:$0xff] }
 0x895   :  { %7379 = vmatpush1.bf16.msra.mxu1 %v10321_v50  ;;  %v11875_v50 = vld [vmem:[#allocation78_spill] sm:$0xff] }
 0x896   :  { %7381 = vmatprep.subr.bf16.mxu1 %v10328_v9  ;;  %v11876_v9 = vld [vmem:[#allocation79_spill] sm:$0xff] }
 0x899   :  { %7383 = vmatpush1.bf16.msra.mxu1 %v10335_v39  ;;  %v11877_v39 = vld [vmem:[#allocation82_spill] sm:$0xff] }
 0x89a   :  { %7385 = vmatprep.subr.bf16.mxu1 %v10342_v25  ;;  %v11878_v25 = vld [vmem:[#allocation83_spill] sm:$0xff] }
 0x89d   :  { %7387 = vmatpush1.bf16.msra.mxu1 %v10349_v63  ;;  %v11879_v63 = vld [vmem:[#allocation84_spill] sm:$0xff] }
 0x89e   :  { %7389 = vmatprep.subr.bf16.mxu1 %v11864_v45 }
 0x8a1   :  { %7391 = vmatpush1.bf16.msra.mxu1 %v11865_v54 }
 0x8a2   :  { %7393 = vmatprep.subr.bf16.mxu1 %v11866_v47 }
 0x8a5   :  { %7395 = vmatpush1.bf16.msra.mxu1 %v11867_v27 }
 0x8a6   :  { %7397 = vmatprep.subr.bf16.mxu1 %v11868_v29 }
 0x8a9   :  { %7399 = vmatpush1.bf16.msra.mxu1 %v11869_v1 }
 0x8aa   :  { %7401 = vmatprep.subr.bf16.mxu1 %v11870_v21 }
 0x8ad   :  { %7403 = vmatpush1.bf16.msra.mxu1 %v11871_v62 }
 0x8ae   :  { %7405 = vmatprep.subr.bf16.mxu1 %v11872_v53 }
 0x8b1   :  { %7407 = vmatpush1.bf16.msra.mxu1 %v11873_v11 }
 0x8b2   :  { %7409 = vmatprep.subr.bf16.mxu1 %v11874_v31 }
 0x8b5   :  { %7411 = vmatpush1.bf16.msra.mxu1 %v11875_v50 }
 0x8b6   :  { %7413 = vmatprep.subr.bf16.mxu1 %v11876_v9 }
 0x8b9   :  { %7415 = vmatpush1.bf16.msra.mxu1 %v11877_v39 }
 0x8ba   :  { %7417 = vmatprep.subr.bf16.mxu1 %v11878_v25 }
 0x8bd   :  { %7419 = vmatpush1.bf16.msra.mxu1 %v11879_v63 }
 0x8be   :  { %7421 = vmatprep.subr.bf16.mxu1 %v11796_v7 }
 0x8c0   :  { %5283 = vmatmul.mubr.f32.vlgmr.msra.gmra.mrb[4].mxu1 %v11880_v8 }
 0x8c1   :  { %7423 = vmatpush1.bf16.msra.mxu1 %v11798_v36  ;;  %5418 = vmatprep.mubr.f32.mxu1 %v10544_v52 }
 0x8c2   :  { %7425 = vmatprep.subr.bf16.mxu1 %v11799_v22 }
 0x8c5   :  { %7427 = vmatpush1.bf16.msra.mxu1 %v11800_v51 }
 0x8c6   :  { %7429 = vmatprep.subr.bf16.mxu1 %v11801_v34 }
 0x8c9   :  { %7431 = vmatpush1.bf16.msra.mxu1 %v11802_v48 }
 0x8ca   :  { %7433 = vmatprep.subr.bf16.mxu1 %v11803_v42 }
 0x8cd   :  { %7435 = vmatpush1.bf16.msra.mxu1 %v11804_v30  ;;  %v11881_v30 = vld [vmem:[#allocation9_spill] sm:$0xff] }
 0x8ce   :  { %7437 = vmatprep.subr.bf16.mxu1 %v11805_v20  ;;  %v5456_v20 = vsub.s32 6, %v11881_v30 }
 0x8d1   :  { %7439 = vmatpush1.bf16.msra.mxu1 %v11806_v59  ;;  %v11882_v59 = vld [vmem:[#allocation28_spill] sm:$0xff] }
 0x8d2   :  { %7441 = vmatprep.subr.bf16.mxu1 %v11807_v49  ;;  %v11883_v49 = vld [vmem:[#allocation103_spill] sm:$0xff] }
 0x8d5   :  { %7443 = vmatpush1.bf16.msra.mxu1 %v11808_v13  ;;  %v5433_v13 = vrot.slane %v11883_v49, %v11882_v59 }
 0x8d6   :  { %7445 = vmatprep.subr.bf16.mxu1 %v11809_v0 }
 0x8d9   :  { %7447 = vmatpush1.bf16.msra.mxu1 %v11810_v60  ;;  %v5457_v60 = vrot.slane %v11883_v49, %v5456_v20 }
 0x8da   :  { %7449 = vmatprep.subr.bf16.mxu1 %v11811_v12  ;;  %v5443_v12 = vrot.slane %v5433_v13, %v11882_v59 }
 0x8db   :  { %v4282_v52 = vpop.f32.mrb[6].mxu0 }
 0x8dc   :  { %v4284_v7 = vpop.f32.mrb[7].mxu0  ;;  %v4283_v36 = vadd.f32 1e-05, %v4282_v52 }
 0x8dd   :  { %7451 = vmatpush1.bf16.msra.mxu1 %v11812_v14  ;;  %v4285_v22 = vadd.f32 1e-05, %v4284_v7 }
 0x8de   :  { %7453 = vmatprep.subr.bf16.mxu1 %v11813_v16 }
 0x8e1   :  { %7455 = vmatpush1.bf16.msra.mxu1 %v11814_v33 }
 0x8e2   :  { %7457 = vmatprep.subr.bf16.mxu1 %v11815_v28  ;;  %v11885_v28 = vld [vmem:[#allocation85_spill] sm:$0xff] }
 0x8e5   :  { %7459 = vmatpush1.bf16.msra.mxu1 %v11816_v10 }
 0x8e6   :  { %7461 = vmatprep.subr.bf16.mxu1 %v11817_v43 }
 0x8e9   :  { %7463 = vmatpush1.bf16.msra.mxu1 %v11818_v41  ;;  %v11886_v41 = vld [vmem:[#allocation87_spill] sm:$0xff] }
 0x8ea   :  { %7465 = vmatprep.subr.bf16.mxu1 %v11819_v40 }
 0x8ed   :  { %7467 = vmatpush1.bf16.msra.mxu1 %v11820_v32 }
 0x8ee   :  { %7469 = vmatprep.subr.bf16.mxu1 %v11821_v46 }
 0x8f1   :  { %7471 = vmatpush1.bf16.msra.mxu1 %v11822_v55 }
 0x8f2   :  { %7473 = vmatprep.subr.bf16.mxu1 %v11823_v24 }
 0x8f5   :  { %7475 = vmatpush1.bf16.msra.mxu1 %v11695_v58  ;;  %v5436_v58 = vsub.s32 5, %v11881_v30 }
 0x8f6   :  { %7477 = vmatprep.subr.bf16.mxu1 %v11824_v18 }
 0x8f9   :  { %7479 = vmatpush1.bf16.msra.mxu1 %v11825_v44 }
 0x8fa   :  { %7481 = vmatprep.subr.bf16.mxu1 %v11826_v19  ;;  %v5437_v19 = vrot.slane %v11883_v49, %v5436_v58 }
 0x8fc   :  { %v5447_v16 = vrot.slane %v5437_v19, %v11882_v59 }
 0x8fd   :  { %7483 = vmatpush1.bf16.msra.mxu1 %v11703_v38  ;;  %v11884_v38 = vld [vmem:[#allocation29_spill] sm:$0xff] }
 0x8fe   :  { %v5453_v0 = vrot.slane %v11883_v49, %v11884_v38  ;;  %v5467_v32 = vrot.slane %v5457_v60, %v11884_v38 }
 0x900   :  { %5420 = vmatmul.mubr.f32.vlgmr.msra.gmra.mrb[4].mxu1 %v11880_v8  ;;  %v5463_v43 = vrot.slane %v5453_v0, %v11884_v38 }
 0x9d3   :  { %v5421_v51 = vpop.f32.mrb[4].mxu1 }
 0x9d4   :  { %v7489_v34 = vadd.f32 %v5421_v51, %v4283_v36  ;;  %v5423_v48 = vpop.f32.mrb[5].mxu1 }
 0x9d5   :  { %v7491_v42 = vadd.f32 %v5423_v48, %v4285_v22 }
 0x9d6   :  { %7562 = vrsqrt.f32 %v7489_v34 }
 0x9d7   :  { %7564 = vrsqrt.f32 %v7491_v42 }
 0x9e0   :  { %v7563_v14 = vpop.eup %7562 }
 0x9e1   :  { %v7565_v33 = vpop.eup %7564  ;;  %v5428_v10 = vmul.f32 %v7563_v14, %v11885_v28 }
 0x9e2   :  { %v5429_v40 = vmul.f32 %v7565_v33, %v11886_v41 }
 0x9e3   :  { %v5448_v46 = vmul.f32 %v5443_v12, %v5428_v10 }
 0x9e4   :  { %v5449_v55 = vmul.f32 %v5447_v16, %v5429_v40 }
 0x9e5   :  { %v5468_v24 = vadd.f32 %v5463_v43, %v5448_v46 }
 0x9e6   :  { %v5469_v18 = vadd.f32 %v5467_v32, %v5449_v55 }
 0x9e7   :  { %v5470_v44 = vmax.f32 %v5468_v24, 0.0 }
 0x9e8   :  { %v5471_v61 = vmax.f32 %v5469_v18, 0.0 }
 0x9e9   :  { %5472 = vst [vmem:[%s10717_s7] sm:$0xff] %v5470_v44 }
 0x9ea   :  { %5473 = vst [vmem:[%s10717_s7 + $0x8] sm:$0xff] %v5471_v61 }
 0x9eb   :  { %5478 = vsyncpa [#allocation3], 1 }
 0x9ec   :  { %5479 = vsyncpa [#allocation5], 1 }

</bundles_post_ra>
